<compile_context>
chip_gen: v7x
topology: tpu7x:2x2x1
jax: 0.10.0
libtpu: 0.0.40
codegen_flags: <defaults>
</compile_context>

<pallas_src>
import math
import jax
import jax.numpy as jnp
from jax.experimental import pallas as pl
from jax.experimental.pallas import tpu as pltpu

# ---- small config consistent with SCGPTModel / collator defaults -------------
VOCAB = 64
D_MODEL = 32
N_HEADS = 4
N_LAYERS = 2
EXPANSION = 4
D_FF = D_MODEL * EXPANSION
PAD_TOKEN_ID = 0
PAD_VALUE = -2.0
MAX_VALUE = 512.0      # ContinuousValueEncoder clamp(max=512)
LN_EPS = 1e-5          # torch.nn.LayerNorm default
NEG_INF = -1e9
MXU_DTYPE = jnp.bfloat16   # set to jnp.float32 for bit-faithful f32 matmuls


# ------------------------------- kernel helpers -------------------------------
def _layer_norm(x, g, b):
    mu = jnp.mean(x, axis=-1, keepdims=True)
    var = jnp.mean(jnp.square(x - mu), axis=-1, keepdims=True)
    return (x - mu) * jax.lax.rsqrt(var + LN_EPS) * g + b


def _mm(a, w):
    """MXU matmul: bf16 operands, f32 accumulation."""
    return jnp.dot(a.astype(MXU_DTYPE), w.astype(MXU_DTYPE),
                   preferred_element_type=jnp.float32)


# --------------------------- single fused forward kernel -----------------------
def _fused_kernel(gene_ref, val_ref, bias_ref,
                  gln_g, gln_b, vw1, vb1, vw2, vb2,
                  Lln1g, Lln1b, Lwqkv, Lbqkv, Lwo, Lbo,
                  Lln2g, Lln2b, Lw1, Lb1, Lw2, Lb2,
                  lnf_g, lnf_b, wd1, bd1, wd2, bd2, wd3t, bd3,
                  pred_ref, cell_ref):
    D = D_MODEL
    H = N_HEADS
    Dh = D // H
    scale = 1.0 / math.sqrt(Dh)
    S = gene_ref.shape[0]            # one sequence (batch element) per grid step

    gene = gene_ref[...]             # [S, D]
    vals = val_ref[...]              # [S, 1]

    # additive key-padding bias, broadcast once (hoisted above the layer loop)
    bias_hqk = jnp.broadcast_to(bias_ref[...][None], (H, S, S))   # [H, S, S]

    # --- GeneEncoder LayerNorm + ContinuousValueEncoder (Linear->ReLU->Linear) ---
    x = _layer_norm(gene, gln_g[...], gln_b[...])
    v = jnp.minimum(vals, MAX_VALUE)                              # torch.clamp(max=512)
    hmlp = jnp.maximum(v * vw1[...] + vb1[...], 0.0)              # Linear(1, D) + ReLU
    x = x + _mm(hmlp, vw2[...]) + vb2[...]                        # + Linear(D, D)

    # --- N_LAYERS pre-norm transformer blocks (weights resident in VMEM) ---
    for li in range(N_LAYERS):
        # multi-head self-attention (all heads in one batched einsum pair)
        h = _layer_norm(x, Lln1g[li], Lln1b[li])
        qkv = _mm(h, Lwqkv[li]) + Lbqkv[li]                       # [S, 3D]
        q = qkv[:, 0 * D:1 * D].reshape(S, H, Dh)                 # [S, H, Dh]
        k = qkv[:, 1 * D:2 * D].reshape(S, H, Dh)
        vv = qkv[:, 2 * D:3 * D].reshape(S, H, Dh)
        s = jnp.einsum('qhd,khd->hqk', q.astype(MXU_DTYPE), k.astype(MXU_DTYPE),
                       preferred_element_type=jnp.float32) * scale + bias_hqk
        p = jax.nn.softmax(s, axis=-1)                            # f32
        ctx = jnp.einsum('hqk,khd->qhd', p.astype(MXU_DTYPE), vv.astype(MXU_DTYPE),
                         preferred_element_type=jnp.float32)      # [S, H, Dh]
        ctx2 = ctx.reshape(S, D)                                  # concat heads on features
        x = x + _mm(ctx2, Lwo[li]) + Lbo[li]                      # one full W_out dot

        # feed-forward
        h2 = _layer_norm(x, Lln2g[li], Lln2b[li])
        ff = _mm(h2, Lw1[li]) + Lb1[li]
        ff = jax.nn.gelu(ff, approximate=True)
        ff = _mm(ff, Lw2[li]) + Lb2[li]
        x = x + ff

    # --- final norm (pre-norm scheme) + cell_emb (cls) + ExprDecoder ---
    y = _layer_norm(x, lnf_g[...], lnf_b[...])
    cell_ref[...] = y[0:1, :]                                     # [1, D] cls row

    hd = jax.nn.leaky_relu(_mm(y, wd1[...]) + bd1[...])
    hd = jax.nn.leaky_relu(_mm(hd, wd2[...]) + bd2[...])
    # lane-dense pred row: wd3t [1, D] contracted against hd [S, D] -> [1, S]
    pred_row = jax.lax.dot_general(
        wd3t[...].astype(MXU_DTYPE), hd.astype(MXU_DTYPE),
        dimension_numbers=(((1,), (1,)), ((), ())),
        preferred_element_type=jnp.float32) + bd3[...]
    pred_ref[...] = pred_row                                      # [1, S]


# ------------------------------ pallas_call wrapper -----------------------------
_WEIGHT_NAMES = ("gene_ln_g", "gene_ln_b",
                 "val_w1", "val_b1", "val_w2", "val_b2",
                 "L_ln1_g", "L_ln1_b", "L_wqkv", "L_bqkv", "L_wo", "L_bo",
                 "L_ln2_g", "L_ln2_b", "L_w1", "L_b1", "L_w2", "L_b2",
                 "lnf_g", "lnf_b",
                 "wd1", "bd1", "wd2", "bd2", "wd3t", "bd3")


def _batched_spec(shape):
    """Leading batch dim squeezed out; rest of the array is the block."""
    rest = tuple(shape[1:])
    return pl.BlockSpec((None,) + rest,
                        lambda b, n=len(rest): (b,) + (0,) * n)


def _resident_spec(shape):
    """Whole array as one VMEM-resident block (constant index_map)."""
    n = len(shape)
    return pl.BlockSpec(tuple(shape), lambda b, n=n: (0,) * n)


def _fused_forward(gene3d, vals3d, bias3d, p):
    B, S, D = gene3d.shape
    weights = tuple(p[k] for k in _WEIGHT_NAMES)
    arrays = (gene3d, vals3d, bias3d) + weights

    in_specs = ([_batched_spec(gene3d.shape),
                 _batched_spec(vals3d.shape),
                 _batched_spec(bias3d.shape)]
                + [_resident_spec(w.shape) for w in weights])
    out_shape = (jax.ShapeDtypeStruct((B, 1, S), jnp.float32),    # pred rows
                 jax.ShapeDtypeStruct((B, 1, D), jnp.float32))    # cell_emb rows
    out_specs = (pl.BlockSpec((None, 1, S), lambda b: (b, 0, 0)),
                 pl.BlockSpec((None, 1, D), lambda b: (b, 0, 0)))

    return pl.pallas_call(
        _fused_kernel,
        grid=(B,),                                                # parallel over batch
        in_specs=in_specs,
        out_specs=out_specs,
        out_shape=out_shape,
        compiler_params=pltpu.CompilerParams(
            dimension_semantics=("parallel",),
            vmem_limit_bytes=32 * 1024 * 1024),
    )(*arrays)


# ---------------------------------- forward ------------------------------------
def scgpt_perceptual_forward(params, src, values, src_key_padding_mask):
    """src/values/src_key_padding_mask: [B, S]; mask True == padding (ignored)."""
    B, S = src.shape
    # glue: embedding-table gather + mask->additive-bias stay in plain JAX.
    gene_emb = jnp.take(params["gene_emb"], src, axis=0).astype(jnp.float32)   # [B, S, D]
    vals3d = values.astype(jnp.float32)[..., None]                             # [B, S, 1]
    bias3d = jnp.where(src_key_padding_mask, NEG_INF, 0.0
                       ).astype(jnp.float32)[:, None, :]                       # [B, 1, S]

    pred, cell = _fused_forward(gene_emb, vals3d, bias3d, params)
    return {"pcpt_preds": pred[:, 0, :],      # [B, S]
            "cell_emb": cell[:, 0, :]}        # [B, D]


# ------------------------------ deterministic init ------------------------------
def init_params(key):
    keys = iter(jax.random.split(key, 128))

    def nrm(shape, dtype=MXU_DTYPE, scale=0.02):
        return (scale * jax.random.normal(next(keys), shape)).astype(dtype)

    D, F, L = D_MODEL, D_FF, N_LAYERS
    gene_emb = (0.02 * jax.random.normal(next(keys), (VOCAB, D))).astype(jnp.float32)
    gene_emb = gene_emb.at[PAD_TOKEN_ID].set(0.0)        # Embedding(padding_idx=pad_token_id)

    f32 = jnp.float32
    params = {
        "gene_emb": gene_emb,
        "gene_ln_g": jnp.ones((1, D), f32),
        "gene_ln_b": jnp.zeros((1, D), f32),
        # ContinuousValueEncoder: Linear(1, D) -> ReLU -> Linear(D, D)
        "val_w1": nrm((1, D), f32), "val_b1": nrm((1, D), f32),
        "val_w2": nrm((D, D)), "val_b2": nrm((1, D), f32),
        # stacked per-layer transformer weights (matmul weights in bf16 for MXU)
        "L_ln1_g": jnp.ones((L, 1, D), f32),
        "L_ln1_b": jnp.zeros((L, 1, D), f32),
        "L_wqkv": nrm((L, D, 3 * D)), "L_bqkv": nrm((L, 1, 3 * D), f32),
        "L_wo": nrm((L, D, D)), "L_bo": nrm((L, 1, D), f32),
        "L_ln2_g": jnp.ones((L, 1, D), f32),
        "L_ln2_b": jnp.zeros((L, 1, D), f32),
        "L_w1": nrm((L, D, F)), "L_b1": nrm((L, 1, F), f32),
        "L_w2": nrm((L, F, D)), "L_b2": nrm((L, 1, D), f32),
        # final encoder norm (norm_scheme == "pre")
        "lnf_g": jnp.ones((1, D), f32),
        "lnf_b": jnp.zeros((1, D), f32),
        # ExprDecoder: Linear(D,D) -> leaky_relu -> Linear(D,D) -> leaky_relu -> Linear(D,1)
        # final layer's weight stored transposed as [1, D] for a lane-dense pred row.
        "wd1": nrm((D, D)), "bd1": nrm((1, D), f32),
        "wd2": nrm((D, D)), "bd2": nrm((1, D), f32),
        "wd3t": nrm((1, D)), "bd3": nrm((1, 1), f32),
    }
    return params


# ------------------------------------ main --------------------------------------
if __name__ == "__main__":
    key = jax.random.PRNGKey(0)
    pkey, dkey = jax.random.split(key)
    params = init_params(pkey)

    B, S = 2, 8
    k1, k2 = jax.random.split(dkey)
    src = jax.random.randint(k1, (B, S), 2, VOCAB)
    src = src.at[:, 0].set(1)                      # <cls> token at position 0
    src = src.at[1, -2:].set(PAD_TOKEN_ID)         # some padding in batch element 1
    values = jax.random.uniform(k2, (B, S), minval=0.0, maxval=10.0)
    values = jnp.where(src == PAD_TOKEN_ID, PAD_VALUE, values)
    src_key_padding_mask = (src == PAD_TOKEN_ID)   # True == padding

    fwd = jax.jit(scgpt_perceptual_forward)
    out = fwd(params, src, values, src_key_padding_mask)
    jax.block_until_ready(out)

    assert out["pcpt_preds"].shape == (B, S)
    assert out["cell_emb"].shape == (B, D_MODEL)
    assert bool(jnp.all(jnp.isfinite(out["pcpt_preds"])))
    assert bool(jnp.all(jnp.isfinite(out["cell_emb"])))
    print("KERNEL_OK")
</pallas_src>

<mosaic_0001>
module attributes {stable_mosaic.version = 11 : i64} {
  func.func @_fused_kernel(%arg0: i32, %arg1: memref<1x8x32xf32, #tpu.memory_space<vmem>>, %arg2: memref<1x8x1xf32, #tpu.memory_space<vmem>>, %arg3: memref<1x1x8xf32, #tpu.memory_space<vmem>>, %arg4: memref<1x32xf32, #tpu.memory_space<vmem>>, %arg5: memref<1x32xf32, #tpu.memory_space<vmem>>, %arg6: memref<1x32xf32, #tpu.memory_space<vmem>>, %arg7: memref<1x32xf32, #tpu.memory_space<vmem>>, %arg8: memref<32x32xbf16, #tpu.memory_space<vmem>>, %arg9: memref<1x32xf32, #tpu.memory_space<vmem>>, %arg10: memref<2x1x32xf32, #tpu.memory_space<vmem>>, %arg11: memref<2x1x32xf32, #tpu.memory_space<vmem>>, %arg12: memref<2x32x96xbf16, #tpu.memory_space<vmem>>, %arg13: memref<2x1x96xf32, #tpu.memory_space<vmem>>, %arg14: memref<2x32x32xbf16, #tpu.memory_space<vmem>>, %arg15: memref<2x1x32xf32, #tpu.memory_space<vmem>>, %arg16: memref<2x1x32xf32, #tpu.memory_space<vmem>>, %arg17: memref<2x1x32xf32, #tpu.memory_space<vmem>>, %arg18: memref<2x32x128xbf16, #tpu.memory_space<vmem>>, %arg19: memref<2x1x128xf32, #tpu.memory_space<vmem>>, %arg20: memref<2x128x32xbf16, #tpu.memory_space<vmem>>, %arg21: memref<2x1x32xf32, #tpu.memory_space<vmem>>, %arg22: memref<1x32xf32, #tpu.memory_space<vmem>>, %arg23: memref<1x32xf32, #tpu.memory_space<vmem>>, %arg24: memref<32x32xbf16, #tpu.memory_space<vmem>>, %arg25: memref<1x32xf32, #tpu.memory_space<vmem>>, %arg26: memref<32x32xbf16, #tpu.memory_space<vmem>>, %arg27: memref<1x32xf32, #tpu.memory_space<vmem>>, %arg28: memref<1x32xbf16, #tpu.memory_space<vmem>>, %arg29: memref<1x1xf32, #tpu.memory_space<vmem>>, %arg30: memref<1x1x8xf32, #tpu.memory_space<vmem>>, %arg31: memref<1x1x32xf32, #tpu.memory_space<vmem>>) attributes {dimension_semantics = [#tpu.dimension_semantics<parallel>], iteration_bounds = array<i64: 2>, scalar_prefetch = 0 : i64, scratch_operands = 0 : i64, tpu.core_type = #tpu.core_type<tc>, window_params = [{transform_indices = @transform_0, window_bounds = array<i64: 1, 8, 32>}, {transform_indices = @transform_1, window_bounds = array<i64: 1, 8, 1>}, {transform_indices = @transform_2, window_bounds = array<i64: 1, 1, 8>}, {pipeline_mode = #tpu.pipeline_mode<synchronous>, transform_indices = @transform_3, window_bounds = array<i64: 1, 32>}, {pipeline_mode = #tpu.pipeline_mode<synchronous>, transform_indices = @transform_4, window_bounds = array<i64: 1, 32>}, {pipeline_mode = #tpu.pipeline_mode<synchronous>, transform_indices = @transform_5, window_bounds = array<i64: 1, 32>}, {pipeline_mode = #tpu.pipeline_mode<synchronous>, transform_indices = @transform_6, window_bounds = array<i64: 1, 32>}, {pipeline_mode = #tpu.pipeline_mode<synchronous>, transform_indices = @transform_7, window_bounds = array<i64: 32, 32>}, {pipeline_mode = #tpu.pipeline_mode<synchronous>, transform_indices = @transform_8, window_bounds = array<i64: 1, 32>}, {pipeline_mode = #tpu.pipeline_mode<synchronous>, transform_indices = @transform_9, window_bounds = array<i64: 2, 1, 32>}, {pipeline_mode = #tpu.pipeline_mode<synchronous>, transform_indices = @transform_10, window_bounds = array<i64: 2, 1, 32>}, {pipeline_mode = #tpu.pipeline_mode<synchronous>, transform_indices = @transform_11, window_bounds = array<i64: 2, 32, 96>}, {pipeline_mode = #tpu.pipeline_mode<synchronous>, transform_indices = @transform_12, window_bounds = array<i64: 2, 1, 96>}, {pipeline_mode = #tpu.pipeline_mode<synchronous>, transform_indices = @transform_13, window_bounds = array<i64: 2, 32, 32>}, {pipeline_mode = #tpu.pipeline_mode<synchronous>, transform_indices = @transform_14, window_bounds = array<i64: 2, 1, 32>}, {pipeline_mode = #tpu.pipeline_mode<synchronous>, transform_indices = @transform_15, window_bounds = array<i64: 2, 1, 32>}, {pipeline_mode = #tpu.pipeline_mode<synchronous>, transform_indices = @transform_16, window_bounds = array<i64: 2, 1, 32>}, {pipeline_mode = #tpu.pipeline_mode<synchronous>, transform_indices = @transform_17, window_bounds = array<i64: 2, 32, 128>}, {pipeline_mode = #tpu.pipeline_mode<synchronous>, transform_indices = @transform_18, window_bounds = array<i64: 2, 1, 128>}, {pipeline_mode = #tpu.pipeline_mode<synchronous>, transform_indices = @transform_19, window_bounds = array<i64: 2, 128, 32>}, {pipeline_mode = #tpu.pipeline_mode<synchronous>, transform_indices = @transform_20, window_bounds = array<i64: 2, 1, 32>}, {pipeline_mode = #tpu.pipeline_mode<synchronous>, transform_indices = @transform_21, window_bounds = array<i64: 1, 32>}, {pipeline_mode = #tpu.pipeline_mode<synchronous>, transform_indices = @transform_22, window_bounds = array<i64: 1, 32>}, {pipeline_mode = #tpu.pipeline_mode<synchronous>, transform_indices = @transform_23, window_bounds = array<i64: 32, 32>}, {pipeline_mode = #tpu.pipeline_mode<synchronous>, transform_indices = @transform_24, window_bounds = array<i64: 1, 32>}, {pipeline_mode = #tpu.pipeline_mode<synchronous>, transform_indices = @transform_25, window_bounds = array<i64: 32, 32>}, {pipeline_mode = #tpu.pipeline_mode<synchronous>, transform_indices = @transform_26, window_bounds = array<i64: 1, 32>}, {pipeline_mode = #tpu.pipeline_mode<synchronous>, transform_indices = @transform_27, window_bounds = array<i64: 1, 32>}, {pipeline_mode = #tpu.pipeline_mode<synchronous>, transform_indices = @transform_28, window_bounds = array<i64: 1, 1>}, {transform_indices = @transform_29, window_bounds = array<i64: 1, 1, 8>}, {transform_indices = @transform_30, window_bounds = array<i64: 1, 1, 32>}]} {
    %c0 = arith.constant 0 : index
    %c0_0 = arith.constant 0 : index
    %c0_1 = arith.constant 0 : index
    %0 = vector.load %arg1[%c0, %c0_0, %c0_1] : memref<1x8x32xf32, #tpu.memory_space<vmem>>, vector<1x8x32xf32>
    %1 = vector.shape_cast %0 : vector<1x8x32xf32> to vector<8x32xf32>
    %c0_2 = arith.constant 0 : index
    %c0_3 = arith.constant 0 : index
    %c0_4 = arith.constant 0 : index
    %2 = vector.load %arg2[%c0_2, %c0_3, %c0_4] : memref<1x8x1xf32, #tpu.memory_space<vmem>>, vector<1x8x1xf32>
    %3 = vector.shape_cast %2 : vector<1x8x1xf32> to vector<8x1xf32>
    %c0_5 = arith.constant 0 : index
    %c0_6 = arith.constant 0 : index
    %c0_7 = arith.constant 0 : index
    %4 = vector.load %arg3[%c0_5, %c0_6, %c0_7] : memref<1x1x8xf32, #tpu.memory_space<vmem>>, vector<1x1x8xf32>
    %5 = vector.shape_cast %4 : vector<1x1x8xf32> to vector<1x8xf32>
    %6 = vector.shape_cast %5 : vector<1x8xf32> to vector<1x1x8xf32>
    %7 = vector.shape_cast %6 : vector<1x1x8xf32> to vector<1x1x8xf32>
    %8 = vector.broadcast %7 : vector<1x1x8xf32> to vector<4x8x8xf32>
    %c0_8 = arith.constant 0 : index
    %c0_9 = arith.constant 0 : index
    %9 = vector.load %arg4[%c0_8, %c0_9] : memref<1x32xf32, #tpu.memory_space<vmem>>, vector<1x32xf32>
    %c0_10 = arith.constant 0 : index
    %c0_11 = arith.constant 0 : index
    %10 = vector.load %arg5[%c0_10, %c0_11] : memref<1x32xf32, #tpu.memory_space<vmem>>, vector<1x32xf32>
    %cst = arith.constant dense<0.000000e+00> : vector<8xf32>
    %11 = vector.multi_reduction <add>, %1, %cst [1] : vector<8x32xf32> to vector<8xf32>
    %12 = vector.shape_cast %11 : vector<8xf32> to vector<8x1xf32>
    %cst_12 = arith.constant 3.200000e+01 : f32
    %13 = vector.broadcast %cst_12 : f32 to vector<8x1xf32>
    %14 = arith.divf %12, %13 : vector<8x1xf32>
    %15 = vector.broadcast %14 : vector<8x1xf32> to vector<8x32xf32>
    %16 = arith.subf %1, %15 : vector<8x32xf32>
    %17 = arith.mulf %16, %16 : vector<8x32xf32>
    %cst_13 = arith.constant dense<0.000000e+00> : vector<8xf32>
    %18 = vector.multi_reduction <add>, %17, %cst_13 [1] : vector<8x32xf32> to vector<8xf32>
    %19 = vector.shape_cast %18 : vector<8xf32> to vector<8x1xf32>
    %cst_14 = arith.constant 3.200000e+01 : f32
    %20 = vector.broadcast %cst_14 : f32 to vector<8x1xf32>
    %21 = arith.divf %19, %20 : vector<8x1xf32>
    %22 = vector.broadcast %14 : vector<8x1xf32> to vector<8x32xf32>
    %23 = arith.subf %1, %22 : vector<8x32xf32>
    %cst_15 = arith.constant 9.99999974E-6 : f32
    %24 = vector.broadcast %cst_15 : f32 to vector<8x1xf32>
    %25 = arith.addf %21, %24 : vector<8x1xf32>
    %26 = math.rsqrt %25 : vector<8x1xf32>
    %27 = vector.broadcast %26 : vector<8x1xf32> to vector<8x32xf32>
    %28 = arith.mulf %23, %27 : vector<8x32xf32>
    %29 = vector.broadcast %9 : vector<1x32xf32> to vector<8x32xf32>
    %30 = arith.mulf %28, %29 : vector<8x32xf32>
    %31 = vector.broadcast %10 : vector<1x32xf32> to vector<8x32xf32>
    %32 = arith.addf %30, %31 : vector<8x32xf32>
    %cst_16 = arith.constant 5.120000e+02 : f32
    %33 = vector.broadcast %cst_16 : f32 to vector<8x1xf32>
    %34 = arith.minimumf %3, %33 : vector<8x1xf32>
    %c0_17 = arith.constant 0 : index
    %c0_18 = arith.constant 0 : index
    %35 = vector.load %arg6[%c0_17, %c0_18] : memref<1x32xf32, #tpu.memory_space<vmem>>, vector<1x32xf32>
    %36 = vector.broadcast %34 : vector<8x1xf32> to vector<8x32xf32>
    %37 = vector.broadcast %35 : vector<1x32xf32> to vector<8x32xf32>
    %38 = arith.mulf %36, %37 : vector<8x32xf32>
    %c0_19 = arith.constant 0 : index
    %c0_20 = arith.constant 0 : index
    %39 = vector.load %arg7[%c0_19, %c0_20] : memref<1x32xf32, #tpu.memory_space<vmem>>, vector<1x32xf32>
    %40 = vector.broadcast %39 : vector<1x32xf32> to vector<8x32xf32>
    %41 = arith.addf %38, %40 : vector<8x32xf32>
    %cst_21 = arith.constant 0.000000e+00 : f32
    %42 = vector.broadcast %cst_21 : f32 to vector<8x32xf32>
    %43 = arith.maximumf %41, %42 : vector<8x32xf32>
    %c0_22 = arith.constant 0 : index
    %c0_23 = arith.constant 0 : index
    %44 = vector.load %arg8[%c0_22, %c0_23] : memref<32x32xbf16, #tpu.memory_space<vmem>>, vector<32x32xbf16>
    %45 = arith.truncf %43 : vector<8x32xf32> to vector<8x32xbf16>
    %cst_24 = arith.constant dense<0.000000e+00> : vector<8x32xf32>
    %46 = tpu.matmul %45, %44, %cst_24 {dimension_numbers = #tpu.dot_dimension_numbers<[1], [0], [0], [1], [0, 0, 1, 1], [], []>} : vector<8x32xbf16>, vector<32x32xbf16>, vector<8x32xf32> -> vector<8x32xf32>
    %47 = arith.addf %32, %46 : vector<8x32xf32>
    %c0_25 = arith.constant 0 : index
    %c0_26 = arith.constant 0 : index
    %48 = vector.load %arg9[%c0_25, %c0_26] : memref<1x32xf32, #tpu.memory_space<vmem>>, vector<1x32xf32>
    %49 = vector.broadcast %48 : vector<1x32xf32> to vector<8x32xf32>
    %50 = arith.addf %47, %49 : vector<8x32xf32>
    %c0_27 = arith.constant 0 : index
    %c0_28 = arith.constant 0 : index
    %c0_29 = arith.constant 0 : index
    %51 = vector.load %arg10[%c0_27, %c0_28, %c0_29] : memref<2x1x32xf32, #tpu.memory_space<vmem>>, vector<1x1x32xf32>
    %52 = vector.shape_cast %51 : vector<1x1x32xf32> to vector<1x32xf32>
    %c0_30 = arith.constant 0 : index
    %c0_31 = arith.constant 0 : index
    %c0_32 = arith.constant 0 : index
    %53 = vector.load %arg11[%c0_30, %c0_31, %c0_32] : memref<2x1x32xf32, #tpu.memory_space<vmem>>, vector<1x1x32xf32>
    %54 = vector.shape_cast %53 : vector<1x1x32xf32> to vector<1x32xf32>
    %cst_33 = arith.constant dense<0.000000e+00> : vector<8xf32>
    %55 = vector.multi_reduction <add>, %50, %cst_33 [1] : vector<8x32xf32> to vector<8xf32>
    %56 = vector.shape_cast %55 : vector<8xf32> to vector<8x1xf32>
    %cst_34 = arith.constant 3.200000e+01 : f32
    %57 = vector.broadcast %cst_34 : f32 to vector<8x1xf32>
    %58 = arith.divf %56, %57 : vector<8x1xf32>
    %59 = vector.broadcast %58 : vector<8x1xf32> to vector<8x32xf32>
    %60 = arith.subf %50, %59 : vector<8x32xf32>
    %61 = arith.mulf %60, %60 : vector<8x32xf32>
    %cst_35 = arith.constant dense<0.000000e+00> : vector<8xf32>
    %62 = vector.multi_reduction <add>, %61, %cst_35 [1] : vector<8x32xf32> to vector<8xf32>
    %63 = vector.shape_cast %62 : vector<8xf32> to vector<8x1xf32>
    %cst_36 = arith.constant 3.200000e+01 : f32
    %64 = vector.broadcast %cst_36 : f32 to vector<8x1xf32>
    %65 = arith.divf %63, %64 : vector<8x1xf32>
    %66 = vector.broadcast %58 : vector<8x1xf32> to vector<8x32xf32>
    %67 = arith.subf %50, %66 : vector<8x32xf32>
    %cst_37 = arith.constant 9.99999974E-6 : f32
    %68 = vector.broadcast %cst_37 : f32 to vector<8x1xf32>
    %69 = arith.addf %65, %68 : vector<8x1xf32>
    %70 = math.rsqrt %69 : vector<8x1xf32>
    %71 = vector.broadcast %70 : vector<8x1xf32> to vector<8x32xf32>
    %72 = arith.mulf %67, %71 : vector<8x32xf32>
    %73 = vector.broadcast %52 : vector<1x32xf32> to vector<8x32xf32>
    %74 = arith.mulf %72, %73 : vector<8x32xf32>
    %75 = vector.broadcast %54 : vector<1x32xf32> to vector<8x32xf32>
    %76 = arith.addf %74, %75 : vector<8x32xf32>
    %c0_38 = arith.constant 0 : index
    %c0_39 = arith.constant 0 : index
    %c0_40 = arith.constant 0 : index
    %77 = vector.load %arg12[%c0_38, %c0_39, %c0_40] : memref<2x32x96xbf16, #tpu.memory_space<vmem>>, vector<1x32x96xbf16>
    %78 = vector.shape_cast %77 : vector<1x32x96xbf16> to vector<32x96xbf16>
    %79 = arith.truncf %76 : vector<8x32xf32> to vector<8x32xbf16>
    %cst_41 = arith.constant dense<0.000000e+00> : vector<8x96xf32>
    %80 = tpu.matmul %79, %78, %cst_41 {dimension_numbers = #tpu.dot_dimension_numbers<[1], [0], [0], [1], [0, 0, 1, 1], [], []>} : vector<8x32xbf16>, vector<32x96xbf16>, vector<8x96xf32> -> vector<8x96xf32>
    %c0_42 = arith.constant 0 : index
    %c0_43 = arith.constant 0 : index
    %c0_44 = arith.constant 0 : index
    %81 = vector.load %arg13[%c0_42, %c0_43, %c0_44] : memref<2x1x96xf32, #tpu.memory_space<vmem>>, vector<1x1x96xf32>
    %82 = vector.shape_cast %81 : vector<1x1x96xf32> to vector<1x96xf32>
    %83 = vector.broadcast %82 : vector<1x96xf32> to vector<8x96xf32>
    %84 = arith.addf %80, %83 : vector<8x96xf32>
    %85 = vector.extract_strided_slice %84 {offsets = [0, 0], sizes = [8, 32], strides = [1, 1]} : vector<8x96xf32> to vector<8x32xf32>
    %86 = vector.shape_cast %85 : vector<8x32xf32> to vector<8x4x8xf32>
    %87 = vector.extract_strided_slice %84 {offsets = [0, 32], sizes = [8, 32], strides = [1, 1]} : vector<8x96xf32> to vector<8x32xf32>
    %88 = vector.shape_cast %87 : vector<8x32xf32> to vector<8x4x8xf32>
    %89 = vector.extract_strided_slice %84 {offsets = [0, 64], sizes = [8, 32], strides = [1, 1]} : vector<8x96xf32> to vector<8x32xf32>
    %90 = vector.shape_cast %89 : vector<8x32xf32> to vector<8x4x8xf32>
    %91 = arith.truncf %86 : vector<8x4x8xf32> to vector<8x4x8xbf16>
    %92 = arith.truncf %88 : vector<8x4x8xf32> to vector<8x4x8xbf16>
    "tpu.trace_start"() <{level = 10 : i32, message = "qhd,khd->hqk"}> : () -> ()
    %cst_45 = arith.constant dense<0.000000e+00> : vector<4x8x8xf32>
    %93 = tpu.matmul %91, %92, %cst_45 {dimension_numbers = #tpu.dot_dimension_numbers<[2], [2], [0], [0], [0, 1, 0, 0, 1, 0], [1], [1]>} : vector<8x4x8xbf16>, vector<8x4x8xbf16>, vector<4x8x8xf32> -> vector<4x8x8xf32>
    "tpu.trace_stop"() : () -> ()
    %cst_46 = arith.constant 0.353553385 : f32
    %94 = vector.broadcast %cst_46 : f32 to vector<4x8x8xf32>
    %95 = arith.mulf %93, %94 : vector<4x8x8xf32>
    %96 = arith.addf %95, %8 : vector<4x8x8xf32>
    %cst_47 = arith.constant dense<0xFF800000> : vector<4x8xf32>
    %97 = vector.multi_reduction <maximumf>, %96, %cst_47 [2] : vector<4x8x8xf32> to vector<4x8xf32>
    %cst_48 = arith.constant 0xFF800000 : f32
    %98 = vector.broadcast %cst_48 : f32 to vector<4x8xf32>
    %99 = arith.maximumf %98, %97 : vector<4x8xf32>
    %100 = vector.shape_cast %99 : vector<4x8xf32> to vector<4x8x1xf32>
    %101 = vector.broadcast %100 : vector<4x8x1xf32> to vector<4x8x8xf32>
    %102 = arith.subf %96, %101 : vector<4x8x8xf32>
    %103 = math.exp %102 : vector<4x8x8xf32>
    %cst_49 = arith.constant dense<0.000000e+00> : vector<4x8xf32>
    %104 = vector.multi_reduction <add>, %103, %cst_49 [2] : vector<4x8x8xf32> to vector<4x8xf32>
    %105 = vector.shape_cast %104 : vector<4x8xf32> to vector<4x8x1xf32>
    %106 = vector.broadcast %105 : vector<4x8x1xf32> to vector<4x8x8xf32>
    %107 = arith.divf %103, %106 : vector<4x8x8xf32>
    %108 = arith.truncf %107 : vector<4x8x8xf32> to vector<4x8x8xbf16>
    %109 = arith.truncf %90 : vector<8x4x8xf32> to vector<8x4x8xbf16>
    "tpu.trace_start"() <{level = 10 : i32, message = "hqk,khd->qhd"}> : () -> ()
    %cst_50 = arith.constant dense<0.000000e+00> : vector<4x8x8xf32>
    %110 = tpu.matmul %109, %108, %cst_50 {dimension_numbers = #tpu.dot_dimension_numbers<[0], [2], [2], [1], [0, 1, 0, 2, 1, 1], [1], [0]>} : vector<8x4x8xbf16>, vector<4x8x8xbf16>, vector<4x8x8xf32> -> vector<4x8x8xf32>
    %111 = tpu.transpose %110, [2, 0, 1] : vector<4x8x8xf32> -> vector<8x4x8xf32>
    "tpu.trace_stop"() : () -> ()
    %112 = vector.shape_cast %111 : vector<8x4x8xf32> to vector<8x32xf32>
    %c0_51 = arith.constant 0 : index
    %c0_52 = arith.constant 0 : index
    %c0_53 = arith.constant 0 : index
    %113 = vector.load %arg14[%c0_51, %c0_52, %c0_53] : memref<2x32x32xbf16, #tpu.memory_space<vmem>>, vector<1x32x32xbf16>
    %114 = vector.shape_cast %113 : vector<1x32x32xbf16> to vector<32x32xbf16>
    %115 = arith.truncf %112 : vector<8x32xf32> to vector<8x32xbf16>
    %cst_54 = arith.constant dense<0.000000e+00> : vector<8x32xf32>
    %116 = tpu.matmul %115, %114, %cst_54 {dimension_numbers = #tpu.dot_dimension_numbers<[1], [0], [0], [1], [0, 0, 1, 1], [], []>} : vector<8x32xbf16>, vector<32x32xbf16>, vector<8x32xf32> -> vector<8x32xf32>
    %117 = arith.addf %50, %116 : vector<8x32xf32>
    %c0_55 = arith.constant 0 : index
    %c0_56 = arith.constant 0 : index
    %c0_57 = arith.constant 0 : index
    %118 = vector.load %arg15[%c0_55, %c0_56, %c0_57] : memref<2x1x32xf32, #tpu.memory_space<vmem>>, vector<1x1x32xf32>
    %119 = vector.shape_cast %118 : vector<1x1x32xf32> to vector<1x32xf32>
    %120 = vector.broadcast %119 : vector<1x32xf32> to vector<8x32xf32>
    %121 = arith.addf %117, %120 : vector<8x32xf32>
    %c0_58 = arith.constant 0 : index
    %c0_59 = arith.constant 0 : index
    %c0_60 = arith.constant 0 : index
    %122 = vector.load %arg16[%c0_58, %c0_59, %c0_60] : memref<2x1x32xf32, #tpu.memory_space<vmem>>, vector<1x1x32xf32>
    %123 = vector.shape_cast %122 : vector<1x1x32xf32> to vector<1x32xf32>
    %c0_61 = arith.constant 0 : index
    %c0_62 = arith.constant 0 : index
    %c0_63 = arith.constant 0 : index
    %124 = vector.load %arg17[%c0_61, %c0_62, %c0_63] : memref<2x1x32xf32, #tpu.memory_space<vmem>>, vector<1x1x32xf32>
    %125 = vector.shape_cast %124 : vector<1x1x32xf32> to vector<1x32xf32>
    %cst_64 = arith.constant dense<0.000000e+00> : vector<8xf32>
    %126 = vector.multi_reduction <add>, %121, %cst_64 [1] : vector<8x32xf32> to vector<8xf32>
    %127 = vector.shape_cast %126 : vector<8xf32> to vector<8x1xf32>
    %cst_65 = arith.constant 3.200000e+01 : f32
    %128 = vector.broadcast %cst_65 : f32 to vector<8x1xf32>
    %129 = arith.divf %127, %128 : vector<8x1xf32>
    %130 = vector.broadcast %129 : vector<8x1xf32> to vector<8x32xf32>
    %131 = arith.subf %121, %130 : vector<8x32xf32>
    %132 = arith.mulf %131, %131 : vector<8x32xf32>
    %cst_66 = arith.constant dense<0.000000e+00> : vector<8xf32>
    %133 = vector.multi_reduction <add>, %132, %cst_66 [1] : vector<8x32xf32> to vector<8xf32>
    %134 = vector.shape_cast %133 : vector<8xf32> to vector<8x1xf32>
    %cst_67 = arith.constant 3.200000e+01 : f32
    %135 = vector.broadcast %cst_67 : f32 to vector<8x1xf32>
    %136 = arith.divf %134, %135 : vector<8x1xf32>
    %137 = vector.broadcast %129 : vector<8x1xf32> to vector<8x32xf32>
    %138 = arith.subf %121, %137 : vector<8x32xf32>
    %cst_68 = arith.constant 9.99999974E-6 : f32
    %139 = vector.broadcast %cst_68 : f32 to vector<8x1xf32>
    %140 = arith.addf %136, %139 : vector<8x1xf32>
    %141 = math.rsqrt %140 : vector<8x1xf32>
    %142 = vector.broadcast %141 : vector<8x1xf32> to vector<8x32xf32>
    %143 = arith.mulf %138, %142 : vector<8x32xf32>
    %144 = vector.broadcast %123 : vector<1x32xf32> to vector<8x32xf32>
    %145 = arith.mulf %143, %144 : vector<8x32xf32>
    %146 = vector.broadcast %125 : vector<1x32xf32> to vector<8x32xf32>
    %147 = arith.addf %145, %146 : vector<8x32xf32>
    %c0_69 = arith.constant 0 : index
    %c0_70 = arith.constant 0 : index
    %c0_71 = arith.constant 0 : index
    %148 = vector.load %arg18[%c0_69, %c0_70, %c0_71] : memref<2x32x128xbf16, #tpu.memory_space<vmem>>, vector<1x32x128xbf16>
    %149 = vector.shape_cast %148 : vector<1x32x128xbf16> to vector<32x128xbf16>
    %150 = arith.truncf %147 : vector<8x32xf32> to vector<8x32xbf16>
    %cst_72 = arith.constant dense<0.000000e+00> : vector<8x128xf32>
    %151 = tpu.matmul %150, %149, %cst_72 {dimension_numbers = #tpu.dot_dimension_numbers<[1], [0], [0], [1], [0, 0, 1, 1], [], []>} : vector<8x32xbf16>, vector<32x128xbf16>, vector<8x128xf32> -> vector<8x128xf32>
    %c0_73 = arith.constant 0 : index
    %c0_74 = arith.constant 0 : index
    %c0_75 = arith.constant 0 : index
    %152 = vector.load %arg19[%c0_73, %c0_74, %c0_75] : memref<2x1x128xf32, #tpu.memory_space<vmem>>, vector<1x1x128xf32>
    %153 = vector.shape_cast %152 : vector<1x1x128xf32> to vector<1x128xf32>
    %154 = vector.broadcast %153 : vector<1x128xf32> to vector<8x128xf32>
    %155 = arith.addf %151, %154 : vector<8x128xf32>
    %156 = arith.mulf %155, %155 : vector<8x128xf32>
    %157 = arith.mulf %155, %156 : vector<8x128xf32>
    %cst_76 = arith.constant 4.471500e-02 : f32
    %158 = vector.broadcast %cst_76 : f32 to vector<8x128xf32>
    %159 = arith.mulf %158, %157 : vector<8x128xf32>
    %160 = arith.addf %155, %159 : vector<8x128xf32>
    %cst_77 = arith.constant 0.797884583 : f32
    %161 = vector.broadcast %cst_77 : f32 to vector<8x128xf32>
    %162 = arith.mulf %161, %160 : vector<8x128xf32>
    %163 = math.tanh %162 : vector<8x128xf32>
    %cst_78 = arith.constant 1.000000e+00 : f32
    %164 = vector.broadcast %cst_78 : f32 to vector<8x128xf32>
    %165 = arith.addf %164, %163 : vector<8x128xf32>
    %cst_79 = arith.constant 5.000000e-01 : f32
    %166 = vector.broadcast %cst_79 : f32 to vector<8x128xf32>
    %167 = arith.mulf %166, %165 : vector<8x128xf32>
    %168 = arith.mulf %155, %167 : vector<8x128xf32>
    %c0_80 = arith.constant 0 : index
    %c0_81 = arith.constant 0 : index
    %c0_82 = arith.constant 0 : index
    %169 = vector.load %arg20[%c0_80, %c0_81, %c0_82] : memref<2x128x32xbf16, #tpu.memory_space<vmem>>, vector<1x128x32xbf16>
    %170 = vector.shape_cast %169 : vector<1x128x32xbf16> to vector<128x32xbf16>
    %171 = arith.truncf %168 : vector<8x128xf32> to vector<8x128xbf16>
    %cst_83 = arith.constant dense<0.000000e+00> : vector<8x32xf32>
    %172 = tpu.matmul %171, %170, %cst_83 {dimension_numbers = #tpu.dot_dimension_numbers<[1], [0], [0], [1], [0, 0, 1, 1], [], []>} : vector<8x128xbf16>, vector<128x32xbf16>, vector<8x32xf32> -> vector<8x32xf32>
    %c0_84 = arith.constant 0 : index
    %c0_85 = arith.constant 0 : index
    %c0_86 = arith.constant 0 : index
    %173 = vector.load %arg21[%c0_84, %c0_85, %c0_86] : memref<2x1x32xf32, #tpu.memory_space<vmem>>, vector<1x1x32xf32>
    %174 = vector.shape_cast %173 : vector<1x1x32xf32> to vector<1x32xf32>
    %175 = vector.broadcast %174 : vector<1x32xf32> to vector<8x32xf32>
    %176 = arith.addf %172, %175 : vector<8x32xf32>
    %177 = arith.addf %121, %176 : vector<8x32xf32>
    %c1 = arith.constant 1 : index
    %c0_87 = arith.constant 0 : index
    %c0_88 = arith.constant 0 : index
    %178 = vector.load %arg10[%c1, %c0_87, %c0_88] : memref<2x1x32xf32, #tpu.memory_space<vmem>>, vector<1x1x32xf32>
    %179 = vector.shape_cast %178 : vector<1x1x32xf32> to vector<1x32xf32>
    %c1_89 = arith.constant 1 : index
    %c0_90 = arith.constant 0 : index
    %c0_91 = arith.constant 0 : index
    %180 = vector.load %arg11[%c1_89, %c0_90, %c0_91] : memref<2x1x32xf32, #tpu.memory_space<vmem>>, vector<1x1x32xf32>
    %181 = vector.shape_cast %180 : vector<1x1x32xf32> to vector<1x32xf32>
    %cst_92 = arith.constant dense<0.000000e+00> : vector<8xf32>
    %182 = vector.multi_reduction <add>, %177, %cst_92 [1] : vector<8x32xf32> to vector<8xf32>
    %183 = vector.shape_cast %182 : vector<8xf32> to vector<8x1xf32>
    %cst_93 = arith.constant 3.200000e+01 : f32
    %184 = vector.broadcast %cst_93 : f32 to vector<8x1xf32>
    %185 = arith.divf %183, %184 : vector<8x1xf32>
    %186 = vector.broadcast %185 : vector<8x1xf32> to vector<8x32xf32>
    %187 = arith.subf %177, %186 : vector<8x32xf32>
    %188 = arith.mulf %187, %187 : vector<8x32xf32>
    %cst_94 = arith.constant dense<0.000000e+00> : vector<8xf32>
    %189 = vector.multi_reduction <add>, %188, %cst_94 [1] : vector<8x32xf32> to vector<8xf32>
    %190 = vector.shape_cast %189 : vector<8xf32> to vector<8x1xf32>
    %cst_95 = arith.constant 3.200000e+01 : f32
    %191 = vector.broadcast %cst_95 : f32 to vector<8x1xf32>
    %192 = arith.divf %190, %191 : vector<8x1xf32>
    %193 = vector.broadcast %185 : vector<8x1xf32> to vector<8x32xf32>
    %194 = arith.subf %177, %193 : vector<8x32xf32>
    %cst_96 = arith.constant 9.99999974E-6 : f32
    %195 = vector.broadcast %cst_96 : f32 to vector<8x1xf32>
    %196 = arith.addf %192, %195 : vector<8x1xf32>
    %197 = math.rsqrt %196 : vector<8x1xf32>
    %198 = vector.broadcast %197 : vector<8x1xf32> to vector<8x32xf32>
    %199 = arith.mulf %194, %198 : vector<8x32xf32>
    %200 = vector.broadcast %179 : vector<1x32xf32> to vector<8x32xf32>
    %201 = arith.mulf %199, %200 : vector<8x32xf32>
    %202 = vector.broadcast %181 : vector<1x32xf32> to vector<8x32xf32>
    %203 = arith.addf %201, %202 : vector<8x32xf32>
    %c1_97 = arith.constant 1 : index
    %c0_98 = arith.constant 0 : index
    %c0_99 = arith.constant 0 : index
    %204 = vector.load %arg12[%c1_97, %c0_98, %c0_99] : memref<2x32x96xbf16, #tpu.memory_space<vmem>>, vector<1x32x96xbf16>
    %205 = vector.shape_cast %204 : vector<1x32x96xbf16> to vector<32x96xbf16>
    %206 = arith.truncf %203 : vector<8x32xf32> to vector<8x32xbf16>
    %cst_100 = arith.constant dense<0.000000e+00> : vector<8x96xf32>
    %207 = tpu.matmul %206, %205, %cst_100 {dimension_numbers = #tpu.dot_dimension_numbers<[1], [0], [0], [1], [0, 0, 1, 1], [], []>} : vector<8x32xbf16>, vector<32x96xbf16>, vector<8x96xf32> -> vector<8x96xf32>
    %c1_101 = arith.constant 1 : index
    %c0_102 = arith.constant 0 : index
    %c0_103 = arith.constant 0 : index
    %208 = vector.load %arg13[%c1_101, %c0_102, %c0_103] : memref<2x1x96xf32, #tpu.memory_space<vmem>>, vector<1x1x96xf32>
    %209 = vector.shape_cast %208 : vector<1x1x96xf32> to vector<1x96xf32>
    %210 = vector.broadcast %209 : vector<1x96xf32> to vector<8x96xf32>
    %211 = arith.addf %207, %210 : vector<8x96xf32>
    %212 = vector.extract_strided_slice %211 {offsets = [0, 0], sizes = [8, 32], strides = [1, 1]} : vector<8x96xf32> to vector<8x32xf32>
    %213 = vector.shape_cast %212 : vector<8x32xf32> to vector<8x4x8xf32>
    %214 = vector.extract_strided_slice %211 {offsets = [0, 32], sizes = [8, 32], strides = [1, 1]} : vector<8x96xf32> to vector<8x32xf32>
    %215 = vector.shape_cast %214 : vector<8x32xf32> to vector<8x4x8xf32>
    %216 = vector.extract_strided_slice %211 {offsets = [0, 64], sizes = [8, 32], strides = [1, 1]} : vector<8x96xf32> to vector<8x32xf32>
    %217 = vector.shape_cast %216 : vector<8x32xf32> to vector<8x4x8xf32>
    %218 = arith.truncf %213 : vector<8x4x8xf32> to vector<8x4x8xbf16>
    %219 = arith.truncf %215 : vector<8x4x8xf32> to vector<8x4x8xbf16>
    "tpu.trace_start"() <{level = 10 : i32, message = "qhd,khd->hqk"}> : () -> ()
    %cst_104 = arith.constant dense<0.000000e+00> : vector<4x8x8xf32>
    %220 = tpu.matmul %218, %219, %cst_104 {dimension_numbers = #tpu.dot_dimension_numbers<[2], [2], [0], [0], [0, 1, 0, 0, 1, 0], [1], [1]>} : vector<8x4x8xbf16>, vector<8x4x8xbf16>, vector<4x8x8xf32> -> vector<4x8x8xf32>
    "tpu.trace_stop"() : () -> ()
    %cst_105 = arith.constant 0.353553385 : f32
    %221 = vector.broadcast %cst_105 : f32 to vector<4x8x8xf32>
    %222 = arith.mulf %220, %221 : vector<4x8x8xf32>
    %223 = arith.addf %222, %8 : vector<4x8x8xf32>
    %cst_106 = arith.constant dense<0xFF800000> : vector<4x8xf32>
    %224 = vector.multi_reduction <maximumf>, %223, %cst_106 [2] : vector<4x8x8xf32> to vector<4x8xf32>
    %cst_107 = arith.constant 0xFF800000 : f32
    %225 = vector.broadcast %cst_107 : f32 to vector<4x8xf32>
    %226 = arith.maximumf %225, %224 : vector<4x8xf32>
    %227 = vector.shape_cast %226 : vector<4x8xf32> to vector<4x8x1xf32>
    %228 = vector.broadcast %227 : vector<4x8x1xf32> to vector<4x8x8xf32>
    %229 = arith.subf %223, %228 : vector<4x8x8xf32>
    %230 = math.exp %229 : vector<4x8x8xf32>
    %cst_108 = arith.constant dense<0.000000e+00> : vector<4x8xf32>
    %231 = vector.multi_reduction <add>, %230, %cst_108 [2] : vector<4x8x8xf32> to vector<4x8xf32>
    %232 = vector.shape_cast %231 : vector<4x8xf32> to vector<4x8x1xf32>
    %233 = vector.broadcast %232 : vector<4x8x1xf32> to vector<4x8x8xf32>
    %234 = arith.divf %230, %233 : vector<4x8x8xf32>
    %235 = arith.truncf %234 : vector<4x8x8xf32> to vector<4x8x8xbf16>
    %236 = arith.truncf %217 : vector<8x4x8xf32> to vector<8x4x8xbf16>
    "tpu.trace_start"() <{level = 10 : i32, message = "hqk,khd->qhd"}> : () -> ()
    %cst_109 = arith.constant dense<0.000000e+00> : vector<4x8x8xf32>
    %237 = tpu.matmul %236, %235, %cst_109 {dimension_numbers = #tpu.dot_dimension_numbers<[0], [2], [2], [1], [0, 1, 0, 2, 1, 1], [1], [0]>} : vector<8x4x8xbf16>, vector<4x8x8xbf16>, vector<4x8x8xf32> -> vector<4x8x8xf32>
    %238 = tpu.transpose %237, [2, 0, 1] : vector<4x8x8xf32> -> vector<8x4x8xf32>
    "tpu.trace_stop"() : () -> ()
    %239 = vector.shape_cast %238 : vector<8x4x8xf32> to vector<8x32xf32>
    %c1_110 = arith.constant 1 : index
    %c0_111 = arith.constant 0 : index
    %c0_112 = arith.constant 0 : index
    %240 = vector.load %arg14[%c1_110, %c0_111, %c0_112] : memref<2x32x32xbf16, #tpu.memory_space<vmem>>, vector<1x32x32xbf16>
    %241 = vector.shape_cast %240 : vector<1x32x32xbf16> to vector<32x32xbf16>
    %242 = arith.truncf %239 : vector<8x32xf32> to vector<8x32xbf16>
    %cst_113 = arith.constant dense<0.000000e+00> : vector<8x32xf32>
    %243 = tpu.matmul %242, %241, %cst_113 {dimension_numbers = #tpu.dot_dimension_numbers<[1], [0], [0], [1], [0, 0, 1, 1], [], []>} : vector<8x32xbf16>, vector<32x32xbf16>, vector<8x32xf32> -> vector<8x32xf32>
    %244 = arith.addf %177, %243 : vector<8x32xf32>
    %c1_114 = arith.constant 1 : index
    %c0_115 = arith.constant 0 : index
    %c0_116 = arith.constant 0 : index
    %245 = vector.load %arg15[%c1_114, %c0_115, %c0_116] : memref<2x1x32xf32, #tpu.memory_space<vmem>>, vector<1x1x32xf32>
    %246 = vector.shape_cast %245 : vector<1x1x32xf32> to vector<1x32xf32>
    %247 = vector.broadcast %246 : vector<1x32xf32> to vector<8x32xf32>
    %248 = arith.addf %244, %247 : vector<8x32xf32>
    %c1_117 = arith.constant 1 : index
    %c0_118 = arith.constant 0 : index
    %c0_119 = arith.constant 0 : index
    %249 = vector.load %arg16[%c1_117, %c0_118, %c0_119] : memref<2x1x32xf32, #tpu.memory_space<vmem>>, vector<1x1x32xf32>
    %250 = vector.shape_cast %249 : vector<1x1x32xf32> to vector<1x32xf32>
    %c1_120 = arith.constant 1 : index
    %c0_121 = arith.constant 0 : index
    %c0_122 = arith.constant 0 : index
    %251 = vector.load %arg17[%c1_120, %c0_121, %c0_122] : memref<2x1x32xf32, #tpu.memory_space<vmem>>, vector<1x1x32xf32>
    %252 = vector.shape_cast %251 : vector<1x1x32xf32> to vector<1x32xf32>
    %cst_123 = arith.constant dense<0.000000e+00> : vector<8xf32>
    %253 = vector.multi_reduction <add>, %248, %cst_123 [1] : vector<8x32xf32> to vector<8xf32>
    %254 = vector.shape_cast %253 : vector<8xf32> to vector<8x1xf32>
    %cst_124 = arith.constant 3.200000e+01 : f32
    %255 = vector.broadcast %cst_124 : f32 to vector<8x1xf32>
    %256 = arith.divf %254, %255 : vector<8x1xf32>
    %257 = vector.broadcast %256 : vector<8x1xf32> to vector<8x32xf32>
    %258 = arith.subf %248, %257 : vector<8x32xf32>
    %259 = arith.mulf %258, %258 : vector<8x32xf32>
    %cst_125 = arith.constant dense<0.000000e+00> : vector<8xf32>
    %260 = vector.multi_reduction <add>, %259, %cst_125 [1] : vector<8x32xf32> to vector<8xf32>
    %261 = vector.shape_cast %260 : vector<8xf32> to vector<8x1xf32>
    %cst_126 = arith.constant 3.200000e+01 : f32
    %262 = vector.broadcast %cst_126 : f32 to vector<8x1xf32>
    %263 = arith.divf %261, %262 : vector<8x1xf32>
    %264 = vector.broadcast %256 : vector<8x1xf32> to vector<8x32xf32>
    %265 = arith.subf %248, %264 : vector<8x32xf32>
    %cst_127 = arith.constant 9.99999974E-6 : f32
    %266 = vector.broadcast %cst_127 : f32 to vector<8x1xf32>
    %267 = arith.addf %263, %266 : vector<8x1xf32>
    %268 = math.rsqrt %267 : vector<8x1xf32>
    %269 = vector.broadcast %268 : vector<8x1xf32> to vector<8x32xf32>
    %270 = arith.mulf %265, %269 : vector<8x32xf32>
    %271 = vector.broadcast %250 : vector<1x32xf32> to vector<8x32xf32>
    %272 = arith.mulf %270, %271 : vector<8x32xf32>
    %273 = vector.broadcast %252 : vector<1x32xf32> to vector<8x32xf32>
    %274 = arith.addf %272, %273 : vector<8x32xf32>
    %c1_128 = arith.constant 1 : index
    %c0_129 = arith.constant 0 : index
    %c0_130 = arith.constant 0 : index
    %275 = vector.load %arg18[%c1_128, %c0_129, %c0_130] : memref<2x32x128xbf16, #tpu.memory_space<vmem>>, vector<1x32x128xbf16>
    %276 = vector.shape_cast %275 : vector<1x32x128xbf16> to vector<32x128xbf16>
    %277 = arith.truncf %274 : vector<8x32xf32> to vector<8x32xbf16>
    %cst_131 = arith.constant dense<0.000000e+00> : vector<8x128xf32>
    %278 = tpu.matmul %277, %276, %cst_131 {dimension_numbers = #tpu.dot_dimension_numbers<[1], [0], [0], [1], [0, 0, 1, 1], [], []>} : vector<8x32xbf16>, vector<32x128xbf16>, vector<8x128xf32> -> vector<8x128xf32>
    %c1_132 = arith.constant 1 : index
    %c0_133 = arith.constant 0 : index
    %c0_134 = arith.constant 0 : index
    %279 = vector.load %arg19[%c1_132, %c0_133, %c0_134] : memref<2x1x128xf32, #tpu.memory_space<vmem>>, vector<1x1x128xf32>
    %280 = vector.shape_cast %279 : vector<1x1x128xf32> to vector<1x128xf32>
    %281 = vector.broadcast %280 : vector<1x128xf32> to vector<8x128xf32>
    %282 = arith.addf %278, %281 : vector<8x128xf32>
    %283 = arith.mulf %282, %282 : vector<8x128xf32>
    %284 = arith.mulf %282, %283 : vector<8x128xf32>
    %cst_135 = arith.constant 4.471500e-02 : f32
    %285 = vector.broadcast %cst_135 : f32 to vector<8x128xf32>
    %286 = arith.mulf %285, %284 : vector<8x128xf32>
    %287 = arith.addf %282, %286 : vector<8x128xf32>
    %cst_136 = arith.constant 0.797884583 : f32
    %288 = vector.broadcast %cst_136 : f32 to vector<8x128xf32>
    %289 = arith.mulf %288, %287 : vector<8x128xf32>
    %290 = math.tanh %289 : vector<8x128xf32>
    %cst_137 = arith.constant 1.000000e+00 : f32
    %291 = vector.broadcast %cst_137 : f32 to vector<8x128xf32>
    %292 = arith.addf %291, %290 : vector<8x128xf32>
    %cst_138 = arith.constant 5.000000e-01 : f32
    %293 = vector.broadcast %cst_138 : f32 to vector<8x128xf32>
    %294 = arith.mulf %293, %292 : vector<8x128xf32>
    %295 = arith.mulf %282, %294 : vector<8x128xf32>
    %c1_139 = arith.constant 1 : index
    %c0_140 = arith.constant 0 : index
    %c0_141 = arith.constant 0 : index
    %296 = vector.load %arg20[%c1_139, %c0_140, %c0_141] : memref<2x128x32xbf16, #tpu.memory_space<vmem>>, vector<1x128x32xbf16>
    %297 = vector.shape_cast %296 : vector<1x128x32xbf16> to vector<128x32xbf16>
    %298 = arith.truncf %295 : vector<8x128xf32> to vector<8x128xbf16>
    %cst_142 = arith.constant dense<0.000000e+00> : vector<8x32xf32>
    %299 = tpu.matmul %298, %297, %cst_142 {dimension_numbers = #tpu.dot_dimension_numbers<[1], [0], [0], [1], [0, 0, 1, 1], [], []>} : vector<8x128xbf16>, vector<128x32xbf16>, vector<8x32xf32> -> vector<8x32xf32>
    %c1_143 = arith.constant 1 : index
    %c0_144 = arith.constant 0 : index
    %c0_145 = arith.constant 0 : index
    %300 = vector.load %arg21[%c1_143, %c0_144, %c0_145] : memref<2x1x32xf32, #tpu.memory_space<vmem>>, vector<1x1x32xf32>
    %301 = vector.shape_cast %300 : vector<1x1x32xf32> to vector<1x32xf32>
    %302 = vector.broadcast %301 : vector<1x32xf32> to vector<8x32xf32>
    %303 = arith.addf %299, %302 : vector<8x32xf32>
    %304 = arith.addf %248, %303 : vector<8x32xf32>
    %c0_146 = arith.constant 0 : index
    %c0_147 = arith.constant 0 : index
    %305 = vector.load %arg22[%c0_146, %c0_147] : memref<1x32xf32, #tpu.memory_space<vmem>>, vector<1x32xf32>
    %c0_148 = arith.constant 0 : index
    %c0_149 = arith.constant 0 : index
    %306 = vector.load %arg23[%c0_148, %c0_149] : memref<1x32xf32, #tpu.memory_space<vmem>>, vector<1x32xf32>
    %cst_150 = arith.constant dense<0.000000e+00> : vector<8xf32>
    %307 = vector.multi_reduction <add>, %304, %cst_150 [1] : vector<8x32xf32> to vector<8xf32>
    %308 = vector.shape_cast %307 : vector<8xf32> to vector<8x1xf32>
    %cst_151 = arith.constant 3.200000e+01 : f32
    %309 = vector.broadcast %cst_151 : f32 to vector<8x1xf32>
    %310 = arith.divf %308, %309 : vector<8x1xf32>
    %311 = vector.broadcast %310 : vector<8x1xf32> to vector<8x32xf32>
    %312 = arith.subf %304, %311 : vector<8x32xf32>
    %313 = arith.mulf %312, %312 : vector<8x32xf32>
    %cst_152 = arith.constant dense<0.000000e+00> : vector<8xf32>
    %314 = vector.multi_reduction <add>, %313, %cst_152 [1] : vector<8x32xf32> to vector<8xf32>
    %315 = vector.shape_cast %314 : vector<8xf32> to vector<8x1xf32>
    %cst_153 = arith.constant 3.200000e+01 : f32
    %316 = vector.broadcast %cst_153 : f32 to vector<8x1xf32>
    %317 = arith.divf %315, %316 : vector<8x1xf32>
    %318 = vector.broadcast %310 : vector<8x1xf32> to vector<8x32xf32>
    %319 = arith.subf %304, %318 : vector<8x32xf32>
    %cst_154 = arith.constant 9.99999974E-6 : f32
    %320 = vector.broadcast %cst_154 : f32 to vector<8x1xf32>
    %321 = arith.addf %317, %320 : vector<8x1xf32>
    %322 = math.rsqrt %321 : vector<8x1xf32>
    %323 = vector.broadcast %322 : vector<8x1xf32> to vector<8x32xf32>
    %324 = arith.mulf %319, %323 : vector<8x32xf32>
    %325 = vector.broadcast %305 : vector<1x32xf32> to vector<8x32xf32>
    %326 = arith.mulf %324, %325 : vector<8x32xf32>
    %327 = vector.broadcast %306 : vector<1x32xf32> to vector<8x32xf32>
    %328 = arith.addf %326, %327 : vector<8x32xf32>
    %329 = vector.extract_strided_slice %328 {offsets = [0, 0], sizes = [1, 32], strides = [1, 1]} : vector<8x32xf32> to vector<1x32xf32>
    %c0_155 = arith.constant 0 : index
    %c0_156 = arith.constant 0 : index
    %c0_157 = arith.constant 0 : index
    %330 = vector.load %arg31[%c0_155, %c0_156, %c0_157] : memref<1x1x32xf32, #tpu.memory_space<vmem>>, vector<1x1x32xf32>
    %331 = vector.shape_cast %330 : vector<1x1x32xf32> to vector<1x32xf32>
    %332 = vector.shape_cast %329 : vector<1x32xf32> to vector<1x1x32xf32>
    tpu.vector_store %arg31[%c0_155, %c0_156, %c0_157], %332 {strides = array<i32>} : memref<1x1x32xf32, #tpu.memory_space<vmem>>, vector<1x1x32xf32>,
    %c0_158 = arith.constant 0 : index
    %c0_159 = arith.constant 0 : index
    %333 = vector.load %arg24[%c0_158, %c0_159] : memref<32x32xbf16, #tpu.memory_space<vmem>>, vector<32x32xbf16>
    %334 = arith.truncf %328 : vector<8x32xf32> to vector<8x32xbf16>
    %cst_160 = arith.constant dense<0.000000e+00> : vector<8x32xf32>
    %335 = tpu.matmul %334, %333, %cst_160 {dimension_numbers = #tpu.dot_dimension_numbers<[1], [0], [0], [1], [0, 0, 1, 1], [], []>} : vector<8x32xbf16>, vector<32x32xbf16>, vector<8x32xf32> -> vector<8x32xf32>
    %c0_161 = arith.constant 0 : index
    %c0_162 = arith.constant 0 : index
    %336 = vector.load %arg25[%c0_161, %c0_162] : memref<1x32xf32, #tpu.memory_space<vmem>>, vector<1x32xf32>
    %337 = vector.broadcast %336 : vector<1x32xf32> to vector<8x32xf32>
    %338 = arith.addf %335, %337 : vector<8x32xf32>
    %cst_163 = arith.constant 0.000000e+00 : f32
    %339 = vector.broadcast %cst_163 : f32 to vector<8x32xf32>
    %340 = arith.cmpf oge, %338, %339 : vector<8x32xf32>
    %cst_164 = arith.constant 0.00999999977 : f32
    %341 = vector.broadcast %cst_164 : f32 to vector<8x32xf32>
    %342 = arith.mulf %341, %338 : vector<8x32xf32>
    %343 = arith.select %340, %338, %342 : vector<8x32xi1>, vector<8x32xf32>
    %c0_165 = arith.constant 0 : index
    %c0_166 = arith.constant 0 : index
    %344 = vector.load %arg26[%c0_165, %c0_166] : memref<32x32xbf16, #tpu.memory_space<vmem>>, vector<32x32xbf16>
    %345 = arith.truncf %343 : vector<8x32xf32> to vector<8x32xbf16>
    %cst_167 = arith.constant dense<0.000000e+00> : vector<8x32xf32>
    %346 = tpu.matmul %345, %344, %cst_167 {dimension_numbers = #tpu.dot_dimension_numbers<[1], [0], [0], [1], [0, 0, 1, 1], [], []>} : vector<8x32xbf16>, vector<32x32xbf16>, vector<8x32xf32> -> vector<8x32xf32>
    %c0_168 = arith.constant 0 : index
    %c0_169 = arith.constant 0 : index
    %347 = vector.load %arg27[%c0_168, %c0_169] : memref<1x32xf32, #tpu.memory_space<vmem>>, vector<1x32xf32>
    %348 = vector.broadcast %347 : vector<1x32xf32> to vector<8x32xf32>
    %349 = arith.addf %346, %348 : vector<8x32xf32>
    %cst_170 = arith.constant 0.000000e+00 : f32
    %350 = vector.broadcast %cst_170 : f32 to vector<8x32xf32>
    %351 = arith.cmpf oge, %349, %350 : vector<8x32xf32>
    %cst_171 = arith.constant 0.00999999977 : f32
    %352 = vector.broadcast %cst_171 : f32 to vector<8x32xf32>
    %353 = arith.mulf %352, %349 : vector<8x32xf32>
    %354 = arith.select %351, %349, %353 : vector<8x32xi1>, vector<8x32xf32>
    %c0_172 = arith.constant 0 : index
    %c0_173 = arith.constant 0 : index
    %355 = vector.load %arg28[%c0_172, %c0_173] : memref<1x32xbf16, #tpu.memory_space<vmem>>, vector<1x32xbf16>
    %356 = arith.truncf %354 : vector<8x32xf32> to vector<8x32xbf16>
    %cst_174 = arith.constant dense<0.000000e+00> : vector<1x8xf32>
    %357 = tpu.matmul %355, %356, %cst_174 {dimension_numbers = #tpu.dot_dimension_numbers<[1], [1], [0], [0], [0, 0, 1, 0], [], []>} : vector<1x32xbf16>, vector<8x32xbf16>, vector<1x8xf32> -> vector<1x8xf32>
    %c0_175 = arith.constant 0 : index
    %c0_176 = arith.constant 0 : index
    %358 = vector.load %arg29[%c0_175, %c0_176] : memref<1x1xf32, #tpu.memory_space<vmem>>, vector<1x1xf32>
    %359 = vector.broadcast %358 : vector<1x1xf32> to vector<1x8xf32>
    %360 = arith.addf %357, %359 : vector<1x8xf32>
    %c0_177 = arith.constant 0 : index
    %c0_178 = arith.constant 0 : index
    %c0_179 = arith.constant 0 : index
    %361 = vector.load %arg30[%c0_177, %c0_178, %c0_179] : memref<1x1x8xf32, #tpu.memory_space<vmem>>, vector<1x1x8xf32>
    %362 = vector.shape_cast %361 : vector<1x1x8xf32> to vector<1x8xf32>
    %363 = vector.shape_cast %360 : vector<1x8xf32> to vector<1x1x8xf32>
    tpu.vector_store %arg30[%c0_177, %c0_178, %c0_179], %363 {strides = array<i32>} : memref<1x1x8xf32, #tpu.memory_space<vmem>>, vector<1x1x8xf32>,
    return
  }
  func.func @transform_0(%arg0: i32) -> (i32, i32, i32) {
    %c0_i32 = arith.constant 0 : i32
    %c0_i32_0 = arith.constant 0 : i32
    %c0_i32_1 = arith.constant 0 : i32
    return %arg0, %c0_i32, %c0_i32_0 : i32, i32, i32
  }
  func.func @transform_1(%arg0: i32) -> (i32, i32, i32) {
    %c0_i32 = arith.constant 0 : i32
    %c0_i32_0 = arith.constant 0 : i32
    %c0_i32_1 = arith.constant 0 : i32
    return %arg0, %c0_i32, %c0_i32_0 : i32, i32, i32
  }
  func.func @transform_2(%arg0: i32) -> (i32, i32, i32) {
    %c0_i32 = arith.constant 0 : i32
    %c0_i32_0 = arith.constant 0 : i32
    %c0_i32_1 = arith.constant 0 : i32
    return %arg0, %c0_i32, %c0_i32_0 : i32, i32, i32
  }
  func.func @transform_3(%arg0: i32) -> (i32, i32) {
    %c0_i32 = arith.constant 0 : i32
    %c0_i32_0 = arith.constant 0 : i32
    %c0_i32_1 = arith.constant 0 : i32
    return %c0_i32, %c0_i32_0 : i32, i32
  }
  func.func @transform_4(%arg0: i32) -> (i32, i32) {
    %c0_i32 = arith.constant 0 : i32
    %c0_i32_0 = arith.constant 0 : i32
    %c0_i32_1 = arith.constant 0 : i32
    return %c0_i32, %c0_i32_0 : i32, i32
  }
  func.func @transform_5(%arg0: i32) -> (i32, i32) {
    %c0_i32 = arith.constant 0 : i32
    %c0_i32_0 = arith.constant 0 : i32
    %c0_i32_1 = arith.constant 0 : i32
    return %c0_i32, %c0_i32_0 : i32, i32
  }
  func.func @transform_6(%arg0: i32) -> (i32, i32) {
    %c0_i32 = arith.constant 0 : i32
    %c0_i32_0 = arith.constant 0 : i32
    %c0_i32_1 = arith.constant 0 : i32
    return %c0_i32, %c0_i32_0 : i32, i32
  }
  func.func @transform_7(%arg0: i32) -> (i32, i32) {
    %c0_i32 = arith.constant 0 : i32
    %c0_i32_0 = arith.constant 0 : i32
    %c0_i32_1 = arith.constant 0 : i32
    return %c0_i32, %c0_i32_0 : i32, i32
  }
  func.func @transform_8(%arg0: i32) -> (i32, i32) {
    %c0_i32 = arith.constant 0 : i32
    %c0_i32_0 = arith.constant 0 : i32
    %c0_i32_1 = arith.constant 0 : i32
    return %c0_i32, %c0_i32_0 : i32, i32
  }
  func.func @transform_9(%arg0: i32) -> (i32, i32, i32) {
    %c0_i32 = arith.constant 0 : i32
    %c0_i32_0 = arith.constant 0 : i32
    %c0_i32_1 = arith.constant 0 : i32
    %c0_i32_2 = arith.constant 0 : i32
    return %c0_i32, %c0_i32_0, %c0_i32_1 : i32, i32, i32
  }
  func.func @transform_10(%arg0: i32) -> (i32, i32, i32) {
    %c0_i32 = arith.constant 0 : i32
    %c0_i32_0 = arith.constant 0 : i32
    %c0_i32_1 = arith.constant 0 : i32
    %c0_i32_2 = arith.constant 0 : i32
    return %c0_i32, %c0_i32_0, %c0_i32_1 : i32, i32, i32
  }
  func.func @transform_11(%arg0: i32) -> (i32, i32, i32) {
    %c0_i32 = arith.constant 0 : i32
    %c0_i32_0 = arith.constant 0 : i32
    %c0_i32_1 = arith.constant 0 : i32
    %c0_i32_2 = arith.constant 0 : i32
    return %c0_i32, %c0_i32_0, %c0_i32_1 : i32, i32, i32
  }
  func.func @transform_12(%arg0: i32) -> (i32, i32, i32) {
    %c0_i32 = arith.constant 0 : i32
    %c0_i32_0 = arith.constant 0 : i32
    %c0_i32_1 = arith.constant 0 : i32
    %c0_i32_2 = arith.constant 0 : i32
    return %c0_i32, %c0_i32_0, %c0_i32_1 : i32, i32, i32
  }
  func.func @transform_13(%arg0: i32) -> (i32, i32, i32) {
    %c0_i32 = arith.constant 0 : i32
    %c0_i32_0 = arith.constant 0 : i32
    %c0_i32_1 = arith.constant 0 : i32
    %c0_i32_2 = arith.constant 0 : i32
    return %c0_i32, %c0_i32_0, %c0_i32_1 : i32, i32, i32
  }
  func.func @transform_14(%arg0: i32) -> (i32, i32, i32) {
    %c0_i32 = arith.constant 0 : i32
    %c0_i32_0 = arith.constant 0 : i32
    %c0_i32_1 = arith.constant 0 : i32
    %c0_i32_2 = arith.constant 0 : i32
    return %c0_i32, %c0_i32_0, %c0_i32_1 : i32, i32, i32
  }
  func.func @transform_15(%arg0: i32) -> (i32, i32, i32) {
    %c0_i32 = arith.constant 0 : i32
    %c0_i32_0 = arith.constant 0 : i32
    %c0_i32_1 = arith.constant 0 : i32
    %c0_i32_2 = arith.constant 0 : i32
    return %c0_i32, %c0_i32_0, %c0_i32_1 : i32, i32, i32
  }
  func.func @transform_16(%arg0: i32) -> (i32, i32, i32) {
    %c0_i32 = arith.constant 0 : i32
    %c0_i32_0 = arith.constant 0 : i32
    %c0_i32_1 = arith.constant 0 : i32
    %c0_i32_2 = arith.constant 0 : i32
    return %c0_i32, %c0_i32_0, %c0_i32_1 : i32, i32, i32
  }
  func.func @transform_17(%arg0: i32) -> (i32, i32, i32) {
    %c0_i32 = arith.constant 0 : i32
    %c0_i32_0 = arith.constant 0 : i32
    %c0_i32_1 = arith.constant 0 : i32
    %c0_i32_2 = arith.constant 0 : i32
    return %c0_i32, %c0_i32_0, %c0_i32_1 : i32, i32, i32
  }
  func.func @transform_18(%arg0: i32) -> (i32, i32, i32) {
    %c0_i32 = arith.constant 0 : i32
    %c0_i32_0 = arith.constant 0 : i32
    %c0_i32_1 = arith.constant 0 : i32
    %c0_i32_2 = arith.constant 0 : i32
    return %c0_i32, %c0_i32_0, %c0_i32_1 : i32, i32, i32
  }
  func.func @transform_19(%arg0: i32) -> (i32, i32, i32) {
    %c0_i32 = arith.constant 0 : i32
    %c0_i32_0 = arith.constant 0 : i32
    %c0_i32_1 = arith.constant 0 : i32
    %c0_i32_2 = arith.constant 0 : i32
    return %c0_i32, %c0_i32_0, %c0_i32_1 : i32, i32, i32
  }
  func.func @transform_20(%arg0: i32) -> (i32, i32, i32) {
    %c0_i32 = arith.constant 0 : i32
    %c0_i32_0 = arith.constant 0 : i32
    %c0_i32_1 = arith.constant 0 : i32
    %c0_i32_2 = arith.constant 0 : i32
    return %c0_i32, %c0_i32_0, %c0_i32_1 : i32, i32, i32
  }
  func.func @transform_21(%arg0: i32) -> (i32, i32) {
    %c0_i32 = arith.constant 0 : i32
    %c0_i32_0 = arith.constant 0 : i32
    %c0_i32_1 = arith.constant 0 : i32
    return %c0_i32, %c0_i32_0 : i32, i32
  }
  func.func @transform_22(%arg0: i32) -> (i32, i32) {
    %c0_i32 = arith.constant 0 : i32
    %c0_i32_0 = arith.constant 0 : i32
    %c0_i32_1 = arith.constant 0 : i32
    return %c0_i32, %c0_i32_0 : i32, i32
  }
  func.func @transform_23(%arg0: i32) -> (i32, i32) {
    %c0_i32 = arith.constant 0 : i32
    %c0_i32_0 = arith.constant 0 : i32
    %c0_i32_1 = arith.constant 0 : i32
    return %c0_i32, %c0_i32_0 : i32, i32
  }
  func.func @transform_24(%arg0: i32) -> (i32, i32) {
    %c0_i32 = arith.constant 0 : i32
    %c0_i32_0 = arith.constant 0 : i32
    %c0_i32_1 = arith.constant 0 : i32
    return %c0_i32, %c0_i32_0 : i32, i32
  }
  func.func @transform_25(%arg0: i32) -> (i32, i32) {
    %c0_i32 = arith.constant 0 : i32
    %c0_i32_0 = arith.constant 0 : i32
    %c0_i32_1 = arith.constant 0 : i32
    return %c0_i32, %c0_i32_0 : i32, i32
  }
  func.func @transform_26(%arg0: i32) -> (i32, i32) {
    %c0_i32 = arith.constant 0 : i32
    %c0_i32_0 = arith.constant 0 : i32
    %c0_i32_1 = arith.constant 0 : i32
    return %c0_i32, %c0_i32_0 : i32, i32
  }
  func.func @transform_27(%arg0: i32) -> (i32, i32) {
    %c0_i32 = arith.constant 0 : i32
    %c0_i32_0 = arith.constant 0 : i32
    %c0_i32_1 = arith.constant 0 : i32
    return %c0_i32, %c0_i32_0 : i32, i32
  }
  func.func @transform_28(%arg0: i32) -> (i32, i32) {
    %c0_i32 = arith.constant 0 : i32
    %c0_i32_0 = arith.constant 0 : i32
    %c0_i32_1 = arith.constant 0 : i32
    return %c0_i32, %c0_i32_0 : i32, i32
  }
  func.func @transform_29(%arg0: i32) -> (i32, i32, i32) {
    %c0_i32 = arith.constant 0 : i32
    %c0_i32_0 = arith.constant 0 : i32
    %c0_i32_1 = arith.constant 0 : i32
    return %arg0, %c0_i32, %c0_i32_0 : i32, i32, i32
  }
  func.func @transform_30(%arg0: i32) -> (i32, i32, i32) {
    %c0_i32 = arith.constant 0 : i32
    %c0_i32_0 = arith.constant 0 : i32
    %c0_i32_1 = arith.constant 0 : i32
    return %arg0, %c0_i32, %c0_i32_0 : i32, i32, i32
  }
}

</mosaic_0001>

<bundles_post_ra>
// kernel: scgpt_perceptual_forward.1
= control target key start
LH: loop header
LB: loop body
LE: loop exit
PB: predicated region body
PF: predicated region fallthrough
CT: control target
= control target key end

     0   :  { %s6708_s6 = smov 1   ;;  %s6709_s10 = smov 2   ;;  %s7643_s0 = inlined_call_operand.smem [shape: u32[31], index: -1, kind: input, shape index: {}] }
   0x1   :  { %s6761_s5 = sld [smem:[%s7643_s0]]   ;;  %s6710_s14 = smov 3  }
   0x2   :  { %s6766_s9 = sld [smem:[%s7643_s0 + %s6708_s6]]   ;;  %s6711_s18 = smov 4  }
   0x3   :  { %s6771_s13 = sld [smem:[%s7643_s0 + %s6709_s10]]   ;;  %s6712_s22 = smov 5  }
   0x4   :  { %s6776_s17 = sld [smem:[%s7643_s0 + %s6710_s14]]   ;;  %s6713_s26 = smov 6  }
   0x5   :  { %s6781_s21 = sld [smem:[%s7643_s0 + %s6711_s18]]   ;;  %s6714_s30 = smov 7  }
   0x6   :  { %s6786_s25 = sld [smem:[%s7643_s0 + %s6712_s22]]   ;;  %s6715_s4 = smov 8  }
   0x7   :  { %7672 = sst [smem:[#allocation9_spill]] %s6761_s5  ;;  %s6716_s10 = smov 9  }
   0x8   :  { %7673 = sst [smem:[#allocation10_spill]] %s6766_s9  ;;  %s6717_s15 = smov 10  }
   0x9   :  { %7674 = sst [smem:[#allocation11_spill]] %s6771_s13  ;;  %s6718_s20 = smov 11  }
   0xa   :  { %7675 = sst [smem:[#allocation12_spill]] %s6776_s17  ;;  %s6720_s1 = smov 13  }
   0xb   :  { %s6791_s29 = sld [smem:[%s7643_s0 + %s6713_s26]]   ;;  %s6719_s26 = smov 12  }
   0xc   :  { %s6796_s3 = sld [smem:[%s7643_s0 + %s6714_s30]]   ;;  %s6721_s7 = smov 14  }
   0xd   :  { %s6801_s8 = sld [smem:[%s7643_s0 + %s6715_s4]]   ;;  %s6723_s22 = smov 16  }
   0xe   :  { %s6806_s14 = sld [smem:[%s7643_s0 + %s6716_s10]]   ;;  %s6724_s28 = smov 17  }
   0xf   :  { %s6811_s19 = sld [smem:[%s7643_s0 + %s6717_s15]]   ;;  %s6722_s15 = smov 15  }
  0x10   :  { %s6816_s24 = sld [smem:[%s7643_s0 + %s6718_s20]]   ;;  %s6737_s10 = smov 30  }
  0x11   :  { %s6821_s30 = sld [smem:[%s7643_s0 + %s6719_s26]]  }
  0x12   :  { %7676 = sst [smem:[#allocation13_spill]] %s6796_s3 }
  0x13   :  { %7677 = sst [smem:[#allocation14_spill]] %s6801_s8 }
  0x14   :  { %7678 = sst [smem:[#allocation15_spill]] %s6806_s14 }
  0x15   :  { %s6826_s6 = sld [smem:[%s7643_s0 + %s6720_s1]]   ;;  %s6736_s1 = smov 29  }
  0x16   :  { %s6831_s12 = sld [smem:[%s7643_s0 + %s6721_s7]]   ;;  %s6725_s7 = smov 18  }
  0x17   :  { %s6836_s20 = sld [smem:[%s7643_s0 + %s6722_s15]]   ;;  %s6726_s15 = smov 19  }
  0x18   :  { %s6841_s27 = sld [smem:[%s7643_s0 + %s6723_s22]]   ;;  %s6727_s22 = smov 20  }
  0x19   :  { %s6846_s4 = sld [smem:[%s7643_s0 + %s6724_s28]]   ;;  %s6728_s28 = smov 21  }
  0x1b   :  { %7679 = sst [smem:[#allocation16_spill]] %s6826_s6 }
  0x1c   :  { %7680 = sst [smem:[#allocation17_spill]] %s6831_s12 }
  0x1d   :  { %7681 = sst [smem:[#allocation18_spill]] %s6836_s20 }
  0x1e   :  { %7682 = sst [smem:[#allocation19_spill]] %s6841_s27 }
  0x1f   :  { %7683 = sst [smem:[#allocation20_spill]] %s6846_s4 }
  0x20   :  { %s6851_s12 = sld [smem:[%s7643_s0 + %s6725_s7]]   ;;  %s6729_s7 = smov 22  }
  0x21   :  { %s6856_s20 = sld [smem:[%s7643_s0 + %s6726_s15]]   ;;  %s6730_s15 = smov 23  }
  0x22   :  { %s6861_s27 = sld [smem:[%s7643_s0 + %s6727_s22]]   ;;  %s6731_s22 = smov 24  }
  0x23   :  { %s6866_s4 = sld [smem:[%s7643_s0 + %s6728_s28]]   ;;  %s6732_s28 = smov 25  }
  0x26   :  { %7684 = sst [smem:[#allocation21_spill]] %s6851_s12 }
  0x27   :  { %7685 = sst [smem:[#allocation22_spill]] %s6856_s20 }
  0x28   :  { %7686 = sst [smem:[#allocation23_spill]] %s6861_s27 }
  0x29   :  { %7687 = sst [smem:[#allocation24_spill]] %s6866_s4 }
  0x2a   :  { %s6871_s12 = sld [smem:[%s7643_s0 + %s6729_s7]]   ;;  %s6733_s7 = smov 26  }
  0x2b   :  { %s6876_s20 = sld [smem:[%s7643_s0 + %s6730_s15]]   ;;  %s6734_s15 = smov 27  }
  0x2c   :  { %s6881_s27 = sld [smem:[%s7643_s0 + %s6731_s22]]   ;;  %s6735_s22 = smov 28  }
  0x2d   :  { %s6886_s4 = sld [smem:[%s7643_s0 + %s6732_s28]]  }
  0x30   :  { %7688 = sst [smem:[#allocation25_spill]] %s6871_s12 }
  0x31   :  { %7689 = sst [smem:[#allocation26_spill]] %s6876_s20 }
  0x32   :  { %7690 = sst [smem:[#allocation27_spill]] %s6881_s27 }
  0x33   :  { %7691 = sst [smem:[#allocation28_spill]] %s6886_s4 }
  0x34   :  { %s6891_s12 = sld [smem:[%s7643_s0 + %s6733_s7]]  }
  0x35   :  { %s6896_s20 = sld [smem:[%s7643_s0 + %s6734_s15]]  }
  0x36   :  { %s6000_s27 = sld [smem:[%s7643_s0 + %s6735_s22]]  }
  0x37   :  { %s6904_s4 = sld [smem:[%s7643_s0 + %s6736_s1]]  }
  0x3a   :  { %7692 = sst [smem:[#allocation29_spill]] %s6891_s12 }
  0x3b   :  { %s6909_s12 = sld [smem:[%s7643_s0 + %s6737_s10]]  }
  0x3c   :  { %v67_v0 = vstv %s6000_s27 }
  0x3d   :  { %68 = vst [vmem:[#allocation2] sm:$0x1] %v67_v0 }
  0x3e   :  { %69 = vsyncpa [#allocation4], 0 }
  0x3f   :  { %71 = vsyncpa [#allocation4 + $0x1], 0 }
  0x40   :  { %72 = vsyncpa [#allocation6], 0 }
  0x41   :  { %74 = vsyncpa [#allocation6 + $0x1], 0  ;;  %s6911_s15 = smov 0   ;;  %s6913_s16 = smov 0  }
  0x42   :  { %s6915_s18 = smov 0   ;;  %s6917_s22 = smov 0  }
  0x43 LB: > { %s7693_s6 = sld [smem:[#allocation16_spill]]  ;;  %s7694_s14 = sld [smem:[#allocation15_spill]]  ;;  %s6702_s18 = sphi %s6915_s18, %s7726_s18   ;;  %s6698_s16 = sphi %s6913_s16, %s7725_s16   ;;  %s6694_s15 = sphi %s6911_s15, %s7724_s15   ;;  %s6706_s22 = sphi %s6917_s22, %s7727_s22  }
  0x44   : > { %s7695_s3 = sld [smem:[#allocation13_spill]]  ;;  %s6932_s0 = sadd.s32 4294967295, %s6706_s22  }
  0x45   : > { %s6004_s27 = sadd.s32 4294967294, %s6706_s22   ;;  %s6936_s23 = sadd.s32 1, %s6706_s22  }
  0x46   : > { %s711_s26 = sadd.s32 1, %s6702_s18  ;;  %s708_s1 = ssub.s32 %s6706_s22, %s6936_s23 }
  0x47   : > { %p721_p0 = scmp.ne.s32.totalorder %s6702_s18, %s6698_s16  ;;  %p709_p1 = scmp.eq.s32.totalorder %s708_s1, 0 }
  0x48   : > { %p722_p2 = scmp.eq.s32.totalorder %s6932_s0, 1  ;;  %p727_p3 = scmp.ne.s32.totalorder %s6698_s16, %s6694_s15 }
  0x49   : > { %p728_p4 = scmp.eq.s32.totalorder %s6004_s27, 1  ;;  %p6007_p7 = scmp.ge.s32.totalorder %s6706_s22, 1 }
  0x4a   : > { %s6947_s28 = scalar_select %p709_p1, %s6702_s18, %s711_s26  }
  0x4b   : > { %p6949_p5 = por %p722_p2, %p721_p0  ;;  %p6953_p6 = por %p728_p4, %p727_p3 }
  0x4c   : > { %p870_p8 = scmp.lt.s32.totalorder %s6706_s22, 3 }
  0x4e   : > { %p871_p9 = pnand %p6007_p7, %p870_p8 }
  0x4f   : > { %s7698_s9 = sld [smem:[#allocation10_spill]] (!%p871_p9)  ;;  %p957_p10 = scmp.lt.s32.totalorder (!%p871_p9), %s6932_s0, 1  ;;  %v6738_v1 = vmov (!%p871_p9), 0   ;;  %v6529_v4 = vld [vmem:[%s7695_s3] sm:$0xff] (!%p871_p9)   ;;  %v6739_v5 = vmov (!%p871_p9), 0.0   ;;  %v6530_v6 = vld [vmem:[%s7695_s3 + $0x8] sm:$0xff] (!%p871_p9)  }
  0x50   : > { %874 = sbr.rel (%p871_p9) target bundleno = 7953 (0x1f11), region = 136  ;;  %6528 = vset.pattern.permute.xlu0 (!%p871_p9), %v6738_v1  ;;  %s7699_s5 = sld [smem:[#allocation9_spill]] (!%p871_p9)  ;;  %6227 = vmatprep.subr.bf16.mxu0 (!%p871_p9), %v6739_v5  ;;  %vm6740_vm0 = vmmov (!%p871_p9), 0   ;;  %vm980_vm1 = vcmask (!%p871_p9), 261120   ;;  %v6013_v9 = vld [vmem:[%s6786_s25] ss:$0 sm:$0xff] (!%p871_p9) }
  0x51   : > { %6228 = vmatpush3.bf16.msra.mxu0 (!%p871_p9), %v6529_v4  ;;  %6235 = vmatprep.subr.bf16.mxu1 (!%p871_p9), %v6739_v5  ;;  %v6014_v10 = vld [vmem:[%s6791_s29] ss:$0 sm:$0xff] (!%p871_p9)  ;;  %s7700_s17 = sld [smem:[#allocation12_spill]] (!%p871_p9)  ;;  %s7701_s8 = sld [smem:[#allocation14_spill]] (!%p871_p9)  ;;  %v6532_v44 = vld [vmem:[%s6816_s24 + $0x8] sm:$0xff] (!%p871_p9)   ;;  %vm1935_vm2 = vcmask (!%p871_p9), 1043456  }
  0x52   : > { %6229 = vmatprep.subr.bf16.mxu0 (!%p871_p9), %v6739_v5  ;;  %6231 = vmatprep.mubr.msk.bf16.mxu0 (!%p871_p9), %vm6740_vm0, %v6739_v5  ;;  %v6012_v28 = vld [vmem:[%s6781_s21] ss:$0 sm:$0xff] (!%p871_p9)  ;;  %s7653_s1 = smov (!%p871_p9), 96   ;;  %v6745_v0 = vmov (!%p871_p9), 1983009808   ;;  %vm1931_vm3 = vcmask (!%p871_p9), 64512  }
  0x53   : > { %6239 = vmatprep.mubr.msk.bf16.mxu1 (!%p871_p9), %vm6740_vm0, %v6739_v5  ;;  %v6531_v43 = vld [vmem:[%s6816_s24] sm:$0xff] (!%p871_p9)   ;;  %s7702_s13 = sld [smem:[#allocation11_spill]] (!%p871_p9)  ;;  %vm3060_vm4 = vcmask (!%p871_p9), 130048   ;;  %vm3062_vm5 = vcmask (!%p871_p9), 195584   ;;  %s7707_s3 = sld [smem:[#allocation22_spill]] (!%p871_p9)  ;;  %vm5638_vm6 = vcmask (!%p871_p9), 253952  }
  0x54   : > { %6236 = vmatpush3.bf16.msra.mxu1 (!%p871_p9), %v6531_v43  ;;  %v6019_v49 = vld [vmem:[%s7694_s14] ss:$0 sm:$0xff] (!%p871_p9) }
  0x55   : > { %6230 = vmatpush3.bf16.msra.mxu0 (!%p871_p9), %v6530_v6  ;;  %6237 = vmatprep.subr.bf16.mxu1 (!%p871_p9), %v6739_v5  ;;  %v6020_v51 = vld [vmem:[%s6811_s19] ss:$0 sm:$0xff] (!%p871_p9) }
  0x56   : > { %6243 = vmatprep.subr.bf16.mxu0 (!%p871_p9), %v6739_v5  ;;  %v6021_v55 = vld [vmem:[%s6821_s30] ss:$0 sm:$0xff] (!%p871_p9) }
  0x57   : > { %s6962_s7 = scalar_select %p957_p10, %s6932_s0, 1  ;;  %v6011_v26 = vld [vmem:[%s7700_s17] ss:$0 sm:$0xff] }
  0x58   : > { %v6018_v31 = vld [vmem:[%s7701_s8] ss:$0 sm:$0xff]  ;;  %6238 = vmatpush3.bf16.msra.mxu1 %v6532_v44  ;;  %s7709_s8 = sld [smem:[#allocation23_spill]]  ;;  %s7713_s17 = smov 96  }
  0x59   : > { %s6008_s11 = sshll.u32 %s6962_s7, 3  ;;  %6249 = vmatprep.subr.bf16.mxu1 %v6739_v5 }
  0x5a   : > { %s964_s27 = scalar_lea.vmem %s7698_s9, %s6008_s11  ;;  %s960_s26 = scalar_lea.vmem %s7699_s5, %s6008_s11 }
  0x5b   : > { %v970_v2 = vld [vmem:[%s964_s27] sm:$0xff]  ;;  %s7658_s11 = smov 120   ;;  %s7659_s27 = smov 112  }
  0x5c   : > { %v1009_v3 = vmin.f32 %v970_v2, 512.0  ;;  %v969_v7 = vld [vmem:[%s960_s26] sm:$0xff]  ;;  %s7655_s26 = smov 104   ;;  %v1210_v2 = vunpack.c.l.s4 %v6745_v0  ;;  %s7708_s5 = sld [smem:[#allocation21_spill]] }
  0x5d   : > { %v981_v8 = vsel %vm980_vm1, %v969_v7, 0.0  ;;  %s7710_s9 = smov 112  }
  0x5e   : > { %1013 = vperm.xlu0 %6528, %v1009_v3   ;;  %v1212_v3 = vlaneseq  ;;  %v1211_v6 = vunpack.c.0.s8 %v1210_v2 }
  0x7d   : > { %982 = vadd.xlane.f32.xlu0 %v981_v8 }
  0xdd   : > { %v1014_v11 = vpop.permute.xlu0 %1013 }
  0xde   : > { %v1022_v12 = vmul.f32 %v6013_v9, %v1014_v11  ;;  %v6746_v9 = vmov 1934713408  }
  0xe0   : > { %v1030_v13 = vadd.f32 %v6014_v10, %v1022_v12  ;;  %v1242_v10 = vunpack.c.l.s4 %v6746_v9 }
  0xe2   : > { %v1031_v14 = vmax.f32 %v1030_v13, 0.0 }
  0xe4   : > { %v1036_v15 = vpack.c.bf16 %v1031_v14, %v1031_v14 }
  0xe6   : > { %6232 = vmatmul.mubr.msk.bf16.vlgmr.msra.gmra.mrb[0].mxu0 %vm980_vm1, %v1036_v15  ;;  %v1243_v15 = vunpack.c.0.s8 %v1242_v10 }
  0xe7   : > { %6245 = vmatprep.mubr.msk.bf16.mxu0 %vm6740_vm0, %v6739_v5 }
 0x10a   : > { %v983_v16 = vpop.xlane.xlu0 %982 }
 0x10b   : > { %v985_v17 = vmul.f32 0.03125, %v983_v16 }
 0x10d   : > { %v986_v18 = vsub.f32 %v969_v7, %v985_v17  ;;  %v7025_v7 = vshrl.u32 %v1212_v3, 7 }
 0x10f   : > { %v987_v19 = vmul.f32 %v986_v18, %v986_v18  ;;  %v7028_v13 = vsub.s32 %v1211_v6, %v7025_v7 }
 0x111   : > { %v988_v20 = vsel %vm980_vm1, %v987_v19, 0.0 }
 0x112   : > { %989 = vadd.xlane.f32.xlu1 %v988_v20 }
 0x19f   : > { %v990_v21 = vpop.xlane.xlu1 %989 }
 0x1a0   : > { %v991_v22 = vmul.f32 0.03125, %v990_v21 }
 0x1a2   : > { %v992_v23 = vadd.f32 1e-05, %v991_v22  ;;  %v7034_v22 = vsub.s32 %v1243_v15, %v7025_v7 }
 0x1a4   : > { %6563 = vrsqrt.f32 %v992_v23 }
 0x1ae   : > { %v6564_v24 = vpop.eup %6563 }
 0x1af   : > { %v994_v25 = vmul.f32 %v6564_v24, %v986_v18 }
 0x1b1   : > { %v1001_v27 = vmul.f32 %v6011_v26, %v994_v25 }
 0x1b3   : > { %v1008_v29 = vadd.f32 %v6012_v28, %v1001_v27 }
 0x1b9   : > { %v1086_v30 = vpop.f32.mrb[0].mxu0 }
 0x1ba   : > { %v1092_v32 = vadd.f32 %v1086_v30, %v1008_v29  ;;  %v6233_v33 = vpop.f32.mrb[1].mxu0 }
 0x1bb   : > { %v1089_v34 = vpop.f32.mrb[2].mxu0 }
 0x1bc   : > { %v6987_v35 = vadd.f32 %v6018_v31, %v1092_v32  ;;  %v6234_v36 = vpop.f32.mrb[3].mxu0 }
 0x1be   : > { %v1103_v37 = vsel %vm980_vm1, %v6987_v35, 0.0 }
 0x1bf   : > { %1104 = vadd.xlane.f32.xlu1 %v1103_v37 }
 0x24c   : > { %v1105_v38 = vpop.xlane.xlu1 %1104 }
 0x24d   : > { %v1106_v39 = vmul.f32 0.03125, %v1105_v38 }
 0x24f   : > { %v1107_v40 = vsub.f32 %v6987_v35, %v1106_v39 }
 0x251   : > { %v1108_v41 = vmul.f32 %v1107_v40, %v1107_v40 }
 0x253   : > { %v1109_v42 = vsel %vm980_vm1, %v1108_v41, 0.0 }
 0x254   : > { %1110 = vadd.xlane.f32.xlu1 %v1109_v42 }
 0x2e1   : > { %v1111_v45 = vpop.xlane.xlu1 %1110 }
 0x2e2   : > { %v1112_v46 = vmul.f32 0.03125, %v1111_v45 }
 0x2e4   : > { %v1113_v47 = vadd.f32 1e-05, %v1112_v46 }
 0x2e6   : > { %6565 = vrsqrt.f32 %v1113_v47 }
 0x2f0   : > { %v6566_v48 = vpop.eup %6565 }
 0x2f1   : > { %v1115_v50 = vmul.f32 %v6566_v48, %v1107_v40 }
 0x2f3   : > { %v1122_v52 = vmul.f32 %v6019_v49, %v1115_v50 }
 0x2f5   : > { %v1129_v53 = vadd.f32 %v6020_v51, %v1122_v52 }
 0x2f7   : > { %v1134_v54 = vpack.c.bf16 %v1129_v53, %v1129_v53 }
 0x2f9   : > { %6240 = vmatmul.mubr.msk.bf16.vlgmr.msra.gmra.mrb[0].mxu1 %vm980_vm1, %v1134_v54 }
 0x2fa   : > { %6251 = vmatprep.mubr.msk.bf16.mxu1 %vm6740_vm0, %v6739_v5 }
 0x3cc   : > { %v1191_v56 = vpop.f32.mrb[0].mxu1 }
 0x3cd   : > { %v7003_v57 = vadd.f32 %v6021_v55, %v1191_v56  ;;  %v6241_v58 = vpop.f32.mrb[1].mxu1 }
 0x3ce   : > { %v1194_v59 = vpop.f32.mrb[2].mxu1 }
 0x3cf   : > { %1275 = vrot.lane.b32.xlu0 %v7003_v57, %s7653_s1  ;;  %1198 = vrot.lane.b32.xlu1 %v7003_v57, %s7658_s11  ;;  %v6242_v60 = vpop.f32.mrb[3].mxu1  ;;  %s7703_s11 = sld [smem:[#allocation17_spill]] }
 0x3d3   : > { %1201 = vrot.lane.b32.xlu1 %v7003_v57, %s7659_s27  ;;  %s7661_s27 = smov 24  }
 0x3d7   : > { %1204 = vrot.lane.b32.xlu1 %v7003_v57, %s7655_s26  ;;  %s7121_s26 = scalar_lea.vmem %s7702_s13, %s6962_s7  ;;  %s7662_s7 = smov 16  }
 0x3d8   : > { %s7711_s13 = smov 120  }
 0x441   : > { %v7013_v61 = vpop.permute.xlu1 %1198  ;;  %v1276_v11 = vpop.permute.xlu0 %1275 }
 0x442   : > { %1277 = vrot.lane.b32.xlu1 %v7013_v61, %s7653_s1 }
 0x445   : > { %v7017_v62 = vpop.permute.xlu1 %1201 }
 0x446   : > { %1279 = vrot.lane.b32.xlu1 %v7017_v62, %s7653_s1 }
 0x449   : > { %v7021_v63 = vpop.permute.xlu1 %1204 }
 0x44a   : > { %1281 = vrot.lane.b32.xlu1 %v7021_v63, %s7653_s1  ;;  %s7656_s1 = smov 64  }
 0x4b4   : > { %v1278_v4 = vpop.permute.xlu1 %1277 }
 0x4b8   : > { %v1280_v8 = vpop.permute.xlu1 %1279 }
 0x4b9   : > { %v1287_v12 = vcombine.low %v1276_v11, %v1280_v8  ;;  %v1288_v16 = vcombine.high %v1276_v11, %v1280_v8 }
 0x4bb   : > { %v1295_v19 = vrot.slane %v1287_v12, %v7028_v13  ;;  %v1302_v23 = vrot.slane %v1288_v16, %v7028_v13 }
 0x4bc   : > { %v1282_v14 = vpop.permute.xlu1 %1281 }
 0x4bd   : > { %v1303_v17 = vcombine.low %v1278_v4, %v1282_v14  ;;  %v1304_v18 = vcombine.high %v1278_v4, %v1282_v14 }
 0x4bf   : > { %v1311_v20 = vrot.slane %v1303_v17, %v7028_v13  ;;  %v1318_v21 = vrot.slane %v1304_v18, %v7028_v13 }
 0x4c1   : > { %v1319_v24 = vcombine.low %v1295_v19, %v1311_v20  ;;  %v1320_v25 = vcombine.high %v1295_v19, %v1311_v20  ;;  %v1335_v28 = vcombine.low %v1302_v23, %v1318_v21  ;;  %v1336_v34 = vcombine.high %v1302_v23, %v1318_v21 }
 0x4c3   : > { %v1327_v26 = vrot.slane %v1319_v24, %v7034_v22  ;;  %v1334_v27 = vrot.slane %v1320_v25, %v7034_v22  ;;  %v1343_v33 = vrot.slane %v1335_v28, %v7034_v22  ;;  %v1350_v39 = vrot.slane %v1336_v34, %v7034_v22 }
 0x4c4   : > { %v1223_v34 = vcombine.low %v7013_v61, %v7021_v63 }
 0x4c5   : > { %v1443_v29 = vpack.c.bf16 %v1327_v26, %v1327_v26  ;;  %v1351_v30 = vcombine.high %v1327_v26, %v6739_v5  ;;  %v1352_v32 = vcombine.high %v1334_v27, %v6739_v5  ;;  %v1445_v36 = vpack.c.bf16 %v1334_v27, %v1334_v27 }
 0x4c6   : > { %v1353_v38 = vcombine.high %v1343_v33, %v6739_v5  ;;  %v1447_v40 = vpack.c.bf16 %v1343_v33, %v1343_v33  ;;  %v1354_v42 = vcombine.high %v1350_v39, %v6739_v5  ;;  %v1449_v43 = vpack.c.bf16 %v1350_v39, %v1350_v39 }
 0x4c7   : > { %1513 = vxpose.xlu1.c.b16.start.end [1/1] (short) (narrow) %v1443_v29, 16  ;;  %v1444_v31 = vpack.c.bf16 %v1351_v30, %v1351_v30  ;;  %v1446_v37 = vpack.c.bf16 %v1352_v32, %v1352_v32  ;;  %v1231_v39 = vrot.slane %v1223_v34, %v7028_v13 }
 0x4c8   : > { %v1448_v41 = vpack.c.bf16 %v1353_v38, %v1353_v38  ;;  %v1450_v44 = vpack.c.bf16 %v1354_v42, %v1354_v42  ;;  %v1208_v38 = vcombine.high %v7003_v57, %v7017_v62 }
 0x4c9   : > { %1529 = vxpose.xlu0.c.b16.start.end [1/1] (short) (narrow) %v1444_v31, 16 }
 0x4ca   : > { %v1222_v42 = vrot.slane %v1208_v38, %v7028_v13 }
 0x4cb   : > { %1545 = vxpose.xlu1.c.b16.start.end [1/1] (short) (narrow) %v1445_v36, 16  ;;  %v1224_v36 = vcombine.high %v7013_v61, %v7021_v63 }
 0x4cd   : > { %1561 = vxpose.xlu0.c.b16.start.end [1/1] (short) (narrow) %v1446_v37, 16  ;;  %v1207_v37 = vcombine.low %v7003_v57, %v7017_v62 }
 0x4cf   : > { %1577 = vxpose.xlu1.c.b16.start.end [1/1] (short) (narrow) %v1447_v40, 16  ;;  %v1238_v40 = vrot.slane %v1224_v36, %v7028_v13 }
 0x4d1   : > { %1593 = vxpose.xlu0.c.b16.start.end [1/1] (short) (narrow) %v1448_v41, 16  ;;  %v1215_v41 = vrot.slane %v1207_v37, %v7028_v13 }
 0x4d3   : > { %1609 = vxpose.xlu1.c.b16.start.end [1/1] (short) (narrow) %v1449_v43, 16  ;;  %v1239_v43 = vcombine.low %v1215_v41, %v1231_v39 }
 0x4d5   : > { %1625 = vxpose.xlu0.c.b16.start.end [1/1] (short) (narrow) %v1450_v44, 16  ;;  %v1240_v44 = vcombine.high %v1215_v41, %v1231_v39 }
 0x52d   : > { %v1521_v45 = vpop.trf.xlu1 }
 0x52f   : > { %v1537_v46 = vpop.trf.xlu0 }
 0x531   : > { %v1553_v47 = vpop.trf.xlu1 }
 0x533   : > { %v1569_v48 = vpop.trf.xlu0 }
 0x535   : > { %v1585_v49 = vpop.trf.xlu1 }
 0x536   : > { %v1641_v51 = vcombine.low %v1521_v45, %v1585_v49  ;;  %v1255_v45 = vcombine.low %v1222_v42, %v1238_v40 }
 0x537   : > { %v1601_v50 = vpop.trf.xlu0 }
 0x538   : > { %v1675_v53 = vcombine.low %v1537_v46, %v1601_v50  ;;  %v1648_v56 = vrot.slane %v1641_v51, %v7028_v13  ;;  %v1256_v46 = vcombine.high %v1222_v42, %v1238_v40 }
 0x539   : > { %v1617_v52 = vpop.trf.xlu1 }
 0x53a   : > { %v1649_v54 = vcombine.low %v1553_v47, %v1617_v52  ;;  %v1682_v60 = vrot.slane %v1675_v53, %v7028_v13  ;;  %v1254_v47 = vrot.slane %v1240_v44, %v7034_v22 }
 0x53b   : > { %v1633_v55 = vpop.trf.xlu0 }
 0x53c   : > { %v1656_v58 = vrot.slane %v1649_v54, %v7028_v13  ;;  %v1683_v59 = vcombine.low %v1569_v48, %v1633_v55  ;;  %v1263_v48 = vrot.slane %v1255_v45, %v7034_v22  ;;  %v1272_v51 = vcombine.high %v1254_v47, %v6739_v5 }
 0x53e   : > { %v1657_v0 = vcombine.low %v1648_v56, %v1656_v58  ;;  %v1690_v2 = vrot.slane %v1683_v59, %v7028_v13  ;;  %v1658_v3 = vcombine.high %v1648_v56, %v1656_v58  ;;  %v1273_v52 = vcombine.high %v1263_v48, %v6739_v5 }
 0x540   : > { %v1691_v4 = vcombine.low %v1682_v60, %v1690_v2  ;;  %v1692_v6 = vcombine.high %v1682_v60, %v1690_v2  ;;  %v1665_v8 = vrot.slane %v1657_v0, %v7034_v22  ;;  %v1672_v15 = vrot.slane %v1658_v3, %v7034_v22 }
 0x542   : > { %v1699_v9 = vrot.slane %v1691_v4, %v7034_v22  ;;  %v1706_v10 = vrot.slane %v1692_v6, %v7034_v22  ;;  %v1713_v12 = vshrl.u32 %v1665_v8, 16  ;;  %v1729_v20 = vshrl.u32 %v1672_v15, 16 }
 0x543   : > { %v1673_v21 = vcombine.high %v1665_v8, %v6738_v1  ;;  %v1674_v28 = vcombine.high %v1672_v15, %v6738_v1 }
 0x544   : > { %v1711_v11 = vpack.i.b16 %v1699_v9, %v1665_v8  ;;  %v1714_v14 = vshrl.u32 %v1699_v9, 16  ;;  %v1730_v17 = vshrl.u32 %v1706_v10, 16  ;;  %v1707_v18 = vcombine.high %v1699_v9, %v6738_v1 }
 0x545   : > { %v1727_v19 = vpack.i.b16 %v1706_v10, %v1672_v15  ;;  %v1708_v25 = vcombine.high %v1706_v10, %v6738_v1  ;;  %v1721_v27 = vshrl.u32 %v1673_v21, 16  ;;  %v1737_v32 = vshrl.u32 %v1674_v28, 16 }
 0x546   : > { %1741 = vxpose.xlu1.c.b16.start.end [1/1] (short) (narrow) %v1711_v11, 16  ;;  %v1715_v16 = vpack.i.b16 %v1714_v14, %v1713_v12  ;;  %v1731_v23 = vpack.i.b16 %v1730_v17, %v1729_v20  ;;  %v1722_v24 = vshrl.u32 %v1707_v18, 16  ;;  %v1719_v26 = vpack.i.b16 %v1707_v18, %v1673_v21 }
 0x547   : > { %v1738_v30 = vshrl.u32 %v1708_v25, 16  ;;  %v1735_v31 = vpack.i.b16 %v1708_v25, %v1674_v28 }
 0x548   : > { %1757 = vxpose.xlu0.c.b16.start.end [1/1] (short) (narrow) %v1715_v16, 16  ;;  %v1723_v29 = vpack.i.b16 %v1722_v24, %v1721_v27 }
 0x549   : > { %v1739_v33 = vpack.i.b16 %v1738_v30, %v1737_v32 }
 0x54a   : > { %1805 = vxpose.xlu1.c.b16.start.end [1/1] (short) (narrow) %v1727_v19, 16 }
 0x54c   : > { %1821 = vxpose.xlu0.c.b16.start.end [1/1] (short) (narrow) %v1731_v23, 16 }
 0x54e   : > { %1773 = vxpose.xlu1.c.b16.start.end [1/1] (short) (narrow) %v1719_v26, 16 }
 0x550   : > { %1789 = vxpose.xlu0.c.b16.start.end [1/1] (short) (narrow) %v1723_v29, 16 }
 0x552   : > { %1837 = vxpose.xlu1.c.b16.start.end [1/1] (short) (narrow) %v1735_v31, 16 }
 0x554   : > { %1853 = vxpose.xlu0.c.b16.start.end [1/1] (short) (narrow) %v1739_v33, 16 }
 0x556   : > { %1355 = vrot.lane.b32.xlu1 %v7003_v57, %s7656_s1  ;;  %v1270_v57 = vrot.slane %v1256_v46, %v7034_v22 }
 0x558   : > { %v1274_v53 = vcombine.high %v1270_v57, %v6739_v5  ;;  %v6026_v0 = vpack.c.bf16 %v1270_v57, %v1254_v47 }
 0x55a   : > { %1359 = vrot.lane.b32.xlu1 %v7017_v62, %s7656_s1  ;;  %v6028_v58 = vpack.c.bf16 %v1274_v53, %v1272_v51  ;;  %v1466_v12 = vrot.slane %v6026_v0, %v7028_v13  ;;  %v7124_v51 = vld [vmem:[%s7121_s26] ss:$0 sm:$0xff] }
 0x55c   : > { %v1491_v8 = vrot.slane %v6028_v58, %v7028_v13 }
 0x55d   : > { %1357 = vrot.lane.b32.xlu0 %v7013_v61, %s7656_s1  ;;  %v1247_v61 = vrot.slane %v1239_v43, %v7034_v22 }
 0x55f   : > { %v1271_v50 = vcombine.high %v1247_v61, %v6739_v5  ;;  %v6025_v60 = vpack.c.bf16 %v1263_v48, %v1247_v61 }
 0x561   : > { %v6027_v56 = vpack.c.bf16 %v1273_v52, %v1271_v50  ;;  %v1458_v11 = vrot.slane %v6025_v60, %v7028_v13 }
 0x563   : > { %v1483_v6 = vrot.slane %v6027_v56, %v7028_v13  ;;  %v1467_v23 = vcombine.low %v1458_v11, %v1466_v12 }
 0x565   : > { %v1492_v18 = vcombine.low %v1483_v6, %v1491_v8  ;;  %v1474_v29 = vrot.slane %v1467_v23, %v7034_v22 }
 0x567   : > { %v1499_v26 = vrot.slane %v1492_v18, %v7034_v22  ;;  %v1504_v43 = vshrl.u32 %v1474_v29, 16  ;;  %v1475_v48 = vcombine.high %v1474_v29, %v6738_v1 }
 0x569   : > { %v1505_v34 = vshrl.u32 %v1499_v26, 16  ;;  %v1503_v42 = vpack.i.b16 %v1499_v26, %v1474_v29  ;;  %v1500_v61 = vcombine.high %v1499_v26, %v6738_v1 }
 0x56b   : > { %v1506_v46 = vpack.i.b16 %v1505_v34, %v1504_v43  ;;  %v1511_v57 = vshrl.u32 %v1500_v61, 16 }
 0x5ac   : > { %v1749_v62 = vpop.trf.xlu1 }
 0x5ae   : > { %v1765_v49 = vpop.trf.xlu0 }
 0x5b0   : > { %v1813_v54 = vpop.trf.xlu1 }
 0x5b1   : > { %v1869_v3 = vcombine.low %v1749_v62, %v1813_v54  ;;  %v1509_v62 = vpack.i.b16 %v1500_v61, %v1475_v48 }
 0x5b2   : > { %v1829_v55 = vpop.trf.xlu0 }
 0x5b3   : > { %v1894_v9 = vcombine.low %v1765_v49, %v1829_v55  ;;  %v1876_v15 = vrot.slane %v1869_v3, %v7028_v13  ;;  %v1510_v49 = vshrl.u32 %v1475_v48, 16 }
 0x5b4   : > { %v1781_v59 = vpop.trf.xlu1 }
 0x5b5   : > { %v1901_v19 = vrot.slane %v1894_v9, %v7028_v13  ;;  %v1512_v50 = vpack.i.b16 %v1511_v57, %v1510_v49 }
 0x5b6   : > { %v1797_v2 = vpop.trf.xlu0 }
 0x5b8   : > { %v1845_v4 = vpop.trf.xlu1 }
 0x5b9   : > { %v1877_v10 = vcombine.low %v1781_v59, %v1845_v4 }
 0x5ba   : > { %v1861_v14 = vpop.trf.xlu0 }
 0x5bb   : > { %v1884_v16 = vrot.slane %v1877_v10, %v7028_v13  ;;  %v1902_v17 = vcombine.low %v1797_v2, %v1861_v14 }
 0x5bd   : > { %v1885_v20 = vcombine.low %v1876_v15, %v1884_v16  ;;  %v1909_v21 = vrot.slane %v1902_v17, %v7028_v13 }
 0x5bf   : > { %v1892_v24 = vrot.slane %v1885_v20, %v7034_v22  ;;  %v1910_v25 = vcombine.low %v1901_v19, %v1909_v21 }
 0x5c1   : > { %v1917_v27 = vrot.slane %v1910_v25, %v7034_v22  ;;  %v1893_v28 = vcombine.high %v1892_v24, %v6738_v1  ;;  %v1922_v31 = vshrl.u32 %v1892_v24, 16 }
 0x5c3   : > { %v1921_v30 = vpack.i.b16 %v1917_v27, %v1892_v24  ;;  %v1923_v32 = vshrl.u32 %v1917_v27, 16  ;;  %v1918_v33 = vcombine.high %v1917_v27, %v6738_v1  ;;  %v1928_v36 = vshrl.u32 %v1893_v28, 16 }
 0x5c5   : > { %v1937_v37 = vsel %vm1935_vm2, %v1921_v30, 0  ;;  %v1924_v38 = vpack.i.b16 %v1923_v32, %v1922_v31  ;;  %v1927_v39 = vpack.i.b16 %v1918_v33, %v1893_v28  ;;  %v1929_v40 = vshrl.u32 %v1918_v33, 16 }
 0x5c6   : > { %6244 = vmatpush3.bf16.msra.mxu0 %v1937_v37 }
 0x5c7   : > { %v1983_v41 = vsel %vm1935_vm2, %v1924_v38, 0  ;;  %6255 = vmatprep.subr.bf16.mxu0 %v6739_v5  ;;  %v1930_v44 = vpack.i.b16 %v1929_v40, %v1928_v36  ;;  %v2029_v45 = vsel %vm1935_vm2, %v1927_v39, 0 }
 0x5c8   : > { %6250 = vmatpush3.bf16.msra.mxu1 %v1983_v41  ;;  %v1356_v18 = vpop.permute.xlu1 %1355 }
 0x5c9   : > { %6246 = vmatmul.mubr.msk.bf16.vlgmr.msra.gmra.mrb[4].mxu0 %vm1931_vm3, %v1503_v42  ;;  %6261 = vmatprep.subr.bf16.mxu1 %v6739_v5  ;;  %v2075_v47 = vsel %vm1935_vm2, %v1930_v44, 0 }
 0x5ca   : > { %6256 = vmatpush3.bf16.msra.mxu0 %v2029_v45  ;;  %6257 = vmatprep.mubr.msk.bf16.mxu0 %vm6740_vm0, %v6739_v5 }
 0x5cb   : > { %6252 = vmatmul.mubr.msk.bf16.vlgmr.msra.gmra.mrb[4].mxu1 %vm1931_vm3, %v1506_v46  ;;  %6267 = vmatprep.subr.bf16.mxu0 %v6739_v5 }
 0x5cc   : > { %6262 = vmatpush3.bf16.msra.mxu1 %v2075_v47  ;;  %6263 = vmatprep.mubr.msk.bf16.mxu1 %vm6740_vm0, %v6739_v5  ;;  %v1360_v19 = vpop.permute.xlu1 %1359 }
 0x5cd   : > { %6273 = vmatprep.subr.bf16.mxu1 %v6739_v5  ;;  %v1367_v21 = vcombine.low %v1356_v18, %v1360_v19  ;;  %v1368_v25 = vcombine.high %v1356_v18, %v1360_v19 }
 0x5cf   : > { %v1358_v23 = vpop.permute.xlu0 %1357  ;;  %v1382_v30 = vrot.slane %v1368_v25, %v7028_v13 }
 0x5d1   : > { %6258 = vmatmul.mubr.msk.bf16.vlgmr.msra.gmra.mrb[8].mxu0 %vm1931_vm3, %v1509_v62 }
 0x5d2   : > { %6269 = vmatprep.mubr.msk.bf16.mxu0 %vm6740_vm0, %v6739_v5 }
 0x5d3   : > { %6264 = vmatmul.mubr.msk.bf16.vlgmr.msra.gmra.mrb[8].mxu1 %vm1931_vm3, %v1512_v50 }
 0x5d4   : > { %6275 = vmatprep.mubr.msk.bf16.mxu1 %vm6740_vm0, %v6739_v5 }
 0x69c   : > { %v1973_v52 = vpop.f32.mrb[4].mxu0 }
 0x69d   : > { %v2117_v53 = vmul.f32 0.35355338, %v1973_v52  ;;  %v6247_v54 = vpop.f32.mrb[5].mxu0 }
 0x69e   : > { %v1976_v55 = vpop.f32.mrb[6].mxu0  ;;  %v2019_v56 = vpop.f32.mrb[4].mxu1 }
 0x69f   : > { %v6248_v58 = vpop.f32.mrb[7].mxu0  ;;  %v6253_v59 = vpop.f32.mrb[5].mxu1  ;;  %v7127_v60 = vadd.f32 %v7124_v51, %v2117_v53  ;;  %v2118_v40 = vmul.f32 0.35355338, %v2019_v56 }
 0x6a0   : > { %v2022_v0 = vpop.f32.mrb[6].mxu1 }
 0x6a1   : > { %v6254_v2 = vpop.f32.mrb[7].mxu1  ;;  %v2125_v3 = vsel %vm1931_vm3, %v7127_v60, -inf  ;;  %v7149_v44 = vadd.f32 %v7124_v51, %v2118_v40 }
 0x6a2   : > { %2126 = vmax.xlane.f32.xlu1 %v2125_v3 }
 0x6a3   : > { %v2128_v45 = vsel %vm1931_vm3, %v7149_v44, -inf }
 0x6a4   : > { %v2065_v4 = vpop.f32.mrb[8].mxu0 }
 0x6a5   : > { %v6259_v6 = vpop.f32.mrb[9].mxu0  ;;  %v2119_v15 = vmul.f32 0.35355338, %v2065_v4 }
 0x6a6   : > { %v2068_v8 = vpop.f32.mrb[10].mxu0  ;;  %v2111_v9 = vpop.f32.mrb[8].mxu1 }
 0x6a7   : > { %v6260_v10 = vpop.f32.mrb[11].mxu0  ;;  %v6265_v11 = vpop.f32.mrb[9].mxu1  ;;  %v7134_v16 = vadd.f32 %v7124_v51, %v2119_v15  ;;  %v2120_v48 = vmul.f32 0.35355338, %v2111_v9 }
 0x6a8   : > { %v2114_v12 = vpop.f32.mrb[10].mxu1 }
 0x6a9   : > { %v6266_v14 = vpop.f32.mrb[11].mxu1  ;;  %v2131_v17 = vsel %vm1931_vm3, %v7134_v16, -inf  ;;  %v7155_v57 = vadd.f32 %v7124_v51, %v2120_v48 }
 0x6ab   : > { %v2134_v62 = vsel %vm1931_vm3, %v7155_v57, -inf }
 0x6b3   : > { %1361 = vrot.lane.b32.xlu1 %v7021_v63, %s7656_s1  ;;  %v1375_v63 = vrot.slane %v1367_v21, %v7028_v13  ;;  %s7660_s1 = smov 8  }
 0x6d7   : > { %2132 = vmax.xlane.f32.xlu1 %v2131_v17 }
 0x72f   : > { %v7138_v20 = vpop.xlane.xlu1 %2126 }
 0x733   : > { %v1362_v24 = vpop.permute.xlu1 %1361 }
 0x734   : > { %v1383_v26 = vcombine.low %v1358_v23, %v1362_v24  ;;  %v1384_v27 = vcombine.high %v1358_v23, %v1362_v24 }
 0x736   : > { %v1391_v28 = vrot.slane %v1383_v26, %v7028_v13  ;;  %v1398_v29 = vrot.slane %v1384_v27, %v7028_v13 }
 0x738   : > { %v1399_v31 = vcombine.low %v1375_v63, %v1391_v28  ;;  %v1415_v33 = vcombine.low %v1382_v30, %v1398_v29  ;;  %v1416_v39 = vcombine.high %v1382_v30, %v1398_v29  ;;  %v1400_v46 = vcombine.high %v1375_v63, %v1391_v28 }
 0x73a   : > { %v1407_v32 = vrot.slane %v1399_v31, %v7034_v22  ;;  %v1423_v38 = vrot.slane %v1415_v33, %v7034_v22  ;;  %v1430_v42 = vrot.slane %v1416_v39, %v7034_v22  ;;  %v1414_v61 = vrot.slane %v1400_v46, %v7034_v22 }
 0x73c   : > { %v2173_v34 = vpack.c.bf16 %v1407_v32, %v1407_v32  ;;  %v1431_v36 = vcombine.high %v1407_v32, %v6739_v5  ;;  %v2177_v41 = vpack.c.bf16 %v1423_v38, %v1423_v38  ;;  %v2179_v43 = vpack.c.bf16 %v1430_v42, %v1430_v42 }
 0x73d   : > { %v2175_v47 = vpack.c.bf16 %v1414_v61, %v1414_v61  ;;  %v1432_v49 = vcombine.high %v1414_v61, %v6739_v5  ;;  %v1433_v52 = vcombine.high %v1423_v38, %v6739_v5  ;;  %v1434_v54 = vcombine.high %v1430_v42, %v6739_v5 }
 0x73e   : > { %2181 = vxpose.xlu0.c.b16.start.end [1/1] (short) (narrow) %v2173_v34, 16  ;;  %v2174_v37 = vpack.c.bf16 %v1431_v36, %v1431_v36  ;;  %v2137_v32 = vsub.f32 %v7127_v60, %v7138_v20 }
 0x73f   : > { %v2176_v50 = vpack.c.bf16 %v1432_v49, %v1432_v49  ;;  %v2178_v53 = vpack.c.bf16 %v1433_v52, %v1433_v52  ;;  %v2180_v55 = vpack.c.bf16 %v1434_v54, %v1434_v54 }
 0x740   : > { %2197 = vxpose.xlu1.c.b16.start.end [1/1] (short) (narrow) %v2174_v37, 16 }
 0x744   : > { %2245 = vxpose.xlu1.c.b16.start.end [1/1] (short) (narrow) %v2177_v41, 16  ;;  %v2141_v41 = vmul.f32 1.442695, %v2137_v32 }
 0x746   : > { %6567 = vpow2.f32 %v2141_v41 }
 0x748   : > { %2277 = vxpose.xlu1.c.b16.start.end [1/1] (short) (narrow) %v2179_v43, 16 }
 0x74b   : > { %2129 = vmax.xlane.f32.xlu0 %v2128_v45 }
 0x764   : > { %v2133_v56 = vpop.xlane.xlu1 %2132 }
 0x765   : > { %v2139_v42 = vsub.f32 %v7134_v16, %v2133_v56 }
 0x778   : > { %2213 = vxpose.xlu0.c.b16.start.end [1/1] (short) (narrow) %v2175_v47, 16  ;;  %v2145_v47 = vmul.f32 1.442695, %v2139_v42 }
 0x785   : > { %2135 = vmax.xlane.f32.xlu0 %v2134_v62  ;;  %v6568_v62 = vpop.eup %6567 }
 0x786   : > { %v2149_v49 = vsel %vm1931_vm3, %v6568_v62, 0.0 }
 0x7a4   : > { %v2189_v58 = vpop.trf.xlu0 }
 0x7a6   : > { %v2205_v51 = vpop.trf.xlu1 }
 0x7aa   : > { %v2253_v0 = vpop.trf.xlu1 }
 0x7ab   : > { %v2309_v6 = vcombine.low %v2189_v58, %v2253_v0 }
 0x7ad   : > { %v2316_v10 = vrot.slane %v2309_v6, %v7028_v13 }
 0x7ae   : > { %v2285_v4 = vpop.trf.xlu1 }
 0x7b2   : > { %2229 = vxpose.xlu0.c.b16.start.end [1/1] (short) (narrow) %v2176_v50, 16 }
 0x7b6   : > { %2261 = vxpose.xlu0.c.b16.start.end [1/1] (short) (narrow) %v2178_v53, 16 }
 0x7ba   : > { %2293 = vxpose.xlu0.c.b16.start.end [1/1] (short) (narrow) %v2180_v55, 16 }
 0x7d8   : > { %v2130_v59 = vpop.xlane.xlu0 %2129 }
 0x7d9   : > { %v2138_v37 = vsub.f32 %v7149_v44, %v2130_v59 }
 0x7db   : > { %v2143_v46 = vmul.f32 1.442695, %v2138_v37 }
 0x7dd   : > { %6569 = vpow2.f32 %v2143_v46 }
 0x7de   : > { %v2221_v2 = vpop.trf.xlu0  ;;  %6571 = vpow2.f32 %v2145_v47 }
 0x7df   : > { %v2317_v8 = vcombine.low %v2221_v2, %v2285_v4 }
 0x7e1   : > { %v2324_v11 = vrot.slane %v2317_v8, %v7028_v13 }
 0x7e3   : > { %v2325_v15 = vcombine.low %v2316_v10, %v2324_v11  ;;  %v2326_v27 = vcombine.high %v2316_v10, %v2324_v11 }
 0x7e5   : > { %v2333_v23 = vrot.slane %v2325_v15, %v7034_v22  ;;  %v2340_v40 = vrot.slane %v2326_v27, %v7034_v22 }
 0x7e7   : > { %v2381_v63 = vshrl.u32 %v2333_v23, 16  ;;  %v2341_v30 = vcombine.high %v2333_v23, %v6738_v1  ;;  %v2397_v61 = vshrl.u32 %v2340_v40, 16  ;;  %v6570_v16 = vpop.eup %6569  ;;  %v2342_v56 = vcombine.high %v2340_v40, %v6738_v1 }
 0x7e8   : > { %v6572_v50 = vpop.eup %6571 }
 0x7e9   : > { %v2389_v39 = vshrl.u32 %v2341_v30, 16  ;;  %v2155_v53 = vsel %vm1931_vm3, %v6572_v50, 0.0  ;;  %v2405_v59 = vshrl.u32 %v2342_v56, 16 }
 0x812   : > { %v2136_v3 = vpop.xlane.xlu0 %2135 }
 0x813   : > { %v2140_v60 = vsub.f32 %v7155_v57, %v2136_v3  ;;  %v2152_v57 = vsel %vm1931_vm3, %v6570_v16, 0.0 }
 0x815   : > { %v2147_v48 = vmul.f32 1.442695, %v2140_v60 }
 0x817   : > { %6573 = vpow2.f32 %v2147_v48 }
 0x818   : > { %v2237_v9 = vpop.trf.xlu0 }
 0x81c   : > { %v2269_v12 = vpop.trf.xlu0 }
 0x81d   : > { %v2343_v14 = vcombine.low %v2205_v51, %v2269_v12 }
 0x81f   : > { %v2350_v19 = vrot.slane %v2343_v14, %v7028_v13 }
 0x820   : > { %v2301_v17 = vpop.trf.xlu0 }
 0x821   : > { %v2351_v18 = vcombine.low %v2237_v9, %v2301_v17  ;;  %v6574_v52 = vpop.eup %6573 }
 0x822   : > { %v2158_v54 = vsel %vm1931_vm3, %v6574_v52, 0.0 }
 0x823   : > { %v2358_v21 = vrot.slane %v2351_v18, %v7028_v13 }
 0x825   : > { %v2359_v24 = vcombine.low %v2350_v19, %v2358_v21  ;;  %v2360_v25 = vcombine.high %v2350_v19, %v2358_v21 }
 0x827   : > { %v2367_v26 = vrot.slane %v2359_v24, %v7034_v22  ;;  %v2374_v36 = vrot.slane %v2360_v25, %v7034_v22 }
 0x829   : > { %v2379_v28 = vpack.i.b16 %v2367_v26, %v2333_v23  ;;  %v2382_v29 = vshrl.u32 %v2367_v26, 16  ;;  %v2375_v31 = vcombine.high %v2367_v26, %v6738_v1  ;;  %v2398_v45 = vshrl.u32 %v2374_v36, 16 }
 0x82a   : > { %v2395_v20 = vpack.i.b16 %v2374_v36, %v2340_v40  ;;  %v2376_v55 = vcombine.high %v2374_v36, %v6738_v1 }
 0x82b   : > { %2409 = vxpose.xlu1.c.b16.start.end [1/1] (short) (narrow) %v2379_v28, 16  ;;  %v2383_v33 = vpack.i.b16 %v2382_v29, %v2381_v63  ;;  %v2390_v34 = vshrl.u32 %v2375_v31, 16  ;;  %v2387_v38 = vpack.i.b16 %v2375_v31, %v2341_v30  ;;  %v2399_v44 = vpack.i.b16 %v2398_v45, %v2397_v61 }
 0x82c   : > { %v2406_v58 = vshrl.u32 %v2376_v55, 16  ;;  %v2403_v51 = vpack.i.b16 %v2376_v55, %v2342_v56 }
 0x82d   : > { %2425 = vxpose.xlu0.c.b16.start.end [1/1] (short) (narrow) %v2383_v33, 16  ;;  %v2391_v43 = vpack.i.b16 %v2390_v34, %v2389_v39 }
 0x82e   : > { %v2407_v0 = vpack.i.b16 %v2406_v58, %v2405_v59 }
 0x82f   : > { %2441 = vxpose.xlu1.c.b16.start.end [1/1] (short) (narrow) %v2387_v38, 16 }
 0x831   : > { %2457 = vxpose.xlu0.c.b16.start.end [1/1] (short) (narrow) %v2391_v43, 16 }
 0x833   : > { %2473 = vxpose.xlu1.c.b16.start.end [1/1] (short) (narrow) %v2395_v20, 16 }
 0x835   : > { %2489 = vxpose.xlu0.c.b16.start.end [1/1] (short) (narrow) %v2399_v44, 16 }
 0x840   : > { %2150 = vadd.xlane.f32.xlu1 %v2149_v49 }
 0x842   : > { %2153 = vadd.xlane.f32.xlu0 %v2152_v57 }
 0x844   : > { %2156 = vadd.xlane.f32.xlu1 %v2155_v53 }
 0x846   : > { %2159 = vadd.xlane.f32.xlu0 %v2158_v54 }
 0x871   : > { %2505 = vxpose.xlu1.c.b16.start.end [1/1] (short) (narrow) %v2403_v51, 16 }
 0x873   : > { %2521 = vxpose.xlu0.c.b16.start.end [1/1] (short) (narrow) %v2407_v0, 16 }
 0x891   : > { %v2417_v2 = vpop.trf.xlu1 }
 0x893   : > { %v2433_v3 = vpop.trf.xlu0 }
 0x895   : > { %v2449_v4 = vpop.trf.xlu1 }
 0x897   : > { %v2465_v6 = vpop.trf.xlu0 }
 0x899   : > { %v2481_v8 = vpop.trf.xlu1 }
 0x89a   : > { %v2537_v15 = vcombine.low %v2417_v2, %v2481_v8 }
 0x89b   : > { %v2497_v9 = vpop.trf.xlu0 }
 0x89c   : > { %v2562_v19 = vcombine.low %v2433_v3, %v2497_v9  ;;  %v2544_v26 = vrot.slane %v2537_v15, %v7028_v13 }
 0x89e   : > { %v2569_v31 = vrot.slane %v2562_v19, %v7028_v13 }
 0x8cd   : > { %v2151_v10 = vpop.xlane.xlu1 %2150 }
 0x8ce   : > { %6575 = vrcp.f32 %v2151_v10 }
 0x8cf   : > { %v2154_v11 = vpop.xlane.xlu0 %2153 }
 0x8d0   : > { %6577 = vrcp.f32 %v2154_v11 }
 0x8d1   : > { %v2157_v12 = vpop.xlane.xlu1 %2156 }
 0x8d2   : > { %6579 = vrcp.f32 %v2157_v12 }
 0x8d3   : > { %v2160_v14 = vpop.xlane.xlu0 %2159 }
 0x8d4   : > { %6581 = vrcp.f32 %v2160_v14 }
 0x8d7   : > { %v2513_v17 = vpop.trf.xlu1 }
 0x8d8   : > { %v6576_v18 = vpop.eup %6575  ;;  %v2545_v21 = vcombine.low %v2449_v4, %v2513_v17 }
 0x8d9   : > { %v2529_v23 = vpop.trf.xlu0  ;;  %v2162_v24 = vmul.f32 %v6576_v18, %v6568_v62 }
 0x8da   : > { %v6578_v25 = vpop.eup %6577  ;;  %v2552_v27 = vrot.slane %v2545_v21, %v7028_v13  ;;  %v2570_v63 = vcombine.low %v2465_v6, %v2529_v23 }
 0x8db   : > { %v2169_v28 = vpack.c.bf16 %v2162_v24, %v2162_v24  ;;  %v2164_v29 = vmul.f32 %v6578_v25, %v6570_v16 }
 0x8dc   : > { %v6580_v30 = vpop.eup %6579  ;;  %v2553_v32 = vcombine.low %v2544_v26, %v2552_v27  ;;  %v2577_v33 = vrot.slane %v2570_v63, %v7028_v13 }
 0x8dd   : > { %v2603_v34 = vsel %vm1931_vm3, %v2169_v28, 0  ;;  %v2170_v36 = vpack.c.bf16 %v2164_v29, %v2164_v29  ;;  %v2166_v37 = vmul.f32 %v6580_v30, %v6572_v50 }
 0x8de   : > { %v6582_v38 = vpop.eup %6581  ;;  %v2560_v39 = vrot.slane %v2553_v32, %v7034_v22  ;;  %v2578_v40 = vcombine.low %v2569_v31, %v2577_v33  ;;  %6268 = vmatpush3.bf16.xpose.msra.mxu0 %v2603_v34  ;;  %v6533_v31 = vld [vmem:[%s7693_s6] sm:$0xff]  }
 0x8df   : > { %v2649_v41 = vsel %vm1931_vm3, %v2170_v36, 0  ;;  %6279 = vmatprep.subr.bf16.mxu0 %v6739_v5  ;;  %v2168_v42 = vmul.f32 %v6582_v38, %v6574_v52  ;;  %v2171_v45 = vpack.c.bf16 %v2166_v37, %v2166_v37 }
 0x8e0   : > { %v2585_v43 = vrot.slane %v2578_v40, %v7034_v22  ;;  %6274 = vmatpush3.bf16.xpose.msra.mxu1 %v2649_v41  ;;  %v2590_v46 = vshrl.u32 %v2560_v39, 16  ;;  %v2561_v62 = vcombine.high %v2560_v39, %v6738_v1  ;;  %v6534_v41 = vld [vmem:[%s7693_s6 + $0x8] sm:$0xff]  }
 0x8e1   : > { %6285 = vmatprep.subr.bf16.mxu1 %v6739_v5  ;;  %v2172_v61 = vpack.c.bf16 %v2168_v42, %v2168_v42  ;;  %v2695_v48 = vsel %vm1931_vm3, %v2171_v45, 0 }
 0x8e2   : > { %v2589_v60 = vpack.i.b16 %v2585_v43, %v2560_v39  ;;  %v2591_v20 = vshrl.u32 %v2585_v43, 16  ;;  %v2586_v44 = vcombine.high %v2585_v43, %v6738_v1  ;;  %v2596_v50 = vshrl.u32 %v2561_v62, 16 }
 0x8e3   : > { %v2741_v16 = vsel %vm1931_vm3, %v2172_v61, 0 }
 0x8e4   : > { %v2592_v47 = vpack.i.b16 %v2591_v20, %v2590_v46  ;;  %v2597_v49 = vshrl.u32 %v2586_v44, 16  ;;  %v2595_v57 = vpack.i.b16 %v2586_v44, %v2561_v62 }
 0x8e5   : > { %6270 = vmatmul.mubr.msk.bf16.vlgmr.msra.gmra.mrb[12].mxu0 %vm1931_vm3, %v2589_v60 }
 0x8e6   : > { %6280 = vmatpush3.bf16.xpose.msra.mxu0 %v2695_v48  ;;  %6281 = vmatprep.mubr.msk.bf16.mxu0 %vm6740_vm0, %v6739_v5  ;;  %v2598_v52 = vpack.i.b16 %v2597_v49, %v2596_v50 }
 0x8e7   : > { %6276 = vmatmul.mubr.msk.bf16.vlgmr.msra.gmra.mrb[12].mxu1 %vm1931_vm3, %v2592_v47  ;;  %6291 = vmatprep.subr.bf16.mxu0 %v6739_v5 }
 0x8e8   : > { %6286 = vmatpush3.bf16.xpose.msra.mxu1 %v2741_v16  ;;  %6287 = vmatprep.mubr.msk.bf16.mxu1 %vm6740_vm0, %v6739_v5 }
 0x8e9   : > { %6299 = vmatprep.subr.bf16.mxu1 %v6739_v5 }
 0x8ed   : > { %6282 = vmatmul.mubr.msk.bf16.vlgmr.msra.gmra.mrb[16].mxu0 %vm1931_vm3, %v2595_v57 }
 0x8ee   : > { %6295 = vmatprep.mubr.msk.bf16.mxu0 %vm6740_vm0, %v6739_v5  ;;  %6292 = vmatpush3.bf16.msra.mxu0 %v6533_v31  ;;  %v6538_v31 = vld [vmem:[%s7707_s3 + $0x8] sm:$0xff]  }
 0x8ef   : > { %6288 = vmatmul.mubr.msk.bf16.vlgmr.msra.gmra.mrb[16].mxu1 %vm1931_vm3, %v2598_v52  ;;  %6293 = vmatprep.subr.bf16.mxu0 %v6739_v5 }
 0x8f0   : > { %6303 = vmatprep.mubr.msk.bf16.mxu1 %vm6740_vm0, %v6739_v5 }
 0x8f2   : > { %6294 = vmatpush3.bf16.msra.mxu0 %v6534_v41 }
 0x8f3   : > { %6307 = vmatprep.subr.bf16.mxu0 %v6739_v5 }
 0x9b8   : > { %v2639_v53 = vpop.f32.mrb[12].mxu0 }
 0x9b9   : > { %2783 = vxpose.xlu1.b32.start.end [1/1] (short) (narrow) %v2639_v53, 8  ;;  %v6271_v54 = vpop.f32.mrb[13].mxu0 }
 0x9ba   : > { %v2642_v55 = vpop.f32.mrb[14].mxu0  ;;  %v2685_v56 = vpop.f32.mrb[12].mxu1 }
 0x9bb   : > { %v6272_v58 = vpop.f32.mrb[15].mxu0  ;;  %2815 = vxpose.xlu0.b32.start.end [1/1] (short) (narrow) %v2685_v56, 8  ;;  %v6277_v51 = vpop.f32.mrb[13].mxu1 }
 0x9bc   : > { %v2688_v59 = vpop.f32.mrb[14].mxu1 }
 0x9bd   : > { %v6278_v0 = vpop.f32.mrb[15].mxu1 }
 0x9c0   : > { %v2731_v2 = vpop.f32.mrb[16].mxu0 }
 0x9c1   : > { %v6283_v3 = vpop.f32.mrb[17].mxu0  ;;  %2847 = vxpose.xlu0.b32.start.end [1/1] (short) (narrow) %v2731_v2, 8  ;;  %v6042_v2 = vld [vmem:[%s7703_s11] ss:$0 sm:$0xff] }
 0x9c2   : > { %v2734_v4 = vpop.f32.mrb[18].mxu0  ;;  %v2777_v6 = vpop.f32.mrb[16].mxu1 }
 0x9c3   : > { %v6284_v8 = vpop.f32.mrb[19].mxu0  ;;  %2879 = vxpose.xlu1.b32.start.end [1/1] (short) (narrow) %v2777_v6, 8  ;;  %v6289_v9 = vpop.f32.mrb[17].mxu1 }
 0x9c4   : > { %v2780_v10 = vpop.f32.mrb[18].mxu1 }
 0x9c5   : > { %v6290_v11 = vpop.f32.mrb[19].mxu1 }
 0xa39   : > { %v2799_v14 = vpop.trf.xlu1 }
 0xa3b   : > { %v2831_v12 = vpop.trf.xlu0 }
 0xa41   : > { %v2863_v15 = vpop.trf.xlu0 }
 0xa42   : > { %v2911_v17 = vcombine.low %v2799_v14, %v2863_v15  ;;  %v2912_v18 = vcombine.high %v2799_v14, %v2863_v15 }
 0xa43   : > { %v2895_v19 = vpop.trf.xlu1 }
 0xa44   : > { %v2927_v21 = vcombine.low %v2831_v12, %v2895_v19  ;;  %v2928_v23 = vcombine.high %v2831_v12, %v2895_v19  ;;  %v2919_v24 = vrot.slane %v2911_v17, %v7028_v13  ;;  %v2926_v25 = vrot.slane %v2912_v18, %v7028_v13 }
 0xa46   : > { %v2935_v26 = vrot.slane %v2927_v21, %v7028_v13  ;;  %v2942_v27 = vrot.slane %v2928_v23, %v7028_v13 }
 0xa48   : > { %v2943_v63 = vcombine.low %v2919_v24, %v2935_v26  ;;  %v2944_v28 = vcombine.high %v2919_v24, %v2935_v26  ;;  %v2959_v29 = vcombine.low %v2926_v25, %v2942_v27  ;;  %v2960_v30 = vcombine.high %v2926_v25, %v2942_v27 }
 0xa4a   : > { %v2951_v32 = vrot.slane %v2943_v63, %v7034_v22  ;;  %v2958_v33 = vrot.slane %v2944_v28, %v7034_v22  ;;  %v2967_v34 = vrot.slane %v2959_v29, %v7034_v22  ;;  %v2974_v36 = vrot.slane %v2960_v30, %v7034_v22  ;;  %v6537_v30 = vld [vmem:[%s7707_s3] sm:$0xff]  }
 0xa4c   : > { %v2979_v37 = vcombine.low %v2951_v32, %v2958_v33  ;;  %v6037_v38 = vcombine.high %v2951_v32, %v2958_v33  ;;  %v2995_v39 = vcombine.low %v2967_v34, %v2974_v36  ;;  %v6038_v40 = vcombine.high %v2967_v34, %v2974_v36  ;;  %v6539_v32 = vld [vmem:[%s7707_s3 + $0x10] sm:$0xff]   ;;  %v6540_v33 = vld [vmem:[%s7707_s3 + $0x18] sm:$0xff]   ;;  %v6541_v34 = vld [vmem:[%s7707_s3 + $0x20] sm:$0xff]  }
 0xa4d   : > { %v6542_v36 = vld [vmem:[%s7707_s3 + $0x28] sm:$0xff]  }
 0xa4e   : > { %v2986_v42 = vrot.slane %v2979_v37, %v7028_v13  ;;  %v2994_v43 = vrot.slane %v6037_v38, %v7028_v13  ;;  %v3002_v45 = vrot.slane %v2995_v39, %v7028_v13  ;;  %v3010_v46 = vrot.slane %v6038_v40, %v7028_v13  ;;  %v6543_v37 = vld [vmem:[%s7707_s3 + $0x30] sm:$0xff]   ;;  %v6544_v38 = vld [vmem:[%s7707_s3 + $0x38] sm:$0xff]   ;;  %v6045_v39 = vld [vmem:[%s7708_s5] ss:$0 sm:$0xff] }
 0xa50   : > { %v3012_v60 = vcombine.high %v2986_v42, %v2994_v43  ;;  %v3028_v20 = vcombine.high %v3002_v45, %v3010_v46  ;;  %v3011_v61 = vcombine.low %v2986_v42, %v2994_v43  ;;  %v3027_v47 = vcombine.low %v3002_v45, %v3010_v46 }
 0xa52   : > { %v3026_v44 = vrot.slane %v3012_v60, %v7034_v22  ;;  %v3042_v48 = vrot.slane %v3028_v20, %v7034_v22  ;;  %v3019_v62 = vrot.slane %v3011_v61, %v7034_v22  ;;  %v3035_v16 = vrot.slane %v3027_v47, %v7034_v22 }
 0xa54   : > { %v3045_v49 = vcombine.low %v3026_v44, %v3042_v48  ;;  %v3044_v50 = vcombine.high %v3019_v62, %v3035_v16  ;;  %v3043_v57 = vcombine.low %v3019_v62, %v3035_v16  ;;  %v3046_v52 = vcombine.high %v3026_v44, %v3042_v48 }
 0xa56   : > { %3052 = vrot.lane.b32.xlu1 %v3045_v49, %s7662_s7  ;;  %3048 = vrot.lane.b32.xlu0 %v3044_v50, %s7660_s1  ;;  %s7704_s1 = sld [smem:[#allocation20_spill]]  ;;  %s7706_s7 = sld [smem:[#allocation19_spill]]  ;;  %v6049_v50 = vld [vmem:[%s7709_s8] ss:$0 sm:$0xff] }
 0xa5a   : > { %3056 = vrot.lane.b32.xlu1 %v3046_v52, %s7661_s27  ;;  %s7705_s27 = sld [smem:[#allocation18_spill]] }
 0xa5c   : > { %v6536_v18 = vld [vmem:[%s7704_s1 + $0x8] sm:$0xff]   ;;  %v6044_v27 = vld [vmem:[%s7706_s7] ss:$0 sm:$0xff] }
 0xa60   : > { %v6043_v25 = vld [vmem:[%s7705_s27] ss:$0 sm:$0xff] }
 0xac8   : > { %v3053_v53 = vpop.permute.xlu1 %3052  ;;  %v3049_v54 = vpop.permute.xlu0 %3048 }
 0xac9   : > { %v3059_v55 = vsel %vm1931_vm3, %v3043_v57, %v3049_v54 }
 0xaca   : > { %v3061_v58 = vsel %vm3060_vm4, %v3059_v55, %v3053_v53 }
 0xacc   : > { %v3057_v56 = vpop.permute.xlu1 %3056 }
 0xacd   : > { %v3063_v51 = vsel %vm3062_vm5, %v3061_v58, %v3057_v56 }
 0xace   : > { %v3068_v59 = vpack.c.bf16 %v3063_v51, %v3063_v51 }
 0xad0   : > { %6296 = vmatmul.mubr.msk.bf16.vlgmr.msra.gmra.mrb[20].mxu0 %vm980_vm1, %v3068_v59 }
 0xad1   : > { %6323 = vmatprep.mubr.msk.bf16.mxu0 %vm6740_vm0, %v6739_v5  ;;  %6308 = vmatpush3.bf16.msra.mxu0 %v6537_v30 }
 0xad2   : > { %6309 = vmatprep.subr.bf16.mxu0 %v6739_v5 }
 0xad5   : > { %6310 = vmatpush3.bf16.msra.mxu0 %v6538_v31 }
 0xad6   : > { %6311 = vmatprep.subr.bf16.mxu0 %v6739_v5 }
 0xad9   : > { %6312 = vmatpush3.bf16.msra.mxu0 %v6539_v32 }
 0xada   : > { %6313 = vmatprep.subr.bf16.mxu0 %v6739_v5 }
 0xadd   : > { %6314 = vmatpush3.bf16.msra.mxu0 %v6540_v33 }
 0xade   : > { %6315 = vmatprep.subr.bf16.mxu0 %v6739_v5 }
 0xae1   : > { %6316 = vmatpush3.bf16.msra.mxu0 %v6541_v34 }
 0xae2   : > { %6317 = vmatprep.subr.bf16.mxu0 %v6739_v5 }
 0xae5   : > { %6318 = vmatpush3.bf16.msra.mxu0 %v6542_v36 }
 0xae6   : > { %6319 = vmatprep.subr.bf16.mxu0 %v6739_v5 }
 0xae9   : > { %6320 = vmatpush3.bf16.msra.mxu0 %v6543_v37 }
 0xaea   : > { %6321 = vmatprep.subr.bf16.mxu0 %v6739_v5 }
 0xaed   : > { %6322 = vmatpush3.bf16.msra.mxu0 %v6544_v38 }
 0xaee   : > { %6353 = vmatprep.subr.bf16.mxu0 %v6739_v5 }
 0xba3   : > { %v3118_v0 = vpop.f32.mrb[20].mxu0 }
 0xba4   : > { %v3124_v3 = vadd.f32 %v3118_v0, %v6987_v35  ;;  %v6297_v4 = vpop.f32.mrb[21].mxu0  ;;  %v6535_v35 = vld [vmem:[%s7704_s1] sm:$0xff]  }
 0xba5   : > { %v3121_v6 = vpop.f32.mrb[22].mxu0  ;;  %6300 = vmatpush3.bf16.msra.mxu1 %v6535_v35  ;;  %v6545_v4 = vld [vmem:[%s6816_s24 + $0x10] sm:$0xff]  }
 0xba6   : > { %v7242_v8 = vadd.f32 %v6042_v2, %v3124_v3  ;;  %v6298_v9 = vpop.f32.mrb[23].mxu0  ;;  %6301 = vmatprep.subr.bf16.mxu1 %v6739_v5  ;;  %v6546_v6 = vld [vmem:[%s6816_s24 + $0x18] sm:$0xff]  }
 0xba8   : > { %v3135_v10 = vsel %vm980_vm1, %v7242_v8, 0.0 }
 0xba9   : > { %3136 = vadd.xlane.f32.xlu1 %v3135_v10  ;;  %6302 = vmatpush3.bf16.msra.mxu1 %v6536_v18 }
 0xbaa   : > { %6327 = vmatprep.subr.bf16.mxu1 %v6739_v5 }
 0xc36   : > { %v3137_v11 = vpop.xlane.xlu1 %3136 }
 0xc37   : > { %v3138_v12 = vmul.f32 0.03125, %v3137_v11 }
 0xc39   : > { %v3139_v14 = vsub.f32 %v7242_v8, %v3138_v12  ;;  %v6060_v12 = vld [vmem:[%s7694_s14 + $0x1] ss:$0 sm:$0xff]  ;;  %s7712_s14 = smov 104  }
 0xc3b   : > { %v3140_v15 = vmul.f32 %v3139_v14, %v3139_v14 }
 0xc3d   : > { %v3141_v17 = vsel %vm980_vm1, %v3140_v15, 0.0  ;;  %v6061_v15 = vld [vmem:[%s6811_s19 + $0x1] ss:$0 sm:$0xff] }
 0xc3e   : > { %3142 = vadd.xlane.f32.xlu0 %v3141_v17 }
 0xccb   : > { %v3143_v19 = vpop.xlane.xlu0 %3142 }
 0xccc   : > { %v3144_v21 = vmul.f32 0.03125, %v3143_v19  ;;  %v6067_v19 = vld [vmem:[%s6821_s30 + $0x1] ss:$0 sm:$0xff] }
 0xcce   : > { %v3145_v23 = vadd.f32 1e-05, %v3144_v21 }
 0xcd0   : > { %6583 = vrsqrt.f32 %v3145_v23 }
 0xcda   : > { %v6584_v24 = vpop.eup %6583 }
 0xcdb   : > { %v3147_v26 = vmul.f32 %v6584_v24, %v3139_v14 }
 0xcdd   : > { %v3154_v63 = vmul.f32 %v6043_v25, %v3147_v26 }
 0xcdf   : > { %v3161_v28 = vadd.f32 %v6044_v27, %v3154_v63 }
 0xce1   : > { %v3166_v29 = vpack.c.bf16 %v3161_v28, %v3161_v28 }
 0xce3   : > { %6304 = vmatmul.mubr.msk.bf16.vlgmr.msra.gmra.mrb[20].mxu1 %vm980_vm1, %v3166_v29 }
 0xce4   : > { %6331 = vmatprep.mubr.msk.bf16.mxu1 %vm6740_vm0, %v6739_v5  ;;  %6328 = vmatpush3.bf16.msra.mxu1 %v6545_v4 }
 0xce5   : > { %6329 = vmatprep.subr.bf16.mxu1 %v6739_v5 }
 0xce8   : > { %6330 = vmatpush3.bf16.msra.mxu1 %v6546_v6 }
 0xce9   : > { %6335 = vmatprep.subr.bf16.mxu1 %v6739_v5 }
 0xdb6   : > { %v3223_v40 = vpop.f32.mrb[20].mxu1 }
 0xdb7   : > { %v3224_v41 = vadd.f32 %v6045_v39, %v3223_v40  ;;  %v6305_v42 = vpop.f32.mrb[21].mxu1 }
 0xdb8   : > { %v3226_v43 = vpop.f32.mrb[22].mxu1 }
 0xdb9   : > { %v3229_v45 = vmul.f32 %v3224_v41, %v3224_v41  ;;  %v6306_v46 = vpop.f32.mrb[23].mxu1 }
 0xdbb   : > { %v3230_v60 = vmul.f32 %v3229_v45, %v3224_v41 }
 0xdbd   : > { %v3231_v20 = vmul.f32 0.044715, %v3230_v60 }
 0xdbf   : > { %v3232_v61 = vadd.f32 %v3231_v20, %v3224_v41 }
 0xdc1   : > { %v3233_v47 = vmul.f32 0.7978846, %v3232_v61 }
 0xdc3   : > { %6585 = vtanh.f32 %v3233_v47 }
 0xdcd   : > { %v6586_v44 = vpop.eup %6585 }
 0xdce   : > { %v3235_v48 = vadd.f32 1.0, %v6586_v44 }
 0xdd0   : > { %v3236_v62 = vmul.f32 0.5, %v3235_v48 }
 0xdd2   : > { %v3237_v16 = vmul.f32 %v3236_v62, %v3224_v41 }
 0xdd4   : > { %v3254_v49 = vpack.c.bf16 %v3237_v16, %v3237_v16 }
 0xdd6   : > { %6324 = vmatmul.mubr.bf16.vlgmr.msra.gmra.mrb[24].mxu0 %v3254_v49 }
 0xdd7   : > { %6355 = vmatprep.mubr.msk.bf16.mxu0 %vm6740_vm0, %v6739_v5 }
 0xea9   : > { %v3344_v57 = vpop.f32.mrb[24].mxu0 }
 0xeaa   : > { %v3345_v52 = vadd.f32 %v6049_v50, %v3344_v57  ;;  %v6325_v53 = vpop.f32.mrb[25].mxu0 }
 0xeab   : > { %v3347_v54 = vpop.f32.mrb[26].mxu0 }
 0xeac   : > { %v7278_v55 = vadd.f32 %v3345_v52, %v7242_v8  ;;  %v6326_v56 = vpop.f32.mrb[27].mxu0 }
 0xeae   : > { %v3355_v58 = vsel %vm980_vm1, %v7278_v55, 0.0 }
 0xeaf   : > { %3356 = vadd.xlane.f32.xlu0 %v3355_v58 }
 0xf3c   : > { %v3357_v51 = vpop.xlane.xlu0 %3356 }
 0xf3d   : > { %v3358_v59 = vmul.f32 0.03125, %v3357_v51 }
 0xf3f   : > { %v3359_v0 = vsub.f32 %v7278_v55, %v3358_v59 }
 0xf41   : > { %v3360_v2 = vmul.f32 %v3359_v0, %v3359_v0 }
 0xf43   : > { %v3361_v3 = vsel %vm980_vm1, %v3360_v2, 0.0 }
 0xf44   : > { %3362 = vadd.xlane.f32.xlu1 %v3361_v3 }
 0xfd1   : > { %v3363_v8 = vpop.xlane.xlu1 %3362 }
 0xfd2   : > { %v3364_v9 = vmul.f32 0.03125, %v3363_v8 }
 0xfd4   : > { %v3365_v10 = vadd.f32 1e-05, %v3364_v9 }
 0xfd6   : > { %6587 = vrsqrt.f32 %v3365_v10 }
 0xfe0   : > { %v6588_v11 = vpop.eup %6587 }
 0xfe1   : > { %v3367_v14 = vmul.f32 %v6588_v11, %v3359_v0 }
 0xfe3   : > { %v3374_v17 = vmul.f32 %v6060_v12, %v3367_v14 }
 0xfe5   : > { %v3381_v35 = vadd.f32 %v6061_v15, %v3374_v17 }
 0xfe7   : > { %v3387_v18 = vpack.c.bf16 %v3381_v35, %v3381_v35 }
 0xfe9   : > { %6332 = vmatmul.mubr.msk.bf16.vlgmr.msra.gmra.mrb[24].mxu1 %vm980_vm1, %v3387_v18 }
 0xfea   : > { %6337 = vmatprep.mubr.msk.bf16.mxu1 %vm6740_vm0, %v6739_v5 }
0x10bc   : > { %v3445_v21 = vpop.f32.mrb[24].mxu1 }
0x10bd   : > { %v7294_v23 = vadd.f32 %v6067_v19, %v3445_v21  ;;  %v6333_v24 = vpop.f32.mrb[25].mxu1 }
0x10be   : > { %v3448_v25 = vpop.f32.mrb[26].mxu1 }
0x10bf   : > { %3455 = vrot.lane.b32.xlu1 %v7294_v23, %s7710_s9  ;;  %3452 = vrot.lane.b32.xlu0 %v7294_v23, %s7711_s13  ;;  %v6334_v26 = vpop.f32.mrb[27].mxu1  ;;  %s7714_s9 = smov 64   ;;  %s7715_s13 = smov 16  }
0x10c3   : > { %3458 = vrot.lane.b32.xlu1 %v7294_v23, %s7712_s14  ;;  %3529 = vrot.lane.b32.xlu0 %v7294_v23, %s7713_s17  ;;  %s7717_s14 = smov 24  }
0x1131   : > { %v7304_v27 = vpop.permute.xlu1 %3455  ;;  %v7306_v63 = vpop.permute.xlu0 %3452 }
0x1132   : > { %3533 = vrot.lane.b32.xlu0 %v7304_v27, %s7713_s17  ;;  %3531 = vrot.lane.b32.xlu1 %v7306_v63, %s7713_s17 }
0x1135   : > { %v7312_v28 = vpop.permute.xlu1 %3458  ;;  %v3530_v29 = vpop.permute.xlu0 %3529 }
0x1136   : > { %3535 = vrot.lane.b32.xlu1 %v7312_v28, %s7713_s17  ;;  %s7716_s17 = smov 8  }
0x11a4   : > { %v3532_v30 = vpop.permute.xlu1 %3531  ;;  %v3534_v31 = vpop.permute.xlu0 %3533 }
0x11a5   : > { %v3541_v32 = vcombine.low %v3530_v29, %v3534_v31  ;;  %v3542_v33 = vcombine.high %v3530_v29, %v3534_v31 }
0x11a7   : > { %v3549_v38 = vrot.slane %v3541_v32, %v7028_v13  ;;  %v3556_v39 = vrot.slane %v3542_v33, %v7028_v13 }
0x11a8   : > { %v3536_v34 = vpop.permute.xlu1 %3535 }
0x11a9   : > { %v3557_v36 = vcombine.low %v3532_v30, %v3536_v34  ;;  %v3558_v37 = vcombine.high %v3532_v30, %v3536_v34 }
0x11ab   : > { %v3565_v40 = vrot.slane %v3557_v36, %v7028_v13  ;;  %v3572_v41 = vrot.slane %v3558_v37, %v7028_v13 }
0x11ad   : > { %v3573_v42 = vcombine.low %v3549_v38, %v3565_v40  ;;  %v3574_v43 = vcombine.high %v3549_v38, %v3565_v40  ;;  %v3589_v45 = vcombine.low %v3556_v39, %v3572_v41  ;;  %v3590_v20 = vcombine.high %v3556_v39, %v3572_v41 }
0x11af   : > { %v3581_v46 = vrot.slane %v3573_v42, %v7034_v22  ;;  %v3597_v60 = vrot.slane %v3589_v45, %v7034_v22  ;;  %v3588_v44 = vrot.slane %v3574_v43, %v7034_v22  ;;  %v3604_v50 = vrot.slane %v3590_v20, %v7034_v22 }
0x11b1   : > { %v3701_v61 = vpack.c.bf16 %v3597_v60, %v3597_v60  ;;  %v3697_v47 = vpack.c.bf16 %v3581_v46, %v3581_v46  ;;  %v3605_v48 = vcombine.high %v3581_v46, %v6739_v5  ;;  %v3699_v62 = vpack.c.bf16 %v3588_v44, %v3588_v44 }
0x11b2   : > { %v3606_v49 = vcombine.high %v3588_v44, %v6739_v5  ;;  %v3703_v52 = vpack.c.bf16 %v3604_v50, %v3604_v50  ;;  %v3607_v53 = vcombine.high %v3597_v60, %v6739_v5  ;;  %v3608_v56 = vcombine.high %v3604_v50, %v6739_v5 }
0x11b3   : > { %3831 = vxpose.xlu1.c.b16.start.end [1/1] (short) (narrow) %v3701_v61, 16  ;;  %3767 = vxpose.xlu0.c.b16.start.end [1/1] (short) (narrow) %v3697_v47, 16  ;;  %v3698_v16 = vpack.c.bf16 %v3605_v48, %v3605_v48  ;;  %v3462_v50 = vcombine.high %v7294_v23, %v7304_v27 }
0x11b4   : > { %v3700_v57 = vpack.c.bf16 %v3606_v49, %v3606_v49  ;;  %v3702_v54 = vpack.c.bf16 %v3607_v53, %v3607_v53  ;;  %v3704_v58 = vpack.c.bf16 %v3608_v56, %v3608_v56  ;;  %v3461_v49 = vcombine.low %v7294_v23, %v7304_v27 }
0x11b6   : > { %v3469_v53 = vrot.slane %v3461_v49, %v7028_v13 }
0x11b7   : > { %3799 = vxpose.xlu0.c.b16.start.end [1/1] (short) (narrow) %v3699_v62, 16  ;;  %3783 = vxpose.xlu1.c.b16.start.end [1/1] (short) (narrow) %v3698_v16, 16  ;;  %v3477_v62 = vcombine.low %v7306_v63, %v7312_v28  ;;  %v3478_v16 = vcombine.high %v7306_v63, %v7312_v28 }
0x11bb   : > { %3815 = vxpose.xlu0.c.b16.start.end [1/1] (short) (narrow) %v3700_v57, 16  ;;  %3863 = vxpose.xlu1.c.b16.start.end [1/1] (short) (narrow) %v3703_v52, 16  ;;  %v3485_v57 = vrot.slane %v3477_v62, %v7028_v13  ;;  %v3492_v52 = vrot.slane %v3478_v16, %v7028_v13 }
0x11bd   : > { %v3493_v56 = vcombine.low %v3469_v53, %v3485_v57 }
0x11bf   : > { %3847 = vxpose.xlu0.c.b16.start.end [1/1] (short) (narrow) %v3702_v54, 16  ;;  %v3476_v54 = vrot.slane %v3462_v50, %v7028_v13 }
0x11c3   : > { %3879 = vxpose.xlu0.c.b16.start.end [1/1] (short) (narrow) %v3704_v58, 16  ;;  %v3494_v58 = vcombine.high %v3469_v53, %v3485_v57 }
0x1219   : > { %v3839_v51 = vpop.trf.xlu1  ;;  %v3775_v59 = vpop.trf.xlu0 }
0x121a   : > { %v3895_v8 = vcombine.low %v3775_v59, %v3839_v51  ;;  %v3509_v51 = vcombine.low %v3476_v54, %v3492_v52  ;;  %v3510_v59 = vcombine.high %v3476_v54, %v3492_v52 }
0x121c   : > { %v3902_v11 = vrot.slane %v3895_v8, %v7028_v13 }
0x121d   : > { %v3807_v0 = vpop.trf.xlu0  ;;  %v3791_v2 = vpop.trf.xlu1 }
0x1221   : > { %v3823_v3 = vpop.trf.xlu0  ;;  %v3871_v4 = vpop.trf.xlu1 }
0x1222   : > { %v3903_v6 = vcombine.low %v3807_v0, %v3871_v4  ;;  %v3508_v0 = vrot.slane %v3494_v58, %v7034_v22 }
0x1224   : > { %v3910_v10 = vrot.slane %v3903_v6, %v7028_v13  ;;  %v3526_v4 = vcombine.high %v3508_v0, %v6739_v5 }
0x1225   : > { %v3855_v9 = vpop.trf.xlu0 }
0x1226   : > { %v3929_v12 = vcombine.low %v3791_v2, %v3855_v9  ;;  %v3911_v15 = vcombine.low %v3902_v11, %v3910_v10  ;;  %v3912_v19 = vcombine.high %v3902_v11, %v3910_v10  ;;  %v3517_v2 = vrot.slane %v3509_v51, %v7034_v22 }
0x1228   : > { %v3936_v35 = vrot.slane %v3929_v12, %v7028_v13  ;;  %v3919_v25 = vrot.slane %v3911_v15, %v7034_v22  ;;  %v3926_v33 = vrot.slane %v3912_v19, %v7034_v22  ;;  %v3527_v6 = vcombine.high %v3517_v2, %v6739_v5 }
0x1229   : > { %v3887_v14 = vpop.trf.xlu0 }
0x122a   : > { %v3937_v17 = vcombine.low %v3823_v3, %v3887_v14  ;;  %v3967_v31 = vshrl.u32 %v3919_v25, 16  ;;  %v3983_v39 = vshrl.u32 %v3926_v33, 16  ;;  %v3927_v40 = vcombine.high %v3919_v25, %v6738_v1 }
0x122b   : > { %v3928_v60 = vcombine.high %v3926_v33, %v6738_v1 }
0x122c   : > { %v3944_v18 = vrot.slane %v3937_v17, %v7028_v13  ;;  %v3975_v46 = vshrl.u32 %v3927_v40, 16 }
0x122d   : > { %v3991_v44 = vshrl.u32 %v3928_v60, 16 }
0x122e   : > { %v3945_v21 = vcombine.low %v3936_v35, %v3944_v18  ;;  %v3946_v24 = vcombine.high %v3936_v35, %v3944_v18 }
0x1230   : > { %v3953_v26 = vrot.slane %v3945_v21, %v7034_v22  ;;  %v3960_v29 = vrot.slane %v3946_v24, %v7034_v22 }
0x1232   : > { %v3965_v30 = vpack.i.b16 %v3953_v26, %v3919_v25  ;;  %v3968_v32 = vshrl.u32 %v3953_v26, 16  ;;  %v3984_v36 = vshrl.u32 %v3960_v29, 16  ;;  %v3961_v37 = vcombine.high %v3953_v26, %v6738_v1 }
0x1233   : > { %v3981_v38 = vpack.i.b16 %v3960_v29, %v3926_v33  ;;  %v3962_v43 = vcombine.high %v3960_v29, %v6738_v1 }
0x1234   : > { %3995 = vxpose.xlu1.c.b16.start.end [1/1] (short) (narrow) %v3965_v30, 16  ;;  %v3969_v34 = vpack.i.b16 %v3968_v32, %v3967_v31  ;;  %v3985_v41 = vpack.i.b16 %v3984_v36, %v3983_v39  ;;  %v3976_v42 = vshrl.u32 %v3961_v37, 16  ;;  %v3973_v45 = vpack.i.b16 %v3961_v37, %v3927_v40 }
0x1235   : > { %v3992_v61 = vshrl.u32 %v3962_v43, 16  ;;  %v3989_v47 = vpack.i.b16 %v3962_v43, %v3928_v60 }
0x1236   : > { %4011 = vxpose.xlu0.c.b16.start.end [1/1] (short) (narrow) %v3969_v34, 16  ;;  %v3977_v20 = vpack.i.b16 %v3976_v42, %v3975_v46 }
0x1237   : > { %v3993_v48 = vpack.i.b16 %v3992_v61, %v3991_v44 }
0x1238   : > { %4059 = vxpose.xlu1.c.b16.start.end [1/1] (short) (narrow) %v3981_v38, 16 }
0x123a   : > { %4075 = vxpose.xlu0.c.b16.start.end [1/1] (short) (narrow) %v3985_v41, 16 }
0x123c   : > { %4027 = vxpose.xlu1.c.b16.start.end [1/1] (short) (narrow) %v3973_v45, 16 }
0x123e   : > { %4043 = vxpose.xlu0.c.b16.start.end [1/1] (short) (narrow) %v3977_v20, 16 }
0x1240   : > { %4091 = vxpose.xlu1.c.b16.start.end [1/1] (short) (narrow) %v3989_v47, 16 }
0x1242   : > { %4107 = vxpose.xlu0.c.b16.start.end [1/1] (short) (narrow) %v3993_v48, 16 }
0x1244   : > { %3609 = vrot.lane.b32.xlu1 %v7294_v23, %s7714_s9  ;;  %v3524_v23 = vrot.slane %v3510_v59, %v7034_v22 }
0x1246   : > { %v3528_v8 = vcombine.high %v3524_v23, %v6739_v5  ;;  %v6072_v17 = vpack.c.bf16 %v3524_v23, %v3508_v0 }
0x1248   : > { %3613 = vrot.lane.b32.xlu1 %v7304_v27, %s7714_s9  ;;  %v6074_v12 = vpack.c.bf16 %v3528_v8, %v3526_v4  ;;  %v3720_v26 = vrot.slane %v6072_v17, %v7028_v13 }
0x124a   : > { %v3745_v19 = vrot.slane %v6074_v12, %v7028_v13 }
0x124b   : > { %3611 = vrot.lane.b32.xlu0 %v7306_v63, %s7714_s9  ;;  %v3501_v63 = vrot.slane %v3493_v56, %v7034_v22 }
0x124d   : > { %v3525_v3 = vcombine.high %v3501_v63, %v6739_v5  ;;  %v6071_v15 = vpack.c.bf16 %v3517_v2, %v3501_v63 }
0x124f   : > { %v6073_v11 = vpack.c.bf16 %v3527_v6, %v3525_v3  ;;  %v3712_v25 = vrot.slane %v6071_v15, %v7028_v13 }
0x1251   : > { %v3737_v18 = vrot.slane %v6073_v11, %v7028_v13  ;;  %v3721_v38 = vcombine.low %v3712_v25, %v3720_v26  ;;  %v6611_v11 = vld [vmem:[%s7121_s26] ss:$0 sm:$0xff]  ;;  %s7718_s26 = sld [smem:[#allocation26_spill]] }
0x1253   : > { %v3746_v33 = vcombine.low %v3737_v18, %v3745_v19  ;;  %v3728_v46 = vrot.slane %v3721_v38, %v7034_v22 }
0x1255   : > { %v3753_v42 = vrot.slane %v3746_v33, %v7034_v22  ;;  %v3729_v16 = vcombine.high %v3728_v46, %v6738_v1  ;;  %v3758_v2 = vshrl.u32 %v3728_v46, 16 }
0x1257   : > { %v3754_v61 = vcombine.high %v3753_v42, %v6738_v1  ;;  %v3757_v53 = vpack.i.b16 %v3753_v42, %v3728_v46  ;;  %v3764_v59 = vshrl.u32 %v3729_v16, 16  ;;  %v3759_v0 = vshrl.u32 %v3753_v42, 16 }
0x1259   : > { %v3765_v56 = vshrl.u32 %v3754_v61, 16  ;;  %v3763_v4 = vpack.i.b16 %v3754_v61, %v3729_v16 }
0x125b   : > { %v3766_v63 = vpack.i.b16 %v3765_v56, %v3764_v59 }
0x129a   : > { %v4003_v27 = vpop.trf.xlu1 }
0x129c   : > { %v4019_v9 = vpop.trf.xlu0 }
0x129e   : > { %v4067_v10 = vpop.trf.xlu1 }
0x129f   : > { %v4123_v24 = vcombine.low %v4003_v27, %v4067_v10  ;;  %v3760_v27 = vpack.i.b16 %v3759_v0, %v3758_v2 }
0x12a0   : > { %v4083_v14 = vpop.trf.xlu0 }
0x12a1   : > { %v4148_v30 = vcombine.low %v4019_v9, %v4083_v14  ;;  %v4130_v34 = vrot.slane %v4123_v24, %v7028_v13 }
0x12a2   : > { %v4035_v35 = vpop.trf.xlu1 }
0x12a3   : > { %v4155_v39 = vrot.slane %v4148_v30, %v7028_v13 }
0x12a4   : > { %v4051_v21 = vpop.trf.xlu0 }
0x12a6   : > { %v4099_v29 = vpop.trf.xlu1 }
0x12a7   : > { %v4131_v31 = vcombine.low %v4035_v35, %v4099_v29 }
0x12a8   : > { %v4115_v32 = vpop.trf.xlu0 }
0x12a9   : > { %v4138_v36 = vrot.slane %v4131_v31, %v7028_v13  ;;  %v4156_v37 = vcombine.low %v4051_v21, %v4115_v32 }
0x12ab   : > { %v4139_v40 = vcombine.low %v4130_v34, %v4138_v36  ;;  %v4163_v41 = vrot.slane %v4156_v37, %v7028_v13 }
0x12ad   : > { %v4146_v43 = vrot.slane %v4139_v40, %v7034_v22  ;;  %v4164_v45 = vcombine.low %v4155_v39, %v4163_v41 }
0x12af   : > { %v4171_v60 = vrot.slane %v4164_v45, %v7034_v22  ;;  %v4147_v20 = vcombine.high %v4146_v43, %v6738_v1  ;;  %v4176_v44 = vshrl.u32 %v4146_v43, 16 }
0x12b1   : > { %v4175_v47 = vpack.i.b16 %v4171_v60, %v4146_v43  ;;  %v4177_v48 = vshrl.u32 %v4171_v60, 16  ;;  %v4172_v62 = vcombine.high %v4171_v60, %v6738_v1  ;;  %v4182_v57 = vshrl.u32 %v4147_v20, 16 }
0x12b3   : > { %v4189_v49 = vsel %vm1935_vm2, %v4175_v47, 0  ;;  %v4178_v50 = vpack.i.b16 %v4177_v48, %v4176_v44  ;;  %v4183_v52 = vshrl.u32 %v4172_v62, 16  ;;  %v4181_v23 = vpack.i.b16 %v4172_v62, %v4147_v20 }
0x12b4   : > { %6336 = vmatpush3.bf16.msra.mxu1 %v4189_v49 }
0x12b5   : > { %6341 = vmatprep.subr.bf16.mxu1 %v6739_v5  ;;  %v4184_v54 = vpack.i.b16 %v4183_v52, %v4182_v57  ;;  %v4235_v58 = vsel %vm1935_vm2, %v4178_v50, 0  ;;  %v4281_v3 = vsel %vm1935_vm2, %v4181_v23, 0 }
0x12b6   : > { %v3610_v43 = vpop.permute.xlu1 %3609 }
0x12b7   : > { %6338 = vmatmul.mubr.msk.bf16.vlgmr.msra.gmra.mrb[28].mxu1 %vm1931_vm3, %v3757_v53  ;;  %v4327_v51 = vsel %vm1935_vm2, %v4184_v54, 0 }
0x12b8   : > { %6342 = vmatpush3.bf16.msra.mxu1 %v4235_v58  ;;  %6354 = vmatpush3.bf16.msra.mxu0 %v4327_v51 }
0x12b9   : > { %6343 = vmatprep.mubr.msk.bf16.mxu1 %vm6740_vm0, %v6739_v5  ;;  %6347 = vmatprep.subr.bf16.mxu1 %v6739_v5 }
0x12ba   : > { %6365 = vmatprep.subr.bf16.mxu0 %v6739_v5  ;;  %v3614_v45 = vpop.permute.xlu1 %3613 }
0x12bb   : > { %6356 = vmatmul.mubr.msk.bf16.vlgmr.msra.gmra.mrb[28].mxu0 %vm1931_vm3, %v3766_v63  ;;  %v3621_v60 = vcombine.low %v3610_v43, %v3614_v45  ;;  %v3622_v47 = vcombine.high %v3610_v43, %v3614_v45 }
0x12bc   : > { %6367 = vmatprep.mubr.msk.bf16.mxu0 %vm6740_vm0, %v6739_v5 }
0x12bd   : > { %v3612_v20 = vpop.permute.xlu0 %3611  ;;  %v3629_v62 = vrot.slane %v3621_v60, %v7028_v13  ;;  %v3636_v49 = vrot.slane %v3622_v47, %v7028_v13 }
0x12bf   : > { %6344 = vmatmul.mubr.msk.bf16.vlgmr.msra.gmra.mrb[32].mxu1 %vm1931_vm3, %v3760_v27 }
0x12c0   : > { %6348 = vmatpush3.bf16.msra.mxu1 %v4281_v3  ;;  %6349 = vmatprep.mubr.msk.bf16.mxu1 %vm6740_vm0, %v6739_v5 }
0x12c1   : > { %6359 = vmatprep.subr.bf16.mxu1 %v6739_v5 }
0x12c7   : > { %6350 = vmatmul.mubr.msk.bf16.vlgmr.msra.gmra.mrb[36].mxu1 %vm1931_vm3, %v3763_v4 }
0x12c8   : > { %6361 = vmatprep.mubr.msk.bf16.mxu1 %vm6740_vm0, %v6739_v5 }
0x138a   : > { %v4225_v6 = vpop.f32.mrb[28].mxu1 }
0x138b   : > { %v4369_v8 = vmul.f32 0.35355338, %v4225_v6  ;;  %v6339_v9 = vpop.f32.mrb[29].mxu1 }
0x138c   : > { %v4228_v10 = vpop.f32.mrb[30].mxu1 }
0x138d   : > { %v7403_v12 = vadd.f32 %v6611_v11, %v4369_v8  ;;  %v6340_v14 = vpop.f32.mrb[31].mxu1 }
0x138e   : > { %v4363_v15 = vpop.f32.mrb[28].mxu0 }
0x138f   : > { %v4372_v17 = vmul.f32 0.35355338, %v4363_v15  ;;  %v6357_v35 = vpop.f32.mrb[29].mxu0  ;;  %v4377_v18 = vsel %vm1931_vm3, %v7403_v12, -inf }
0x1390   : > { %v4366_v19 = vpop.f32.mrb[30].mxu0  ;;  %4378 = vmax.xlane.f32.xlu1 %v4377_v18 }
0x1391   : > { %v6358_v21 = vpop.f32.mrb[31].mxu0  ;;  %v7407_v24 = vadd.f32 %v6611_v11, %v4372_v17 }
0x1392   : > { %v4271_v25 = vpop.f32.mrb[32].mxu1 }
0x1393   : > { %v4370_v26 = vmul.f32 0.35355338, %v4271_v25  ;;  %v6345_v29 = vpop.f32.mrb[33].mxu1  ;;  %v4386_v30 = vsel %vm1931_vm3, %v7407_v24, -inf }
0x1394   : > { %4387 = vmax.xlane.f32.xlu0 %v4386_v30  ;;  %v4274_v31 = vpop.f32.mrb[34].mxu1 }
0x1395   : > { %v6346_v32 = vpop.f32.mrb[35].mxu1  ;;  %v7411_v33 = vadd.f32 %v6611_v11, %v4370_v26 }
0x1397   : > { %v4380_v34 = vsel %vm1931_vm3, %v7411_v33, -inf }
0x1398   : > { %4381 = vmax.xlane.f32.xlu0 %v4380_v34 }
0x139a   : > { %v4317_v36 = vpop.f32.mrb[36].mxu1 }
0x139b   : > { %v6351_v37 = vpop.f32.mrb[37].mxu1  ;;  %v4371_v40 = vmul.f32 0.35355338, %v4317_v36 }
0x139c   : > { %v4320_v38 = vpop.f32.mrb[38].mxu1 }
0x139d   : > { %v6352_v39 = vpop.f32.mrb[39].mxu1  ;;  %v7417_v41 = vadd.f32 %v6611_v11, %v4371_v40 }
0x139f   : > { %v4383_v42 = vsel %vm1931_vm3, %v7417_v41, -inf }
0x13a1   : > { %3615 = vrot.lane.b32.xlu1 %v7312_v28, %s7714_s9  ;;  %s7719_s9 = sld [smem:[#allocation24_spill]] }
0x13c5   : > { %4384 = vmax.xlane.f32.xlu1 %v4383_v42 }
0x141d   : > { %v7421_v46 = vpop.xlane.xlu1 %4378 }
0x1421   : > { %v3616_v61 = vpop.permute.xlu1 %3615  ;;  %v4388_v11 = vpop.xlane.xlu0 %4387 }
0x1422   : > { %v3637_v44 = vcombine.low %v3612_v20, %v3616_v61  ;;  %v3638_v48 = vcombine.high %v3612_v20, %v3616_v61 }
0x1424   : > { %v3645_v28 = vrot.slane %v3637_v44, %v7028_v13  ;;  %v3652_v16 = vrot.slane %v3638_v48, %v7028_v13 }
0x1425   : > { %v4382_v14 = vpop.xlane.xlu0 %4381 }
0x1426   : > { %v3653_v50 = vcombine.low %v3629_v62, %v3645_v28  ;;  %v3654_v57 = vcombine.high %v3629_v62, %v3645_v28  ;;  %v3669_v53 = vcombine.low %v3636_v49, %v3652_v16  ;;  %v3670_v51 = vcombine.high %v3636_v49, %v3652_v16 }
0x1427   : > { %v4389_v28 = vsub.f32 %v7403_v12, %v7421_v46  ;;  %v4390_v12 = vsub.f32 %v7411_v33, %v4382_v14 }
0x1428   : > { %v3661_v52 = vrot.slane %v3653_v50, %v7034_v22  ;;  %v3668_v58 = vrot.slane %v3654_v57, %v7034_v22  ;;  %v3677_v63 = vrot.slane %v3669_v53, %v7034_v22  ;;  %v3684_v27 = vrot.slane %v3670_v51, %v7034_v22 }
0x1429   : > { %v4392_v57 = vsub.f32 %v7407_v24, %v4388_v11 }
0x142a   : > { %v4425_v54 = vpack.c.bf16 %v3661_v52, %v3661_v52  ;;  %v3685_v56 = vcombine.high %v3661_v52, %v6739_v5  ;;  %v4427_v0 = vpack.c.bf16 %v3668_v58, %v3668_v58  ;;  %v3686_v2 = vcombine.high %v3668_v58, %v6739_v5 }
0x142b   : > { %v4429_v23 = vpack.c.bf16 %v3677_v63, %v3677_v63  ;;  %v3687_v4 = vcombine.high %v3677_v63, %v6739_v5  ;;  %v4431_v6 = vpack.c.bf16 %v3684_v27, %v3684_v27  ;;  %v3688_v9 = vcombine.high %v3684_v27, %v6739_v5 }
0x142c   : > { %4433 = vxpose.xlu0.c.b16.start.end [1/1] (short) (narrow) %v4425_v54, 16  ;;  %v4426_v59 = vpack.c.bf16 %v3685_v56, %v3685_v56  ;;  %v4428_v3 = vpack.c.bf16 %v3686_v2, %v3686_v2  ;;  %v4393_v56 = vmul.f32 1.442695, %v4389_v28  ;;  %v4399_v63 = vmul.f32 1.442695, %v4392_v57 }
0x142d   : > { %v4430_v8 = vpack.c.bf16 %v3687_v4, %v3687_v4  ;;  %v4432_v10 = vpack.c.bf16 %v3688_v9, %v3688_v9 }
0x142e   : > { %4449 = vxpose.xlu1.c.b16.start.end [1/1] (short) (narrow) %v4426_v59, 16  ;;  %6589 = vpow2.f32 %v4393_v56 }
0x142f   : > { %6591 = vpow2.f32 %v4399_v63 }
0x1430   : > { %4465 = vxpose.xlu0.c.b16.start.end [1/1] (short) (narrow) %v4427_v0, 16 }
0x1432   : > { %4497 = vxpose.xlu1.c.b16.start.end [1/1] (short) (narrow) %v4429_v23, 16  ;;  %v4395_v23 = vmul.f32 1.442695, %v4390_v12 }
0x1434   : > { %4481 = vxpose.xlu0.c.b16.start.end [1/1] (short) (narrow) %v4428_v3, 16 }
0x1436   : > { %4529 = vxpose.xlu1.c.b16.start.end [1/1] (short) (narrow) %v4431_v6, 16 }
0x1438   : > { %4513 = vxpose.xlu0.c.b16.start.end [1/1] (short) (narrow) %v4430_v8, 16  ;;  %v6590_v27 = vpop.eup %6589 }
0x1439   : > { %v4401_v3 = vsel %vm1931_vm3, %v6590_v27, 0.0 }
0x143c   : > { %4545 = vxpose.xlu0.c.b16.start.end [1/1] (short) (narrow) %v4432_v10, 16 }
0x1452   : > { %v4385_v15 = vpop.xlane.xlu1 %4384 }
0x1453   : > { %v4391_v58 = vsub.f32 %v7417_v41, %v4385_v15  ;;  %v6592_v41 = vpop.eup %6591 }
0x1454   : > { %v4410_v33 = vsel %vm1931_vm3, %v6592_v41, 0.0 }
0x1455   : > { %v4397_v2 = vmul.f32 1.442695, %v4391_v58 }
0x1457   : > { %6593 = vpow2.f32 %v4397_v2 }
0x1458   : > { %6595 = vpow2.f32 %v4395_v23 }
0x1461   : > { %v6594_v4 = vpop.eup %6593 }
0x1462   : > { %v6596_v6 = vpop.eup %6595  ;;  %v4407_v8 = vsel %vm1931_vm3, %v6594_v4, 0.0 }
0x1463   : > { %v4404_v9 = vsel %vm1931_vm3, %v6596_v6, 0.0 }
0x1492   : > { %v4441_v17 = vpop.trf.xlu0 }
0x1494   : > { %v4457_v35 = vpop.trf.xlu1 }
0x1496   : > { %v4473_v18 = vpop.trf.xlu0 }
0x1498   : > { %v4505_v19 = vpop.trf.xlu1 }
0x1499   : > { %v4561_v25 = vcombine.low %v4441_v17, %v4505_v19 }
0x149a   : > { %v4489_v21 = vpop.trf.xlu0 }
0x149b   : > { %v4568_v32 = vrot.slane %v4561_v25, %v7028_v13 }
0x149c   : > { %v4537_v26 = vpop.trf.xlu1 }
0x149d   : > { %v4569_v29 = vcombine.low %v4473_v18, %v4537_v26 }
0x149e   : > { %v4521_v30 = vpop.trf.xlu0 }
0x149f   : > { %v4576_v31 = vrot.slane %v4569_v29, %v7028_v13  ;;  %v4595_v34 = vcombine.low %v4457_v35, %v4521_v30 }
0x14a1   : > { %v4577_v36 = vcombine.low %v4568_v32, %v4576_v31  ;;  %v4602_v39 = vrot.slane %v4595_v34, %v7028_v13  ;;  %v4578_v20 = vcombine.high %v4568_v32, %v4576_v31 }
0x14a2   : > { %v4553_v37 = vpop.trf.xlu0 }
0x14a3   : > { %v4603_v38 = vcombine.low %v4489_v21, %v4553_v37  ;;  %v4585_v42 = vrot.slane %v4577_v36, %v7034_v22  ;;  %v4592_v52 = vrot.slane %v4578_v20, %v7034_v22 }
0x14a5   : > { %v4610_v40 = vrot.slane %v4603_v38, %v7028_v13  ;;  %v4633_v61 = vshrl.u32 %v4585_v42, 16  ;;  %v4593_v48 = vcombine.high %v4585_v42, %v6738_v1  ;;  %v4649_v0 = vshrl.u32 %v4592_v52, 16 }
0x14a6   : > { %v4594_v11 = vcombine.high %v4592_v52, %v6738_v1 }
0x14a7   : > { %v4611_v43 = vcombine.low %v4602_v39, %v4610_v40  ;;  %v4612_v45 = vcombine.high %v4602_v39, %v4610_v40  ;;  %v4641_v54 = vshrl.u32 %v4593_v48, 16 }
0x14a8   : > { %v4657_v17 = vshrl.u32 %v4594_v11, 16 }
0x14a9   : > { %v4619_v60 = vrot.slane %v4611_v43, %v7034_v22  ;;  %v4626_v16 = vrot.slane %v4612_v45, %v7034_v22 }
0x14ab   : > { %v4631_v47 = vpack.i.b16 %v4619_v60, %v4585_v42  ;;  %v4634_v44 = vshrl.u32 %v4619_v60, 16  ;;  %v4627_v62 = vcombine.high %v4619_v60, %v6738_v1  ;;  %v4650_v59 = vshrl.u32 %v4626_v16, 16 }
0x14ac   : > { %v4647_v46 = vpack.i.b16 %v4626_v16, %v4592_v52  ;;  %v4628_v10 = vcombine.high %v4626_v16, %v6738_v1 }
0x14ad   : > { %4661 = vxpose.xlu1.c.b16.start.end [1/1] (short) (narrow) %v4631_v47, 16  ;;  %v4635_v49 = vpack.i.b16 %v4634_v44, %v4633_v61  ;;  %v4642_v50 = vshrl.u32 %v4627_v62, 16  ;;  %v4639_v53 = vpack.i.b16 %v4627_v62, %v4593_v48  ;;  %v4651_v24 = vpack.i.b16 %v4650_v59, %v4649_v0 }
0x14ae   : > { %v4658_v14 = vshrl.u32 %v4628_v10, 16  ;;  %v4655_v15 = vpack.i.b16 %v4628_v10, %v4594_v11 }
0x14af   : > { %4677 = vxpose.xlu0.c.b16.start.end [1/1] (short) (narrow) %v4635_v49, 16  ;;  %v4643_v51 = vpack.i.b16 %v4642_v50, %v4641_v54 }
0x14b0   : > { %v4659_v35 = vpack.i.b16 %v4658_v14, %v4657_v17 }
0x14b1   : > { %4693 = vxpose.xlu1.c.b16.start.end [1/1] (short) (narrow) %v4639_v53, 16 }
0x14b3   : > { %4709 = vxpose.xlu0.c.b16.start.end [1/1] (short) (narrow) %v4643_v51, 16 }
0x14b5   : > { %4725 = vxpose.xlu1.c.b16.start.end [1/1] (short) (narrow) %v4647_v46, 16 }
0x14b7   : > { %4741 = vxpose.xlu0.c.b16.start.end [1/1] (short) (narrow) %v4651_v24, 16 }
0x14c2   : > { %4402 = vadd.xlane.f32.xlu1 %v4401_v3 }
0x14c4   : > { %4411 = vadd.xlane.f32.xlu0 %v4410_v33 }
0x14c6   : > { %4408 = vadd.xlane.f32.xlu1 %v4407_v8 }
0x14c8   : > { %4405 = vadd.xlane.f32.xlu0 %v4404_v9 }
0x14f3   : > { %4757 = vxpose.xlu1.c.b16.start.end [1/1] (short) (narrow) %v4655_v15, 16 }
0x14f5   : > { %4773 = vxpose.xlu0.c.b16.start.end [1/1] (short) (narrow) %v4659_v35, 16 }
0x1513   : > { %v4669_v18 = vpop.trf.xlu1 }
0x1515   : > { %v4685_v19 = vpop.trf.xlu0 }
0x1517   : > { %v4701_v21 = vpop.trf.xlu1 }
0x1519   : > { %v4717_v25 = vpop.trf.xlu0 }
0x151b   : > { %v4733_v26 = vpop.trf.xlu1 }
0x151c   : > { %v4789_v36 = vcombine.low %v4669_v18, %v4733_v26 }
0x151d   : > { %v4749_v29 = vpop.trf.xlu0 }
0x151e   : > { %v4814_v39 = vcombine.low %v4685_v19, %v4749_v29  ;;  %v4796_v45 = vrot.slane %v4789_v36, %v7028_v13 }
0x1520   : > { %v4821_v44 = vrot.slane %v4814_v39, %v7028_v13 }
0x154f   : > { %v4403_v30 = vpop.xlane.xlu1 %4402 }
0x1550   : > { %6597 = vrcp.f32 %v4403_v30 }
0x1551   : > { %v4412_v31 = vpop.xlane.xlu0 %4411 }
0x1553   : > { %v4409_v32 = vpop.xlane.xlu1 %4408 }
0x1554   : > { %6599 = vrcp.f32 %v4409_v32 }
0x1555   : > { %v4406_v34 = vpop.xlane.xlu0 %4405 }
0x1556   : > { %6601 = vrcp.f32 %v4406_v34 }
0x1557   : > { %6603 = vrcp.f32 %v4412_v31 }
0x1559   : > { %v4765_v37 = vpop.trf.xlu1 }
0x155a   : > { %v6598_v38 = vpop.eup %6597  ;;  %v4797_v40 = vcombine.low %v4701_v21, %v4765_v37 }
0x155b   : > { %v4781_v42 = vpop.trf.xlu0  ;;  %v4414_v43 = vmul.f32 %v6598_v38, %v6590_v27 }
0x155c   : > { %v4804_v60 = vrot.slane %v4797_v40, %v7028_v13  ;;  %v4822_v20 = vcombine.low %v4717_v25, %v4781_v42 }
0x155d   : > { %v4421_v61 = vpack.c.bf16 %v4414_v43, %v4414_v43 }
0x155e   : > { %v6600_v47 = vpop.eup %6599  ;;  %v4805_v48 = vcombine.low %v4796_v45, %v4804_v60  ;;  %v4829_v62 = vrot.slane %v4822_v20, %v7028_v13 }
0x155f   : > { %v4855_v28 = vsel %vm1931_vm3, %v4421_v61, 0  ;;  %v4418_v16 = vmul.f32 %v6600_v47, %v6594_v4 }
0x1560   : > { %v6602_v49 = vpop.eup %6601  ;;  %v4830_v50 = vcombine.low %v4821_v44, %v4829_v62  ;;  %6360 = vmatpush3.bf16.xpose.msra.mxu1 %v4855_v28  ;;  %v4812_v53 = vrot.slane %v4805_v48, %v7034_v22  ;;  %v6547_v48 = vld [vmem:[%s7693_s6 + $0x10] sm:$0xff]  }
0x1561   : > { %v4416_v57 = vmul.f32 %v6602_v49, %v6596_v6  ;;  %6371 = vmatprep.subr.bf16.mxu1 %v6739_v5  ;;  %v6604_v52 = vpop.eup %6603  ;;  %v4423_v58 = vpack.c.bf16 %v4418_v16, %v4418_v16 }
0x1562   : > { %v4837_v54 = vrot.slane %v4830_v50, %v7034_v22  ;;  %v4420_v63 = vmul.f32 %v6604_v52, %v6592_v41  ;;  %v4842_v0 = vshrl.u32 %v4812_v53, 16  ;;  %v4813_v23 = vcombine.high %v4812_v53, %v6738_v1 }
0x1563   : > { %v4422_v56 = vpack.c.bf16 %v4416_v57, %v4416_v57  ;;  %v4947_v46 = vsel %vm1931_vm3, %v4423_v58, 0 }
0x1564   : > { %v4841_v51 = vpack.i.b16 %v4837_v54, %v4812_v53  ;;  %v4843_v12 = vshrl.u32 %v4837_v54, 16  ;;  %v4838_v2 = vcombine.high %v4837_v54, %v6738_v1  ;;  %v4424_v24 = vpack.c.bf16 %v4420_v63, %v4420_v63  ;;  %v6548_v54 = vld [vmem:[%s7693_s6 + $0x18] sm:$0xff]  }
0x1565   : > { %v4901_v59 = vsel %vm1931_vm3, %v4422_v56, 0  ;;  %v4848_v33 = vshrl.u32 %v4813_v23, 16 }
0x1566   : > { %6366 = vmatpush3.bf16.xpose.msra.mxu0 %v4901_v59  ;;  %v4844_v27 = vpack.i.b16 %v4843_v12, %v4842_v0  ;;  %v4993_v41 = vsel %vm1931_vm3, %v4424_v24, 0  ;;  %v4847_v3 = vpack.i.b16 %v4838_v2, %v4813_v23  ;;  %v4849_v4 = vshrl.u32 %v4838_v2, 16 }
0x1567   : > { %6362 = vmatmul.mubr.msk.bf16.vlgmr.msra.gmra.mrb[40].mxu1 %vm1931_vm3, %v4841_v51  ;;  %6377 = vmatprep.subr.bf16.mxu0 %v6739_v5 }
0x1568   : > { %6372 = vmatpush3.bf16.xpose.msra.mxu1 %v4947_v46  ;;  %6373 = vmatprep.mubr.msk.bf16.mxu1 %vm6740_vm0, %v6739_v5  ;;  %v4850_v1 = vpack.i.b16 %v4849_v4, %v4848_v33 }
0x1569   : > { %6383 = vmatprep.subr.bf16.mxu1 %v6739_v5 }
0x156d   : > { %6368 = vmatmul.mubr.msk.bf16.vlgmr.msra.gmra.mrb[32].mxu0 %vm1931_vm3, %v4844_v27 }
0x156e   : > { %6378 = vmatpush3.bf16.xpose.msra.mxu0 %v4993_v41  ;;  %6379 = vmatprep.mubr.msk.bf16.mxu0 %vm6740_vm0, %v6739_v5 }
0x156f   : > { %6374 = vmatmul.mubr.msk.bf16.vlgmr.msra.gmra.mrb[44].mxu1 %vm1931_vm3, %v4847_v3  ;;  %6391 = vmatprep.subr.bf16.mxu0 %v6739_v5 }
0x1570   : > { %6387 = vmatprep.mubr.msk.bf16.mxu1 %vm6740_vm0, %v6739_v5  ;;  %6384 = vmatpush3.bf16.msra.mxu1 %v6547_v48  ;;  %v6555_v48 = vld [vmem:[%s7707_s3 + $0x60] sm:$0xff]  }
0x1571   : > { %6385 = vmatprep.subr.bf16.mxu1 %v6739_v5 }
0x1574   : > { %6386 = vmatpush3.bf16.msra.mxu1 %v6548_v54 }
0x1575   : > { %6380 = vmatmul.mubr.msk.bf16.vlgmr.msra.gmra.mrb[36].mxu0 %vm1931_vm3, %v4850_v1  ;;  %6399 = vmatprep.subr.bf16.mxu1 %v6739_v5 }
0x1576   : > { %6395 = vmatprep.mubr.msk.bf16.mxu0 %vm6740_vm0, %v6739_v5 }
0x163a   : > { %v4891_v6 = vpop.f32.mrb[40].mxu1 }
0x163b   : > { %5035 = vxpose.xlu1.b32.start.end [1/1] (short) (narrow) %v4891_v6, 8  ;;  %v6363_v8 = vpop.f32.mrb[41].mxu1 }
0x163c   : > { %v4894_v9 = vpop.f32.mrb[42].mxu1 }
0x163d   : > { %v6364_v10 = vpop.f32.mrb[43].mxu1 }
0x1640   : > { %v4937_v11 = vpop.f32.mrb[32].mxu0 }
0x1641   : > { %5067 = vxpose.xlu0.b32.start.end [1/1] (short) (narrow) %v4937_v11, 8  ;;  %v6369_v14 = vpop.f32.mrb[33].mxu0 }
0x1642   : > { %v4940_v15 = vpop.f32.mrb[34].mxu0  ;;  %v4983_v17 = vpop.f32.mrb[44].mxu1  ;;  %v6093_v14 = vld [vmem:[%s7703_s11 + $0x1] ss:$0 sm:$0xff] }
0x1643   : > { %v6370_v35 = vpop.f32.mrb[35].mxu0  ;;  %v6375_v18 = vpop.f32.mrb[45].mxu1 }
0x1644   : > { %v4986_v19 = vpop.f32.mrb[46].mxu1 }
0x1645   : > { %5099 = vxpose.xlu0.b32.start.end [1/1] (short) (narrow) %v4983_v17, 8  ;;  %v6376_v21 = vpop.f32.mrb[47].mxu1 }
0x1648   : > { %v5029_v25 = vpop.f32.mrb[36].mxu0 }
0x1649   : > { %v6381_v26 = vpop.f32.mrb[37].mxu0  ;;  %5131 = vxpose.xlu1.b32.start.end [1/1] (short) (narrow) %v5029_v25, 8 }
0x164a   : > { %v5032_v29 = vpop.f32.mrb[38].mxu0 }
0x164b   : > { %v6382_v30 = vpop.f32.mrb[39].mxu0 }
0x16bb   : > { %v5051_v32 = vpop.trf.xlu1 }
0x16c1   : > { %v5083_v31 = vpop.trf.xlu0 }
0x16c5   : > { %v5115_v34 = vpop.trf.xlu0 }
0x16c6   : > { %v5163_v36 = vcombine.low %v5051_v32, %v5115_v34  ;;  %v5164_v37 = vcombine.high %v5051_v32, %v5115_v34  ;;  %v6550_v32 = vld [vmem:[%s7704_s1 + $0x18] sm:$0xff]  }
0x16c8   : > { %v5171_v45 = vrot.slane %v5163_v36, %v7028_v13  ;;  %v5178_v60 = vrot.slane %v5164_v37, %v7028_v13 }
0x16c9   : > { %v5147_v38 = vpop.trf.xlu1 }
0x16ca   : > { %v5179_v39 = vcombine.low %v5083_v31, %v5147_v38  ;;  %v5180_v40 = vcombine.high %v5083_v31, %v5147_v38 }
0x16cc   : > { %v5187_v42 = vrot.slane %v5179_v39, %v7028_v13  ;;  %v5194_v43 = vrot.slane %v5180_v40, %v7028_v13  ;;  %v6096_v39 = vld [vmem:[%s7705_s27 + $0x1] ss:$0 sm:$0xff] }
0x16ce   : > { %v5195_v20 = vcombine.low %v5171_v45, %v5187_v42  ;;  %v5196_v61 = vcombine.high %v5171_v45, %v5187_v42  ;;  %v5211_v47 = vcombine.low %v5178_v60, %v5194_v43  ;;  %v5212_v44 = vcombine.high %v5178_v60, %v5194_v43  ;;  %v6097_v42 = vld [vmem:[%s7706_s7 + $0x1] ss:$0 sm:$0xff]  ;;  %s6751_s7 = smov [#allocation5]  }
0x16d0   : > { %v5203_v62 = vrot.slane %v5195_v20, %v7034_v22  ;;  %v5210_v28 = vrot.slane %v5196_v61, %v7034_v22  ;;  %v5219_v16 = vrot.slane %v5211_v47, %v7034_v22  ;;  %v5226_v49 = vrot.slane %v5212_v44, %v7034_v22  ;;  %v6551_v20 = vld [vmem:[%s7707_s3 + $0x40] sm:$0xff]   ;;  %v6552_v61 = vld [vmem:[%s7707_s3 + $0x48] sm:$0xff]   ;;  %v6553_v47 = vld [vmem:[%s7707_s3 + $0x50] sm:$0xff]  }
0x16d1   : > { %v6554_v44 = vld [vmem:[%s7707_s3 + $0x58] sm:$0xff]  }
0x16d2   : > { %v5231_v50 = vcombine.low %v5203_v62, %v5210_v28  ;;  %v6083_v57 = vcombine.high %v5203_v62, %v5210_v28  ;;  %v5247_v52 = vcombine.low %v5219_v16, %v5226_v49  ;;  %v6084_v53 = vcombine.high %v5219_v16, %v5226_v49  ;;  %v6556_v62 = vld [vmem:[%s7707_s3 + $0x68] sm:$0xff]   ;;  %v6557_v28 = vld [vmem:[%s7707_s3 + $0x70] sm:$0xff]   ;;  %v6558_v16 = vld [vmem:[%s7707_s3 + $0x78] sm:$0xff]  }
0x16d3   : > { %v6103_v49 = vld [vmem:[%s7708_s5 + $0x1] ss:$0 sm:$0xff] }
0x16d4   : > { %v5238_v56 = vrot.slane %v5231_v50, %v7028_v13  ;;  %v5246_v58 = vrot.slane %v6083_v57, %v7028_v13  ;;  %v5254_v51 = vrot.slane %v5247_v52, %v7028_v13  ;;  %v5262_v59 = vrot.slane %v6084_v53, %v7028_v13 }
0x16d6   : > { %v5264_v63 = vcombine.high %v5238_v56, %v5246_v58  ;;  %v5280_v12 = vcombine.high %v5254_v51, %v5262_v59  ;;  %v5263_v46 = vcombine.low %v5238_v56, %v5246_v58  ;;  %v5279_v0 = vcombine.low %v5254_v51, %v5262_v59 }
0x16d8   : > { %v5278_v2 = vrot.slane %v5264_v63, %v7034_v22  ;;  %v5294_v24 = vrot.slane %v5280_v12, %v7034_v22  ;;  %v5271_v23 = vrot.slane %v5263_v46, %v7034_v22  ;;  %v5287_v27 = vrot.slane %v5279_v0, %v7034_v22 }
0x16da   : > { %v5297_v41 = vcombine.low %v5278_v2, %v5294_v24  ;;  %v5296_v3 = vcombine.high %v5271_v23, %v5287_v27  ;;  %v5295_v4 = vcombine.low %v5271_v23, %v5287_v27  ;;  %v5298_v13 = vcombine.high %v5278_v2, %v5294_v24  ;;  %v6124_v23 = vld [vmem:[%s7709_s8 + $0x1] ss:$0 sm:$0xff]  ;;  %s6616_s8 = sshll.u32 %s6751_s7, 4  ;;  %s6617_s8 = int_to_ptr.vmem [resolvable:$false] %s6616_s8 }
0x16db   : > { %s6618_s11 = scalar_lea.vmem %s6617_s8, 32 }
0x16dc   : > { %5304 = vrot.lane.b32.xlu1 %v5297_v41, %s7715_s13  ;;  %5300 = vrot.lane.b32.xlu0 %v5296_v3, %s7716_s17  ;;  %s7720_s13 = sld [smem:[#allocation25_spill]]  ;;  %s7721_s17 = sld [smem:[#allocation28_spill]] }
0x16e0   : > { %5308 = vrot.lane.b32.xlu1 %v5298_v13, %s7717_s14  ;;  %s7556_s14 = sand.u32 1, %s6698_s16  }
0x16e1   : > { %s956_s3 = scalar_lea.vmem [#allocation5], %s7556_s14  ;;  %s5845_s5 = scalar_lea.sflag [#allocation6], %s7556_s14 }
0x174e   : > { %v5305_v33 = vpop.permute.xlu1 %5304  ;;  %v5301_v1 = vpop.permute.xlu0 %5300 }
0x174f   : > { %v5311_v6 = vsel %vm1931_vm3, %v5295_v4, %v5301_v1 }
0x1750   : > { %v5312_v9 = vsel %vm3060_vm4, %v5311_v6, %v5305_v33  ;;  %v5782_v6 = vld [vmem:[#allocation2] sm:$0x1] }
0x1752   : > { %v5309_v8 = vpop.permute.xlu1 %5308 }
0x1753   : > { %v5313_v22 = vsel %vm3062_vm5, %v5312_v9, %v5309_v8 }
0x1754   : > { %v5319_v10 = vpack.c.bf16 %v5313_v22, %v5313_v22 }
0x1756   : > { %6388 = vmatmul.mubr.msk.bf16.vlgmr.msra.gmra.mrb[48].mxu1 %vm980_vm1, %v5319_v10 }
0x1757   : > { %6415 = vmatprep.mubr.msk.bf16.mxu1 %vm6740_vm0, %v6739_v5  ;;  %6400 = vmatpush3.bf16.msra.mxu1 %v6551_v20 }
0x1758   : > { %6401 = vmatprep.subr.bf16.mxu1 %v6739_v5 }
0x175b   : > { %6402 = vmatpush3.bf16.msra.mxu1 %v6552_v61 }
0x175c   : > { %6403 = vmatprep.subr.bf16.mxu1 %v6739_v5 }
0x175f   : > { %6404 = vmatpush3.bf16.msra.mxu1 %v6553_v47 }
0x1760   : > { %6405 = vmatprep.subr.bf16.mxu1 %v6739_v5 }
0x1763   : > { %6406 = vmatpush3.bf16.msra.mxu1 %v6554_v44 }
0x1764   : > { %6407 = vmatprep.subr.bf16.mxu1 %v6739_v5 }
0x1767   : > { %6408 = vmatpush3.bf16.msra.mxu1 %v6555_v48 }
0x1768   : > { %6409 = vmatprep.subr.bf16.mxu1 %v6739_v5 }
0x176b   : > { %6410 = vmatpush3.bf16.msra.mxu1 %v6556_v62 }
0x176c   : > { %6411 = vmatprep.subr.bf16.mxu1 %v6739_v5 }
0x176f   : > { %6412 = vmatpush3.bf16.msra.mxu1 %v6557_v28 }
0x1770   : > { %6413 = vmatprep.subr.bf16.mxu1 %v6739_v5 }
0x1773   : > { %6414 = vmatpush3.bf16.msra.mxu1 %v6558_v16 }
0x1829   : > { %v5369_v11 = vpop.f32.mrb[48].mxu1 }
0x182a   : > { %v5375_v15 = vadd.f32 %v5369_v11, %v7278_v55  ;;  %v6389_v17 = vpop.f32.mrb[49].mxu1  ;;  %v6549_v55 = vld [vmem:[%s7704_s1 + $0x10] sm:$0xff]   ;;  %s7722_s1 = sld [smem:[#allocation27_spill]] }
0x182b   : > { %v5372_v35 = vpop.f32.mrb[50].mxu1  ;;  %6392 = vmatpush3.bf16.msra.mxu0 %v6549_v55  ;;  %v6561_v55 = vld [vmem:[%s7721_s17] sm:$0xff]  }
0x182c   : > { %v7515_v18 = vadd.f32 %v6093_v14, %v5375_v15  ;;  %v6390_v19 = vpop.f32.mrb[51].mxu1  ;;  %6393 = vmatprep.subr.bf16.mxu0 %v6739_v5  ;;  %v6559_v14 = vld [vmem:[%s7718_s26] sm:$0xff]   ;;  %v6560_v15 = vld [vmem:[%s7718_s26 + $0x8] sm:$0xff]  }
0x182e   : > { %v5389_v21 = vsel %vm980_vm1, %v7515_v18, 0.0 }
0x182f   : > { %5390 = vadd.xlane.f32.xlu1 %v5389_v21  ;;  %6394 = vmatpush3.bf16.msra.mxu0 %v6550_v32  ;;  %v6133_v21 = vld [vmem:[%s7719_s9] ss:$0 sm:$0xff]  ;;  %s7723_s9 = sld [smem:[#allocation29_spill]]  ;;  %v6562_v32 = vld [vmem:[%s7721_s17 + $0x8] sm:$0xff]  }
0x1830   : > { %6419 = vmatprep.subr.bf16.mxu0 %v6739_v5 }
0x18bc   : > { %v5391_v25 = vpop.xlane.xlu1 %5390 }
0x18bd   : > { %v5392_v26 = vmul.f32 0.03125, %v5391_v25 }
0x18bf   : > { %v5393_v29 = vsub.f32 %v7515_v18, %v5392_v26  ;;  %v6134_v26 = vld [vmem:[%s7720_s13] ss:$0 sm:$0xff] }
0x18c1   : > { %v5394_v30 = vmul.f32 %v5393_v29, %v5393_v29 }
0x18c3   : > { %v5395_v31 = vsel %vm980_vm1, %v5394_v30, 0.0 }
0x18c4   : > { %5396 = vadd.xlane.f32.xlu0 %v5395_v31 }
0x1951   : > { %v5397_v34 = vpop.xlane.xlu0 %5396 }
0x1952   : > { %v5398_v36 = vmul.f32 0.03125, %v5397_v34  ;;  %v6135_v34 = vld [vmem:[%s7722_s1] ss:$0 sm:$0xff]  ;;  %s6144_s1 = sshll.u32 %s6932_s0, 4 }
0x1953   : > { %s7581_s13 = scalar_lea.hbm %s6909_s12, %s6144_s1 }
0x1954   : > { %v5399_v37 = vadd.f32 1e-05, %v5398_v36 }
0x1956   : > { %6605 = vrsqrt.f32 %v5399_v37 }
0x1960   : > { %v6606_v38 = vpop.eup %6605 }
0x1961   : > { %v5401_v40 = vmul.f32 %v6606_v38, %v5393_v29 }
0x1963   : > { %v5408_v43 = vmul.f32 %v6096_v39, %v5401_v40 }
0x1965   : > { %v5415_v45 = vadd.f32 %v6097_v42, %v5408_v43 }
0x1967   : > { %v5421_v60 = vpack.c.bf16 %v5415_v45, %v5415_v45 }
0x1969   : > { %6396 = vmatmul.mubr.msk.bf16.vlgmr.msra.gmra.mrb[40].mxu0 %vm980_vm1, %v5421_v60  ;;  %v6139_v60 = vld [vmem:[%s7723_s9] ss:$0 sm:$0xff]  ;;  %s5870_s9 = sshll.u32 %s956_s3, 4  ;;  %s5871_s9 = int_to_ptr.vmem [resolvable:$true] %s5870_s9 }
0x196a   : > { %6423 = vmatprep.mubr.msk.bf16.mxu0 %vm6740_vm0, %v6739_v5  ;;  %6420 = vmatpush3.bf16.msra.mxu0 %v6559_v14  ;;  %s6612_s6 = scalar_lea.vmem %s5871_s9, 16  ;;  %p6619_p0 = scmp.lt.s32.totalorder %s5871_s9, %s6617_s8 }
0x196b   : > { %6421 = vmatprep.subr.bf16.mxu0 %v6739_v5  ;;  %p6613_p11 = scmp.ne.s32.totalorder %s5871_s9, %s6612_s6  ;;  %p6620_p1 = scmp.lt.s32.totalorder %s6618_s11, %s6612_s6 }
0x196d   : > { %p6614_p12 = pnand %p6613_p11, %p6949_p5  ;;  %p6621_p2 = por %p6620_p1, %p6619_p0 }
0x196e   : > { %6422 = vmatpush3.bf16.msra.mxu0 %v6560_v15 }
0x196f   : > { %6427 = vmatprep.subr.bf16.mxu0 %v6739_v5  ;;  %p6615_p13 = pneg %p6614_p12 }
0x1971   : > { %p6622_p3 = pnand %p6621_p2, %p6615_p13 }
0x1a3c   : > { %v5479_v50 = vpop.f32.mrb[40].mxu0 }
0x1a3d   : > { %v5480_v57 = vadd.f32 %v6103_v49, %v5479_v50  ;;  %v6397_v52 = vpop.f32.mrb[41].mxu0  ;;  %v5780_v50 = vld [vmem:[%s6896_s20] sm:$0x1] }
0x1a3e   : > { %v5482_v53 = vpop.f32.mrb[42].mxu0 }
0x1a3f   : > { %v5485_v54 = vmul.f32 %v5480_v57, %v5480_v57  ;;  %v6398_v56 = vpop.f32.mrb[43].mxu0 }
0x1a41   : > { %v5486_v58 = vmul.f32 %v5485_v54, %v5480_v57 }
0x1a43   : > { %v5487_v51 = vmul.f32 0.044715, %v5486_v58 }
0x1a45   : > { %v5488_v59 = vadd.f32 %v5487_v51, %v5480_v57 }
0x1a47   : > { %v5489_v63 = vmul.f32 0.7978846, %v5488_v59 }
0x1a49   : > { %6607 = vtanh.f32 %v5489_v63 }
0x1a53   : > { %v6608_v12 = vpop.eup %6607 }
0x1a54   : > { %v5491_v46 = vadd.f32 1.0, %v6608_v12 }
0x1a56   : > { %v5492_v0 = vmul.f32 0.5, %v5491_v46 }
0x1a58   : > { %v5493_v2 = vmul.f32 %v5492_v0, %v5480_v57 }
0x1a5a   : > { %v5511_v24 = vpack.c.bf16 %v5493_v2, %v5493_v2 }
0x1a5c   : > { %6416 = vmatmul.mubr.bf16.vlgmr.msra.gmra.mrb[52].mxu1 %v5511_v24 }
0x1b2f   : > { %v5602_v27 = vpop.f32.mrb[52].mxu1 }
0x1b30   : > { %v5603_v41 = vadd.f32 %v6124_v23, %v5602_v27  ;;  %v6417_v3 = vpop.f32.mrb[53].mxu1 }
0x1b31   : > { %v5605_v4 = vpop.f32.mrb[54].mxu1 }
0x1b32   : > { %v5608_v13 = vadd.f32 %v5603_v41, %v7515_v18  ;;  %v6418_v33 = vpop.f32.mrb[55].mxu1 }
0x1b34   : > { %v5611_v1 = vsel %vm980_vm1, %v5608_v13, 0.0 }
0x1b35   : > { %5612 = vadd.xlane.f32.xlu0 %v5611_v1 }
0x1b4b   : > { %5785 = vperm.xlu0 %6528, %v5782_v6  }
0x1bc2   : > { %v5613_v8 = vpop.xlane.xlu0 %5612 }
0x1bc3   : > { %v5614_v9 = vmul.f32 0.03125, %v5613_v8 }
0x1bc5   : > { %v5615_v22 = vsub.f32 %v5608_v13, %v5614_v9 }
0x1bc7   : > { %v5616_v10 = vmul.f32 %v5615_v22, %v5615_v22 }
0x1bc9   : > { %v5617_v11 = vsel %vm980_vm1, %v5616_v10, 0.0 }
0x1bca   : > { %5618 = vadd.xlane.f32.xlu1 %v5617_v11 }
0x1c57   : > { %v5619_v17 = vpop.xlane.xlu1 %5618 }
0x1c58   : > { %v5620_v35 = vmul.f32 0.03125, %v5619_v17 }
0x1c5a   : > { %v5621_v18 = vadd.f32 1e-05, %v5620_v35 }
0x1c5c   : > { %6609 = vrsqrt.f32 %v5621_v18 }
0x1c66   : > { %v6610_v19 = vpop.eup %6609 }
0x1c67   : > { %v5623_v25 = vmul.f32 %v6610_v19, %v5615_v22 }
0x1c69   : > { %v5630_v29 = vmul.f32 %v6133_v21, %v5623_v25 }
0x1c6b   : > { %v5637_v30 = vadd.f32 %v6134_v26, %v5630_v29 }
0x1c6d   : > { %v5644_v31 = vpack.c.bf16 %v5637_v30, %v5637_v30  ;;  %5639 = vst.msk [vmem:[%s956_s3] sm:$0x1] %vm5638_vm6, %v5637_v30 }
0x1c6f   : > { %6424 = vmatmul.mubr.msk.bf16.vlgmr.msra.gmra.mrb[44].mxu0 %vm980_vm1, %v5644_v31 }
0x1c70   : > { %6431 = vmatprep.mubr.msk.bf16.mxu0 %vm6740_vm0, %v6739_v5  ;;  %6428 = vmatpush3.bf16.msra.mxu0 %v6561_v55 }
0x1c71   : > { %6429 = vmatprep.subr.bf16.mxu0 %v6739_v5 }
0x1c74   : > { %6430 = vmatpush3.bf16.msra.mxu0 %v6562_v32 }
0x1c75   : > { %6435 = vmatprep.subr.bf16.mxu0 %v6739_v5 }
0x1d42   : > { %v5701_v36 = vpop.f32.mrb[44].mxu0 }
0x1d43   : > { %v5702_v37 = vadd.f32 %v6135_v34, %v5701_v36  ;;  %v6425_v38 = vpop.f32.mrb[45].mxu0 }
0x1d44   : > { %v5704_v39 = vpop.f32.mrb[46].mxu0 }
0x1d45   : > { %vm5707_vm7 = vcmp.ge.f32.partialorder %v5702_v37, 0.0  ;;  %v5708_v40 = vmul.f32 0.01, %v5702_v37  ;;  %v6426_v42 = vpop.f32.mrb[47].mxu0 }
0x1d47   : > { %v5709_v43 = vsel %vm5707_vm7, %v5702_v37, %v5708_v40 }
0x1d48   : > { %v5714_v45 = vpack.c.bf16 %v5709_v43, %v5709_v43 }
0x1d4a   : > { %6432 = vmatmul.mubr.msk.bf16.vlgmr.msra.gmra.mrb[48].mxu0 %vm980_vm1, %v5714_v45 }
0x1d4b   : > { %6437 = vmatprep.mubr.msk.bf16.mxu0 %vm6740_vm0, %v6739_v5 }
0x1e1d   : > { %v5771_v20 = vpop.f32.mrb[48].mxu0 }
0x1e1e   : > { %v5772_v61 = vadd.f32 %v6139_v60, %v5771_v20  ;;  %v6433_v47 = vpop.f32.mrb[49].mxu0 }
0x1e1f   : > { %v5774_v44 = vpop.f32.mrb[50].mxu0 }
0x1e20   : > { %vm5777_vm8 = vcmp.ge.f32.partialorder %v5772_v61, 0.0  ;;  %v5778_v48 = vmul.f32 0.01, %v5772_v61  ;;  %v6434_v62 = vpop.f32.mrb[51].mxu0 }
0x1e22   : > { %v5779_v28 = vsel %vm5777_vm8, %v5772_v61, %v5778_v48 }
0x1e23   : > { %v5781_v16 = vpack.c.bf16 %v5779_v28, %v5779_v28 }
0x1e25   : > { %v5796_v49 = vsel %vm980_vm1, %v5781_v16, 0 }
0x1e26   : > { %6436 = vmatpush3.bf16.xpose.msra.mxu0 %v5796_v49 }
0x1e2d   : > { %6438 = vmatmul.mubr.msk.bf16.vlgmr.msra.gmra.mrb[52].mxu0 %vm980_vm1, %v5780_v50 }
0x1e2e   : > { %6625 = shalt.err (!%p6622_p3)
}
0x1e2f   : > { %s6626_s3 = scalar_lea.hbm %s7581_s13, 16  ;;  %s6630_s7 = scalar_lea.hbm %s6909_s12, 32 }
0x1e30   : > { %p6627_p4 = scmp.ne.s32.totalorder %s7581_s13, %s6626_s3  ;;  %p6631_p9 = scmp.lt.u32.totalorder %s7581_s13, %s6909_s12 }
0x1e31   : > { %p6632_p10 = scmp.lt.u32.totalorder %s6630_s7, %s6626_s3  ;;  %p6634_p12 = scmp.lt.u32.totalorder %s6626_s3, %s7581_s13 }
0x1e32   : > { %p6628_p7 = pnand %p6627_p4, %p6949_p5 }
0x1e33   : > { %p6633_p11 = por %p6632_p10, %p6631_p9 }
0x1e34   : > { %p6629_p8 = pneg %p6628_p7 }
0x1e35   : > { %p6635_p0 = por %p6634_p12, %p6633_p11 }
0x1e37   : > { %p6636_p13 = pnand %p6635_p0, %p6629_p8 }
0x1e39   : > { %6639 = shalt.err (!%p6636_p13)
}
0x1e3a   : > { %6442 = dma.vmem_to_hbm [thread:$0]  (%p6949_p5), %s5871_s9, 16, %s7581_s13, %s5845_s5   ;;  %v5790_v5 = vsub.s32 0, %v7025_v7  ;;  %v5786_v57 = vpop.permute.xlu0 %5785  ;;  %vm5838_vm9 = vcmask 57344  }
0x1e3b   : > { %s950_s8 = scalar_lea.vmem [#allocation3], %s7556_s14  ;;  %s7604_s11 = scalar_lea.hbm %s6904_s4, %s6144_s1 }
0x1e3c   : > { %s5857_s6 = sshll.u32 %s950_s8, 4  ;;  %v5791_v52 = vrot.slane %v5786_v57, %v5790_v5  ;;  %s5841_s5 = scalar_lea.sflag [#allocation4], %s7556_s14  ;;  %s7606_s6 = int_to_ptr.vmem [resolvable:$true] %s5857_s6 }
0x1e3d   : > { %s6640_s13 = scalar_lea.vmem %s7606_s6, 16  ;;  %s6752_s9 = smov [#allocation3]  }
0x1e3e   : > { %p6641_p1 = scmp.ne.s32.totalorder %s7606_s6, %s6640_s13  ;;  %s6644_s3 = sshll.u32 %s6752_s9, 4  ;;  %s6645_s3 = int_to_ptr.vmem [resolvable:$false] %s6644_s3 }
0x1e3f   : > { %s6646_s0 = scalar_lea.vmem %s6645_s3, 32  ;;  %p6647_p4 = scmp.lt.s32.totalorder %s7606_s6, %s6645_s3 }
0x1e40   : > { %p6642_p2 = pnand %p6641_p1, %p6949_p5  ;;  %p6648_p7 = scmp.lt.s32.totalorder %s6646_s0, %s6640_s13 }
0x1e42   : > { %p6643_p3 = pneg %p6642_p2  ;;  %p6649_p8 = por %p6648_p7, %p6647_p4 }
0x1e44   : > { %p6650_p9 = pnand %p6649_p8, %p6643_p3 }
0x1f00   : > { %v5832_v53 = vpop.f32.mrb[52].mxu0 }
0x1f01   : > { %v5833_v54 = vadd.f32 %v5832_v53, %v5791_v52  ;;  %v6439_v56 = vpop.f32.mrb[53].mxu0 }
0x1f02   : > { %v5835_v58 = vpop.f32.mrb[54].mxu0 }
0x1f03   : > { %v6440_v51 = vpop.f32.mrb[55].mxu0  ;;  %5839 = vst.msk [vmem:[%s950_s8] sm:$0x1] %vm5838_vm9, %v5833_v54 }
0x1f04   : > { %6653 = shalt.err (!%p6650_p9)
}
0x1f05   : > { %s6654_s14 = scalar_lea.hbm %s7604_s11, 16  ;;  %s6658_s1 = scalar_lea.hbm %s6904_s4, 32 }
0x1f06   : > { %p6655_p10 = scmp.ne.s32.totalorder %s7604_s11, %s6654_s14  ;;  %p6659_p0 = scmp.lt.u32.totalorder %s7604_s11, %s6904_s4 }
0x1f07   : > { %p6660_p13 = scmp.lt.u32.totalorder %s6658_s1, %s6654_s14  ;;  %p6662_p2 = scmp.lt.u32.totalorder %s6654_s14, %s7604_s11 }
0x1f08   : > { %p6656_p11 = pnand %p6655_p10, %p6949_p5 }
0x1f09   : > { %p6661_p1 = por %p6660_p13, %p6659_p0 }
0x1f0a   : > { %p6657_p12 = pneg %p6656_p11 }
0x1f0b   : > { %p6663_p4 = por %p6662_p2, %p6661_p1 }
0x1f0d   : > { %p6664_p3 = pnand %p6663_p4, %p6657_p12 }
0x1f0f   : > { %6667 = shalt.err (!%p6664_p3)
}
0x1f10   : > { %6441 = dma.vmem_to_hbm [thread:$0]  (%p6949_p5), %s7606_s6, 16, %s7604_s11, %s5841_s5  }
0x1f11 PF: > { %p6452_p7 = scmp.ge.s32.totalorder %s6706_s22, 2  ;;  %s5882_s7 = sand.u32 1, %s6694_s15  }
0x1f12   : > { %s5883_s8 = scalar_lea.sflag [#allocation4], %s5882_s7 }
0x1f13   : > { %p6446_p8 = pnand %p6452_p7, %p6953_p6 }
0x1f15   : > { %6685 = dma.done.wait (!%p6446_p8), %s5883_s8, 16  }
0x1f16   : > { %6687 = vsyncadd (!%p6446_p8), %s5883_s8, 4294967280  ;;  %s5891_s13 = scalar_lea.sflag [#allocation6], %s5882_s7 }
0x1f17   : > { %6689 = dma.done.wait (!%p6446_p8), %s5891_s13, 16  }
0x1f18   : > { %6691 = vsyncadd (!%p6446_p8), %s5891_s13, 4294967280  ;;  %p77_p5 = scmp.ge.s32.totalorder %s6936_s23, 4   ;;  %s7724_s15 = smov %s6698_s16 }
0x1f19   : > { %s7725_s16 = smov %s6702_s18  ;;  %s7726_s18 = smov %s6947_s28 }
0x1f1a   : > { %s7727_s22 = smov %s6936_s23  ;;  %79 = sbr.rel (!%p77_p5) target bundleno = 67 (0x43), region = 236 }
0x1f21   :  { %5895 = vsyncpa [#allocation4], 1 }
0x1f22   :  { %5897 = vsyncpa [#allocation4 + $0x1], 1 }
0x1f23   :  { %5898 = vsyncpa [#allocation6], 1 }
0x1f24   :  { %5900 = vsyncpa [#allocation6 + $0x1], 1 }

</bundles_post_ra>
